<compile_context>
chip_gen: v7x
topology: tpu7x:2x2x1
jax: 0.10.0
libtpu: 0.0.40
codegen_flags: <defaults>
</compile_context>

<pallas_src>
import jax
import jax.numpy as jnp
import numpy as np
from jax.experimental import pallas as pl
from jax.experimental.pallas import tpu as pltpu

LANE = 128  # vreg lane width; H is zero-padded to this inside the kernel


def att_kernel(x_ref, Wa_ref, ba_ref, vb_ref, Wih_ref, Whh_ref, bl_ref, out_ref):
    """Whole AttentionLayer + LSTMCell recurrence in one kernel invocation.

    All hidden axes are padded to Hp = 128; padded lanes of the weights and
    biases are zero, so h/c/out stay exactly zero there (no masking needed).
    """
    T, B, Hp = x_ref.shape

    # Loop-invariant weights: load once, hoisted out of the time loop.
    Wa = Wa_ref[...]       # (3Hp, Hp) bf16 = [We_h^T ; We_c^T ; Wb^T]
    ba = ba_ref[...]       # (1, Hp)  f32  = be + bb
    vb = vb_ref[...]       # (1, Hp)  f32
    Wih = Wih_ref[...]     # (Hp, 4Hp) bf16, gate order [i, f, o, g]
    Whh = Whh_ref[...]     # (Hp, 4Hp) bf16, gate order [i, f, o, g]
    bl = bl_ref[...]       # (1, 4Hp) f32  = bih + bhh, gate order [i, f, o, g]

    def step(t, carry):
        h, c = carry                                       # vreg-resident (B, Hp) f32
        x_t = x_ref[t]                                     # (B, Hp)

        # ---- matmuls that do NOT depend on the softmax: issue first --------
        hcx = jnp.concatenate([h, c, x_t], axis=1)         # (B, 3Hp), built in regs
        att_pre = jnp.dot(hcx.astype(jnp.bfloat16), Wa,
                          preferred_element_type=jnp.float32) + ba        # (B, Hp)
        gates_h = jnp.dot(h.astype(jnp.bfloat16), Whh,
                          preferred_element_type=jnp.float32)             # (B, 4Hp)

        # ---- AttentionLayer: tanh(...)·v_b, softmax over the batch axis ----
        score = jnp.sum(jnp.tanh(att_pre) * vb, axis=1, keepdims=True)    # (B, 1)
        m = jnp.max(score, axis=0, keepdims=True)
        ez = jnp.exp(score - m)
        denom = jnp.sum(ez, axis=0, keepdims=True)
        alpha = ez * pl.reciprocal(denom, approx=True)     # EUP vrcp slot
        weight = alpha * x_t                               # (B, Hp)

        # ---- LSTMCell, gate order [i, f, o, g] (reordered host-side) -------
        gates = jnp.dot(weight.astype(jnp.bfloat16), Wih,
                        preferred_element_type=jnp.float32) + gates_h + bl  # (B, 4Hp)
        sg = jax.nn.sigmoid(gates[:, 0:3 * Hp])            # sigmoid only over i|f|o
        ig = sg[:, 0 * Hp:1 * Hp]
        fg = sg[:, 1 * Hp:2 * Hp]
        og = sg[:, 2 * Hp:3 * Hp]
        gg = jnp.tanh(gates[:, 3 * Hp:4 * Hp])
        c_new = fg * c + ig * gg
        h_new = og * jnp.tanh(c_new)

        out_ref[t] = h_new                                 # lane-dense (B, 128) store
        return (h_new, c_new)

    zero = jnp.zeros((B, Hp), jnp.float32)
    # T is small (8); cap the unroll (e.g. unroll=8) if T grows.
    jax.lax.fori_loop(0, T, step, (zero, zero), unroll=True)


def att_forward(x, fused_params):
    """x: (T, B, H) float32 -> output (T, B, H) float32."""
    T, B, H = x.shape
    Hp = LANE
    Wa, ba, vbp, Wih, Whh, bl = fused_params
    x_p = jnp.pad(x, ((0, 0), (0, 0), (0, Hp - H)))        # lane-align H -> 128

    def full_spec(arr):
        nd = arr.ndim
        return pl.BlockSpec(arr.shape, lambda i, _nd=nd: (0,) * _nd)

    grid_spec = pltpu.PrefetchScalarGridSpec(
        num_scalar_prefetch=0,
        grid=(1,),                                         # whole recurrence in one shot
        in_specs=[
            pl.BlockSpec((T, B, Hp), lambda i: (0, 0, 0)),  # full x in VMEM
            full_spec(Wa), full_spec(ba), full_spec(vbp),
            full_spec(Wih), full_spec(Whh), full_spec(bl),
        ],
        out_specs=pl.BlockSpec((T, B, Hp), lambda i: (0, 0, 0)),
    )

    out_p = pl.pallas_call(
        att_kernel,
        out_shape=jax.ShapeDtypeStruct((T, B, Hp), jnp.float32),
        grid_spec=grid_spec,
        compiler_params=pltpu.CompilerParams(
            dimension_semantics=("arbitrary",)),           # sequential recurrence
    )(x_p, Wa, ba, vbp, Wih, Whh, bl)
    return out_p[:, :, :H]


def att_reference(x, raw_params):
    """Pure-JAX f32 reference (lax.scan) mirroring the PyTorch outer loop."""
    Wb, bb, vb, We, be, Wih, Whh, bih, bhh = raw_params
    T, B, H = x.shape

    def step(carry, x_i):
        h, c = carry
        hc = jnp.concatenate([h, c], axis=1)
        a = hc @ We.T + be
        b = x_i @ Wb.T + bb
        score = jnp.tanh(a + b) @ vb.T
        alpha = jax.nn.softmax(score, axis=0)
        w = alpha * x_i
        gates = w @ Wih.T + h @ Whh.T + bih + bhh
        ig = jax.nn.sigmoid(gates[:, 0:H])
        fg = jax.nn.sigmoid(gates[:, H:2 * H])
        gg = jnp.tanh(gates[:, 2 * H:3 * H])
        og = jax.nn.sigmoid(gates[:, 3 * H:4 * H])
        c2 = fg * c + ig * gg
        h2 = og * jnp.tanh(c2)
        return (h2, c2), h2

    init = (jnp.zeros((B, H), jnp.float32), jnp.zeros((B, H), jnp.float32))
    _, out = jax.lax.scan(step, init, x)
    return out


def init_raw_params(key, H):
    """Deterministic synthetic parameters matching the PyTorch module shapes."""
    ks = jax.random.split(key, 9)

    def xavier(k, shape):  # (out, in)
        fan_out, fan_in = shape
        std = (2.0 / (fan_in + fan_out)) ** 0.5
        return std * jax.random.normal(k, shape, jnp.float32)

    Wb = xavier(ks[0], (H, H))                                   # W_b.weight
    bb = 0.1 * jax.random.normal(ks[1], (1, H), jnp.float32)     # W_b.bias
    vb = xavier(ks[2], (1, H))                                   # v_b
    We = xavier(ks[3], (H, 2 * H))                               # W_e.weight
    be = 0.1 * jax.random.normal(ks[4], (1, H), jnp.float32)     # W_e.bias
    s = 1.0 / (H ** 0.5)
    Wih = s * jax.random.normal(ks[5], (4 * H, H), jnp.float32)  # lstm weight_ih
    Whh = s * jax.random.normal(ks[6], (4 * H, H), jnp.float32)  # lstm weight_hh
    bih = s * jax.random.normal(ks[7], (1, 4 * H), jnp.float32)  # lstm bias_ih
    bhh = s * jax.random.normal(ks[8], (1, 4 * H), jnp.float32)  # lstm bias_hh
    return Wb, bb, vb, We, be, Wih, Whh, bih, bhh


def fuse_params(raw_params, Hp=LANE):
    """Host-side weight stacking, gate reordering, 128-lane zero padding, bf16 cast.

    Padded input rows and padded output columns are zero everywhere, so padded
    lanes of h / c / output remain exactly zero throughout the recurrence.
    """
    Wb, bb, vb, We, be, Wih, Whh, bih, bhh = raw_params
    H = Wb.shape[0]

    def pad_cols(a):            # (1, n) -> (1, Hp)
        return jnp.pad(a, ((0, 0), (0, Hp - a.shape[1])))

    def pad_block(w):           # (H, H) -> (Hp, Hp)
        return jnp.pad(w, ((0, Hp - H), (0, Hp - H)))

    # Attention matmul acts on [h | c | x_t], each block padded to Hp lanes.
    We_h = We[:, :H].T          # rows of We.T acting on h
    We_c = We[:, H:].T          # rows of We.T acting on c
    Wa = jnp.concatenate([pad_block(We_h), pad_block(We_c), pad_block(Wb.T)],
                         axis=0)                            # (3Hp, Hp)
    ba = pad_cols(be + bb)                                  # (1, Hp)
    vbp = pad_cols(vb)                                      # (1, Hp)

    # LSTM: PyTorch gate order [i, f, g, o] -> [i, f, o, g]; pad each gate block.
    def reorder_pad_w(w):       # (4H, H) -> (Hp, 4Hp)
        wi, wf, wg, wo = w[0:H], w[H:2 * H], w[2 * H:3 * H], w[3 * H:4 * H]
        return jnp.concatenate([pad_block(b.T) for b in (wi, wf, wo, wg)], axis=1)

    def reorder_pad_b(b):       # (1, 4H) -> (1, 4Hp)
        bi, bf, bg, bo = b[:, 0:H], b[:, H:2 * H], b[:, 2 * H:3 * H], b[:, 3 * H:4 * H]
        return jnp.concatenate([pad_cols(v) for v in (bi, bf, bo, bg)], axis=1)

    Wa_bf = Wa.astype(jnp.bfloat16)
    Wih_bf = reorder_pad_w(Wih).astype(jnp.bfloat16)
    Whh_bf = reorder_pad_w(Whh).astype(jnp.bfloat16)
    bl = reorder_pad_b(bih + bhh)
    return Wa_bf, ba, vbp, Wih_bf, Whh_bf, bl


if __name__ == "__main__":
    H = 32   # hidden_size
    T = 8    # x.size(0)  (sequence)
    B = 4    # x.size(1)  (batch)

    root = jax.random.PRNGKey(0)
    k_params, k_x = jax.random.split(root)
    raw_params = init_raw_params(k_params, H)
    x = jax.random.normal(k_x, (T, B, H), jnp.float32)

    fused = fuse_params(raw_params)
    out = jax.block_until_ready(jax.jit(att_forward)(x, fused))

    ref = jax.block_until_ready(att_reference(x, raw_params))
    assert out.shape == (T, B, H)
    # bf16 MXU operands + approx reciprocal -> looser tolerance vs. the f32 reference.
    np.testing.assert_allclose(np.asarray(out), np.asarray(ref),
                               rtol=5e-2, atol=5e-2)

    print("KERNEL_OK")
</pallas_src>

<mosaic_0001>
module attributes {stable_mosaic.version = 11 : i64} {
  func.func @att_kernel(%arg0: i32, %arg1: memref<8x4x128xf32, #tpu.memory_space<vmem>>, %arg2: memref<384x128xbf16, #tpu.memory_space<vmem>>, %arg3: memref<1x128xf32, #tpu.memory_space<vmem>>, %arg4: memref<1x128xf32, #tpu.memory_space<vmem>>, %arg5: memref<128x512xbf16, #tpu.memory_space<vmem>>, %arg6: memref<128x512xbf16, #tpu.memory_space<vmem>>, %arg7: memref<1x512xf32, #tpu.memory_space<vmem>>, %arg8: memref<8x4x128xf32, #tpu.memory_space<vmem>>) attributes {dimension_semantics = [#tpu.dimension_semantics<arbitrary>], iteration_bounds = array<i64: 1>, scalar_prefetch = 0 : i64, scratch_operands = 0 : i64, tpu.core_type = #tpu.core_type<tc>, window_params = [{pipeline_mode = #tpu.pipeline_mode<synchronous>, transform_indices = @transform_0, window_bounds = array<i64: 8, 4, 128>}, {pipeline_mode = #tpu.pipeline_mode<synchronous>, transform_indices = @transform_1, window_bounds = array<i64: 384, 128>}, {pipeline_mode = #tpu.pipeline_mode<synchronous>, transform_indices = @transform_2, window_bounds = array<i64: 1, 128>}, {pipeline_mode = #tpu.pipeline_mode<synchronous>, transform_indices = @transform_3, window_bounds = array<i64: 1, 128>}, {pipeline_mode = #tpu.pipeline_mode<synchronous>, transform_indices = @transform_4, window_bounds = array<i64: 128, 512>}, {pipeline_mode = #tpu.pipeline_mode<synchronous>, transform_indices = @transform_5, window_bounds = array<i64: 128, 512>}, {pipeline_mode = #tpu.pipeline_mode<synchronous>, transform_indices = @transform_6, window_bounds = array<i64: 1, 512>}, {pipeline_mode = #tpu.pipeline_mode<synchronous>, transform_indices = @transform_7, window_bounds = array<i64: 8, 4, 128>}]} {
    %c0 = arith.constant 0 : index
    %c0_0 = arith.constant 0 : index
    %0 = vector.load %arg2[%c0, %c0_0] : memref<384x128xbf16, #tpu.memory_space<vmem>>, vector<384x128xbf16>
    %c0_1 = arith.constant 0 : index
    %c0_2 = arith.constant 0 : index
    %1 = vector.load %arg3[%c0_1, %c0_2] : memref<1x128xf32, #tpu.memory_space<vmem>>, vector<1x128xf32>
    %c0_3 = arith.constant 0 : index
    %c0_4 = arith.constant 0 : index
    %2 = vector.load %arg4[%c0_3, %c0_4] : memref<1x128xf32, #tpu.memory_space<vmem>>, vector<1x128xf32>
    %c0_5 = arith.constant 0 : index
    %c0_6 = arith.constant 0 : index
    %3 = vector.load %arg5[%c0_5, %c0_6] : memref<128x512xbf16, #tpu.memory_space<vmem>>, vector<128x512xbf16>
    %c0_7 = arith.constant 0 : index
    %c0_8 = arith.constant 0 : index
    %4 = vector.load %arg6[%c0_7, %c0_8] : memref<128x512xbf16, #tpu.memory_space<vmem>>, vector<128x512xbf16>
    %c0_9 = arith.constant 0 : index
    %c0_10 = arith.constant 0 : index
    %5 = vector.load %arg7[%c0_9, %c0_10] : memref<1x512xf32, #tpu.memory_space<vmem>>, vector<1x512xf32>
    %cst = arith.constant 0.000000e+00 : f32
    %6 = vector.broadcast %cst : f32 to vector<4x128xf32>
    %c0_i32 = arith.constant 0 : i32
    %7 = arith.index_cast %c0_i32 : i32 to index
    %c0_11 = arith.constant 0 : index
    %c0_12 = arith.constant 0 : index
    %8 = vector.load %arg1[%7, %c0_11, %c0_12] : memref<8x4x128xf32, #tpu.memory_space<vmem>>, vector<1x4x128xf32>
    %9 = vector.shape_cast %8 : vector<1x4x128xf32> to vector<4x128xf32>
    %10 = tpu.concatenate %6, %6, %9 in 1 : vector<4x128xf32>, vector<4x128xf32>, vector<4x128xf32> -> vector<4x384xf32>
    %11 = arith.truncf %10 : vector<4x384xf32> to vector<4x384xbf16>
    %cst_13 = arith.constant dense<0.000000e+00> : vector<4x128xf32>
    %12 = tpu.matmul %11, %0, %cst_13 {dimension_numbers = #tpu.dot_dimension_numbers<[1], [0], [0], [1], [0, 0, 1, 1], [], []>} : vector<4x384xbf16>, vector<384x128xbf16>, vector<4x128xf32> -> vector<4x128xf32>
    %13 = vector.broadcast %1 : vector<1x128xf32> to vector<4x128xf32>
    %14 = arith.addf %12, %13 : vector<4x128xf32>
    %15 = arith.truncf %6 : vector<4x128xf32> to vector<4x128xbf16>
    %cst_14 = arith.constant dense<0.000000e+00> : vector<4x512xf32>
    %16 = tpu.matmul %15, %4, %cst_14 {dimension_numbers = #tpu.dot_dimension_numbers<[1], [0], [0], [1], [0, 0, 1, 1], [], []>} : vector<4x128xbf16>, vector<128x512xbf16>, vector<4x512xf32> -> vector<4x512xf32>
    %17 = math.tanh %14 : vector<4x128xf32>
    %18 = vector.broadcast %2 : vector<1x128xf32> to vector<4x128xf32>
    %19 = arith.mulf %17, %18 : vector<4x128xf32>
    %cst_15 = arith.constant dense<0.000000e+00> : vector<4xf32>
    %20 = vector.multi_reduction <add>, %19, %cst_15 [1] : vector<4x128xf32> to vector<4xf32>
    %21 = vector.shape_cast %20 : vector<4xf32> to vector<4x1xf32>
    %cst_16 = arith.constant dense<0xFF800000> : vector<1xf32>
    %22 = vector.multi_reduction <maximumf>, %21, %cst_16 [0] : vector<4x1xf32> to vector<1xf32>
    %23 = vector.shape_cast %22 : vector<1xf32> to vector<1x1xf32>
    %24 = vector.broadcast %23 : vector<1x1xf32> to vector<4x1xf32>
    %25 = arith.subf %21, %24 : vector<4x1xf32>
    %26 = math.exp %25 : vector<4x1xf32>
    %cst_17 = arith.constant dense<0.000000e+00> : vector<1xf32>
    %27 = vector.multi_reduction <add>, %26, %cst_17 [0] : vector<4x1xf32> to vector<1xf32>
    %28 = vector.shape_cast %27 : vector<1xf32> to vector<1x1xf32>
    %29 = tpu.reciprocal %28 {approx = true} : vector<1x1xf32> -> vector<1x1xf32>
    %30 = vector.broadcast %29 : vector<1x1xf32> to vector<4x1xf32>
    %31 = arith.mulf %26, %30 : vector<4x1xf32>
    %32 = vector.broadcast %31 : vector<4x1xf32> to vector<4x128xf32>
    %33 = arith.mulf %32, %9 : vector<4x128xf32>
    %34 = arith.truncf %33 : vector<4x128xf32> to vector<4x128xbf16>
    %cst_18 = arith.constant dense<0.000000e+00> : vector<4x512xf32>
    %35 = tpu.matmul %34, %3, %cst_18 {dimension_numbers = #tpu.dot_dimension_numbers<[1], [0], [0], [1], [0, 0, 1, 1], [], []>} : vector<4x128xbf16>, vector<128x512xbf16>, vector<4x512xf32> -> vector<4x512xf32>
    %36 = arith.addf %35, %16 : vector<4x512xf32>
    %37 = vector.broadcast %5 : vector<1x512xf32> to vector<4x512xf32>
    %38 = arith.addf %36, %37 : vector<4x512xf32>
    %39 = vector.extract_strided_slice %38 {offsets = [0, 0], sizes = [4, 384], strides = [1, 1]} : vector<4x512xf32> to vector<4x384xf32>
    %40 = arith.negf %39 : vector<4x384xf32>
    %41 = math.exp %40 : vector<4x384xf32>
    %cst_19 = arith.constant 1.000000e+00 : f32
    %42 = vector.broadcast %cst_19 : f32 to vector<4x384xf32>
    %43 = arith.addf %42, %41 : vector<4x384xf32>
    %44 = arith.divf %42, %43 : vector<4x384xf32>
    %45 = vector.extract_strided_slice %44 {offsets = [0, 0], sizes = [4, 128], strides = [1, 1]} : vector<4x384xf32> to vector<4x128xf32>
    %46 = vector.extract_strided_slice %44 {offsets = [0, 128], sizes = [4, 128], strides = [1, 1]} : vector<4x384xf32> to vector<4x128xf32>
    %47 = vector.extract_strided_slice %44 {offsets = [0, 256], sizes = [4, 128], strides = [1, 1]} : vector<4x384xf32> to vector<4x128xf32>
    %48 = vector.extract_strided_slice %38 {offsets = [0, 384], sizes = [4, 128], strides = [1, 1]} : vector<4x512xf32> to vector<4x128xf32>
    %49 = math.tanh %48 : vector<4x128xf32>
    %50 = arith.mulf %46, %6 : vector<4x128xf32>
    %51 = arith.mulf %45, %49 : vector<4x128xf32>
    %52 = arith.addf %50, %51 : vector<4x128xf32>
    %53 = math.tanh %52 : vector<4x128xf32>
    %54 = arith.mulf %47, %53 : vector<4x128xf32>
    %55 = arith.index_cast %c0_i32 : i32 to index
    %c0_20 = arith.constant 0 : index
    %c0_21 = arith.constant 0 : index
    %56 = vector.load %arg8[%55, %c0_20, %c0_21] : memref<8x4x128xf32, #tpu.memory_space<vmem>>, vector<1x4x128xf32>
    %57 = vector.shape_cast %56 : vector<1x4x128xf32> to vector<4x128xf32>
    %58 = vector.shape_cast %54 : vector<4x128xf32> to vector<1x4x128xf32>
    tpu.vector_store %arg8[%55, %c0_20, %c0_21], %58 {strides = array<i32>} : memref<8x4x128xf32, #tpu.memory_space<vmem>>, vector<1x4x128xf32>,
    %c1_i32 = arith.constant 1 : i32
    %59 = arith.index_cast %c1_i32 : i32 to index
    %c0_22 = arith.constant 0 : index
    %c0_23 = arith.constant 0 : index
    %60 = vector.load %arg1[%59, %c0_22, %c0_23] : memref<8x4x128xf32, #tpu.memory_space<vmem>>, vector<1x4x128xf32>
    %61 = vector.shape_cast %60 : vector<1x4x128xf32> to vector<4x128xf32>
    %62 = tpu.concatenate %54, %52, %61 in 1 : vector<4x128xf32>, vector<4x128xf32>, vector<4x128xf32> -> vector<4x384xf32>
    %63 = arith.truncf %62 : vector<4x384xf32> to vector<4x384xbf16>
    %cst_24 = arith.constant dense<0.000000e+00> : vector<4x128xf32>
    %64 = tpu.matmul %63, %0, %cst_24 {dimension_numbers = #tpu.dot_dimension_numbers<[1], [0], [0], [1], [0, 0, 1, 1], [], []>} : vector<4x384xbf16>, vector<384x128xbf16>, vector<4x128xf32> -> vector<4x128xf32>
    %65 = vector.broadcast %1 : vector<1x128xf32> to vector<4x128xf32>
    %66 = arith.addf %64, %65 : vector<4x128xf32>
    %67 = arith.truncf %54 : vector<4x128xf32> to vector<4x128xbf16>
    %cst_25 = arith.constant dense<0.000000e+00> : vector<4x512xf32>
    %68 = tpu.matmul %67, %4, %cst_25 {dimension_numbers = #tpu.dot_dimension_numbers<[1], [0], [0], [1], [0, 0, 1, 1], [], []>} : vector<4x128xbf16>, vector<128x512xbf16>, vector<4x512xf32> -> vector<4x512xf32>
    %69 = math.tanh %66 : vector<4x128xf32>
    %70 = vector.broadcast %2 : vector<1x128xf32> to vector<4x128xf32>
    %71 = arith.mulf %69, %70 : vector<4x128xf32>
    %cst_26 = arith.constant dense<0.000000e+00> : vector<4xf32>
    %72 = vector.multi_reduction <add>, %71, %cst_26 [1] : vector<4x128xf32> to vector<4xf32>
    %73 = vector.shape_cast %72 : vector<4xf32> to vector<4x1xf32>
    %cst_27 = arith.constant dense<0xFF800000> : vector<1xf32>
    %74 = vector.multi_reduction <maximumf>, %73, %cst_27 [0] : vector<4x1xf32> to vector<1xf32>
    %75 = vector.shape_cast %74 : vector<1xf32> to vector<1x1xf32>
    %76 = vector.broadcast %75 : vector<1x1xf32> to vector<4x1xf32>
    %77 = arith.subf %73, %76 : vector<4x1xf32>
    %78 = math.exp %77 : vector<4x1xf32>
    %cst_28 = arith.constant dense<0.000000e+00> : vector<1xf32>
    %79 = vector.multi_reduction <add>, %78, %cst_28 [0] : vector<4x1xf32> to vector<1xf32>
    %80 = vector.shape_cast %79 : vector<1xf32> to vector<1x1xf32>
    %81 = tpu.reciprocal %80 {approx = true} : vector<1x1xf32> -> vector<1x1xf32>
    %82 = vector.broadcast %81 : vector<1x1xf32> to vector<4x1xf32>
    %83 = arith.mulf %78, %82 : vector<4x1xf32>
    %84 = vector.broadcast %83 : vector<4x1xf32> to vector<4x128xf32>
    %85 = arith.mulf %84, %61 : vector<4x128xf32>
    %86 = arith.truncf %85 : vector<4x128xf32> to vector<4x128xbf16>
    %cst_29 = arith.constant dense<0.000000e+00> : vector<4x512xf32>
    %87 = tpu.matmul %86, %3, %cst_29 {dimension_numbers = #tpu.dot_dimension_numbers<[1], [0], [0], [1], [0, 0, 1, 1], [], []>} : vector<4x128xbf16>, vector<128x512xbf16>, vector<4x512xf32> -> vector<4x512xf32>
    %88 = arith.addf %87, %68 : vector<4x512xf32>
    %89 = vector.broadcast %5 : vector<1x512xf32> to vector<4x512xf32>
    %90 = arith.addf %88, %89 : vector<4x512xf32>
    %91 = vector.extract_strided_slice %90 {offsets = [0, 0], sizes = [4, 384], strides = [1, 1]} : vector<4x512xf32> to vector<4x384xf32>
    %92 = arith.negf %91 : vector<4x384xf32>
    %93 = math.exp %92 : vector<4x384xf32>
    %cst_30 = arith.constant 1.000000e+00 : f32
    %94 = vector.broadcast %cst_30 : f32 to vector<4x384xf32>
    %95 = arith.addf %94, %93 : vector<4x384xf32>
    %96 = arith.divf %94, %95 : vector<4x384xf32>
    %97 = vector.extract_strided_slice %96 {offsets = [0, 0], sizes = [4, 128], strides = [1, 1]} : vector<4x384xf32> to vector<4x128xf32>
    %98 = vector.extract_strided_slice %96 {offsets = [0, 128], sizes = [4, 128], strides = [1, 1]} : vector<4x384xf32> to vector<4x128xf32>
    %99 = vector.extract_strided_slice %96 {offsets = [0, 256], sizes = [4, 128], strides = [1, 1]} : vector<4x384xf32> to vector<4x128xf32>
    %100 = vector.extract_strided_slice %90 {offsets = [0, 384], sizes = [4, 128], strides = [1, 1]} : vector<4x512xf32> to vector<4x128xf32>
    %101 = math.tanh %100 : vector<4x128xf32>
    %102 = arith.mulf %98, %52 : vector<4x128xf32>
    %103 = arith.mulf %97, %101 : vector<4x128xf32>
    %104 = arith.addf %102, %103 : vector<4x128xf32>
    %105 = math.tanh %104 : vector<4x128xf32>
    %106 = arith.mulf %99, %105 : vector<4x128xf32>
    %107 = arith.index_cast %c1_i32 : i32 to index
    %c0_31 = arith.constant 0 : index
    %c0_32 = arith.constant 0 : index
    %108 = vector.load %arg8[%107, %c0_31, %c0_32] : memref<8x4x128xf32, #tpu.memory_space<vmem>>, vector<1x4x128xf32>
    %109 = vector.shape_cast %108 : vector<1x4x128xf32> to vector<4x128xf32>
    %110 = vector.shape_cast %106 : vector<4x128xf32> to vector<1x4x128xf32>
    tpu.vector_store %arg8[%107, %c0_31, %c0_32], %110 {strides = array<i32>} : memref<8x4x128xf32, #tpu.memory_space<vmem>>, vector<1x4x128xf32>,
    %c2_i32 = arith.constant 2 : i32
    %111 = arith.index_cast %c2_i32 : i32 to index
    %c0_33 = arith.constant 0 : index
    %c0_34 = arith.constant 0 : index
    %112 = vector.load %arg1[%111, %c0_33, %c0_34] : memref<8x4x128xf32, #tpu.memory_space<vmem>>, vector<1x4x128xf32>
    %113 = vector.shape_cast %112 : vector<1x4x128xf32> to vector<4x128xf32>
    %114 = tpu.concatenate %106, %104, %113 in 1 : vector<4x128xf32>, vector<4x128xf32>, vector<4x128xf32> -> vector<4x384xf32>
    %115 = arith.truncf %114 : vector<4x384xf32> to vector<4x384xbf16>
    %cst_35 = arith.constant dense<0.000000e+00> : vector<4x128xf32>
    %116 = tpu.matmul %115, %0, %cst_35 {dimension_numbers = #tpu.dot_dimension_numbers<[1], [0], [0], [1], [0, 0, 1, 1], [], []>} : vector<4x384xbf16>, vector<384x128xbf16>, vector<4x128xf32> -> vector<4x128xf32>
    %117 = vector.broadcast %1 : vector<1x128xf32> to vector<4x128xf32>
    %118 = arith.addf %116, %117 : vector<4x128xf32>
    %119 = arith.truncf %106 : vector<4x128xf32> to vector<4x128xbf16>
    %cst_36 = arith.constant dense<0.000000e+00> : vector<4x512xf32>
    %120 = tpu.matmul %119, %4, %cst_36 {dimension_numbers = #tpu.dot_dimension_numbers<[1], [0], [0], [1], [0, 0, 1, 1], [], []>} : vector<4x128xbf16>, vector<128x512xbf16>, vector<4x512xf32> -> vector<4x512xf32>
    %121 = math.tanh %118 : vector<4x128xf32>
    %122 = vector.broadcast %2 : vector<1x128xf32> to vector<4x128xf32>
    %123 = arith.mulf %121, %122 : vector<4x128xf32>
    %cst_37 = arith.constant dense<0.000000e+00> : vector<4xf32>
    %124 = vector.multi_reduction <add>, %123, %cst_37 [1] : vector<4x128xf32> to vector<4xf32>
    %125 = vector.shape_cast %124 : vector<4xf32> to vector<4x1xf32>
    %cst_38 = arith.constant dense<0xFF800000> : vector<1xf32>
    %126 = vector.multi_reduction <maximumf>, %125, %cst_38 [0] : vector<4x1xf32> to vector<1xf32>
    %127 = vector.shape_cast %126 : vector<1xf32> to vector<1x1xf32>
    %128 = vector.broadcast %127 : vector<1x1xf32> to vector<4x1xf32>
    %129 = arith.subf %125, %128 : vector<4x1xf32>
    %130 = math.exp %129 : vector<4x1xf32>
    %cst_39 = arith.constant dense<0.000000e+00> : vector<1xf32>
    %131 = vector.multi_reduction <add>, %130, %cst_39 [0] : vector<4x1xf32> to vector<1xf32>
    %132 = vector.shape_cast %131 : vector<1xf32> to vector<1x1xf32>
    %133 = tpu.reciprocal %132 {approx = true} : vector<1x1xf32> -> vector<1x1xf32>
    %134 = vector.broadcast %133 : vector<1x1xf32> to vector<4x1xf32>
    %135 = arith.mulf %130, %134 : vector<4x1xf32>
    %136 = vector.broadcast %135 : vector<4x1xf32> to vector<4x128xf32>
    %137 = arith.mulf %136, %113 : vector<4x128xf32>
    %138 = arith.truncf %137 : vector<4x128xf32> to vector<4x128xbf16>
    %cst_40 = arith.constant dense<0.000000e+00> : vector<4x512xf32>
    %139 = tpu.matmul %138, %3, %cst_40 {dimension_numbers = #tpu.dot_dimension_numbers<[1], [0], [0], [1], [0, 0, 1, 1], [], []>} : vector<4x128xbf16>, vector<128x512xbf16>, vector<4x512xf32> -> vector<4x512xf32>
    %140 = arith.addf %139, %120 : vector<4x512xf32>
    %141 = vector.broadcast %5 : vector<1x512xf32> to vector<4x512xf32>
    %142 = arith.addf %140, %141 : vector<4x512xf32>
    %143 = vector.extract_strided_slice %142 {offsets = [0, 0], sizes = [4, 384], strides = [1, 1]} : vector<4x512xf32> to vector<4x384xf32>
    %144 = arith.negf %143 : vector<4x384xf32>
    %145 = math.exp %144 : vector<4x384xf32>
    %cst_41 = arith.constant 1.000000e+00 : f32
    %146 = vector.broadcast %cst_41 : f32 to vector<4x384xf32>
    %147 = arith.addf %146, %145 : vector<4x384xf32>
    %148 = arith.divf %146, %147 : vector<4x384xf32>
    %149 = vector.extract_strided_slice %148 {offsets = [0, 0], sizes = [4, 128], strides = [1, 1]} : vector<4x384xf32> to vector<4x128xf32>
    %150 = vector.extract_strided_slice %148 {offsets = [0, 128], sizes = [4, 128], strides = [1, 1]} : vector<4x384xf32> to vector<4x128xf32>
    %151 = vector.extract_strided_slice %148 {offsets = [0, 256], sizes = [4, 128], strides = [1, 1]} : vector<4x384xf32> to vector<4x128xf32>
    %152 = vector.extract_strided_slice %142 {offsets = [0, 384], sizes = [4, 128], strides = [1, 1]} : vector<4x512xf32> to vector<4x128xf32>
    %153 = math.tanh %152 : vector<4x128xf32>
    %154 = arith.mulf %150, %104 : vector<4x128xf32>
    %155 = arith.mulf %149, %153 : vector<4x128xf32>
    %156 = arith.addf %154, %155 : vector<4x128xf32>
    %157 = math.tanh %156 : vector<4x128xf32>
    %158 = arith.mulf %151, %157 : vector<4x128xf32>
    %159 = arith.index_cast %c2_i32 : i32 to index
    %c0_42 = arith.constant 0 : index
    %c0_43 = arith.constant 0 : index
    %160 = vector.load %arg8[%159, %c0_42, %c0_43] : memref<8x4x128xf32, #tpu.memory_space<vmem>>, vector<1x4x128xf32>
    %161 = vector.shape_cast %160 : vector<1x4x128xf32> to vector<4x128xf32>
    %162 = vector.shape_cast %158 : vector<4x128xf32> to vector<1x4x128xf32>
    tpu.vector_store %arg8[%159, %c0_42, %c0_43], %162 {strides = array<i32>} : memref<8x4x128xf32, #tpu.memory_space<vmem>>, vector<1x4x128xf32>,
    %c3_i32 = arith.constant 3 : i32
    %163 = arith.index_cast %c3_i32 : i32 to index
    %c0_44 = arith.constant 0 : index
    %c0_45 = arith.constant 0 : index
    %164 = vector.load %arg1[%163, %c0_44, %c0_45] : memref<8x4x128xf32, #tpu.memory_space<vmem>>, vector<1x4x128xf32>
    %165 = vector.shape_cast %164 : vector<1x4x128xf32> to vector<4x128xf32>
    %166 = tpu.concatenate %158, %156, %165 in 1 : vector<4x128xf32>, vector<4x128xf32>, vector<4x128xf32> -> vector<4x384xf32>
    %167 = arith.truncf %166 : vector<4x384xf32> to vector<4x384xbf16>
    %cst_46 = arith.constant dense<0.000000e+00> : vector<4x128xf32>
    %168 = tpu.matmul %167, %0, %cst_46 {dimension_numbers = #tpu.dot_dimension_numbers<[1], [0], [0], [1], [0, 0, 1, 1], [], []>} : vector<4x384xbf16>, vector<384x128xbf16>, vector<4x128xf32> -> vector<4x128xf32>
    %169 = vector.broadcast %1 : vector<1x128xf32> to vector<4x128xf32>
    %170 = arith.addf %168, %169 : vector<4x128xf32>
    %171 = arith.truncf %158 : vector<4x128xf32> to vector<4x128xbf16>
    %cst_47 = arith.constant dense<0.000000e+00> : vector<4x512xf32>
    %172 = tpu.matmul %171, %4, %cst_47 {dimension_numbers = #tpu.dot_dimension_numbers<[1], [0], [0], [1], [0, 0, 1, 1], [], []>} : vector<4x128xbf16>, vector<128x512xbf16>, vector<4x512xf32> -> vector<4x512xf32>
    %173 = math.tanh %170 : vector<4x128xf32>
    %174 = vector.broadcast %2 : vector<1x128xf32> to vector<4x128xf32>
    %175 = arith.mulf %173, %174 : vector<4x128xf32>
    %cst_48 = arith.constant dense<0.000000e+00> : vector<4xf32>
    %176 = vector.multi_reduction <add>, %175, %cst_48 [1] : vector<4x128xf32> to vector<4xf32>
    %177 = vector.shape_cast %176 : vector<4xf32> to vector<4x1xf32>
    %cst_49 = arith.constant dense<0xFF800000> : vector<1xf32>
    %178 = vector.multi_reduction <maximumf>, %177, %cst_49 [0] : vector<4x1xf32> to vector<1xf32>
    %179 = vector.shape_cast %178 : vector<1xf32> to vector<1x1xf32>
    %180 = vector.broadcast %179 : vector<1x1xf32> to vector<4x1xf32>
    %181 = arith.subf %177, %180 : vector<4x1xf32>
    %182 = math.exp %181 : vector<4x1xf32>
    %cst_50 = arith.constant dense<0.000000e+00> : vector<1xf32>
    %183 = vector.multi_reduction <add>, %182, %cst_50 [0] : vector<4x1xf32> to vector<1xf32>
    %184 = vector.shape_cast %183 : vector<1xf32> to vector<1x1xf32>
    %185 = tpu.reciprocal %184 {approx = true} : vector<1x1xf32> -> vector<1x1xf32>
    %186 = vector.broadcast %185 : vector<1x1xf32> to vector<4x1xf32>
    %187 = arith.mulf %182, %186 : vector<4x1xf32>
    %188 = vector.broadcast %187 : vector<4x1xf32> to vector<4x128xf32>
    %189 = arith.mulf %188, %165 : vector<4x128xf32>
    %190 = arith.truncf %189 : vector<4x128xf32> to vector<4x128xbf16>
    %cst_51 = arith.constant dense<0.000000e+00> : vector<4x512xf32>
    %191 = tpu.matmul %190, %3, %cst_51 {dimension_numbers = #tpu.dot_dimension_numbers<[1], [0], [0], [1], [0, 0, 1, 1], [], []>} : vector<4x128xbf16>, vector<128x512xbf16>, vector<4x512xf32> -> vector<4x512xf32>
    %192 = arith.addf %191, %172 : vector<4x512xf32>
    %193 = vector.broadcast %5 : vector<1x512xf32> to vector<4x512xf32>
    %194 = arith.addf %192, %193 : vector<4x512xf32>
    %195 = vector.extract_strided_slice %194 {offsets = [0, 0], sizes = [4, 384], strides = [1, 1]} : vector<4x512xf32> to vector<4x384xf32>
    %196 = arith.negf %195 : vector<4x384xf32>
    %197 = math.exp %196 : vector<4x384xf32>
    %cst_52 = arith.constant 1.000000e+00 : f32
    %198 = vector.broadcast %cst_52 : f32 to vector<4x384xf32>
    %199 = arith.addf %198, %197 : vector<4x384xf32>
    %200 = arith.divf %198, %199 : vector<4x384xf32>
    %201 = vector.extract_strided_slice %200 {offsets = [0, 0], sizes = [4, 128], strides = [1, 1]} : vector<4x384xf32> to vector<4x128xf32>
    %202 = vector.extract_strided_slice %200 {offsets = [0, 128], sizes = [4, 128], strides = [1, 1]} : vector<4x384xf32> to vector<4x128xf32>
    %203 = vector.extract_strided_slice %200 {offsets = [0, 256], sizes = [4, 128], strides = [1, 1]} : vector<4x384xf32> to vector<4x128xf32>
    %204 = vector.extract_strided_slice %194 {offsets = [0, 384], sizes = [4, 128], strides = [1, 1]} : vector<4x512xf32> to vector<4x128xf32>
    %205 = math.tanh %204 : vector<4x128xf32>
    %206 = arith.mulf %202, %156 : vector<4x128xf32>
    %207 = arith.mulf %201, %205 : vector<4x128xf32>
    %208 = arith.addf %206, %207 : vector<4x128xf32>
    %209 = math.tanh %208 : vector<4x128xf32>
    %210 = arith.mulf %203, %209 : vector<4x128xf32>
    %211 = arith.index_cast %c3_i32 : i32 to index
    %c0_53 = arith.constant 0 : index
    %c0_54 = arith.constant 0 : index
    %212 = vector.load %arg8[%211, %c0_53, %c0_54] : memref<8x4x128xf32, #tpu.memory_space<vmem>>, vector<1x4x128xf32>
    %213 = vector.shape_cast %212 : vector<1x4x128xf32> to vector<4x128xf32>
    %214 = vector.shape_cast %210 : vector<4x128xf32> to vector<1x4x128xf32>
    tpu.vector_store %arg8[%211, %c0_53, %c0_54], %214 {strides = array<i32>} : memref<8x4x128xf32, #tpu.memory_space<vmem>>, vector<1x4x128xf32>,
    %c4_i32 = arith.constant 4 : i32
    %215 = arith.index_cast %c4_i32 : i32 to index
    %c0_55 = arith.constant 0 : index
    %c0_56 = arith.constant 0 : index
    %216 = vector.load %arg1[%215, %c0_55, %c0_56] : memref<8x4x128xf32, #tpu.memory_space<vmem>>, vector<1x4x128xf32>
    %217 = vector.shape_cast %216 : vector<1x4x128xf32> to vector<4x128xf32>
    %218 = tpu.concatenate %210, %208, %217 in 1 : vector<4x128xf32>, vector<4x128xf32>, vector<4x128xf32> -> vector<4x384xf32>
    %219 = arith.truncf %218 : vector<4x384xf32> to vector<4x384xbf16>
    %cst_57 = arith.constant dense<0.000000e+00> : vector<4x128xf32>
    %220 = tpu.matmul %219, %0, %cst_57 {dimension_numbers = #tpu.dot_dimension_numbers<[1], [0], [0], [1], [0, 0, 1, 1], [], []>} : vector<4x384xbf16>, vector<384x128xbf16>, vector<4x128xf32> -> vector<4x128xf32>
    %221 = vector.broadcast %1 : vector<1x128xf32> to vector<4x128xf32>
    %222 = arith.addf %220, %221 : vector<4x128xf32>
    %223 = arith.truncf %210 : vector<4x128xf32> to vector<4x128xbf16>
    %cst_58 = arith.constant dense<0.000000e+00> : vector<4x512xf32>
    %224 = tpu.matmul %223, %4, %cst_58 {dimension_numbers = #tpu.dot_dimension_numbers<[1], [0], [0], [1], [0, 0, 1, 1], [], []>} : vector<4x128xbf16>, vector<128x512xbf16>, vector<4x512xf32> -> vector<4x512xf32>
    %225 = math.tanh %222 : vector<4x128xf32>
    %226 = vector.broadcast %2 : vector<1x128xf32> to vector<4x128xf32>
    %227 = arith.mulf %225, %226 : vector<4x128xf32>
    %cst_59 = arith.constant dense<0.000000e+00> : vector<4xf32>
    %228 = vector.multi_reduction <add>, %227, %cst_59 [1] : vector<4x128xf32> to vector<4xf32>
    %229 = vector.shape_cast %228 : vector<4xf32> to vector<4x1xf32>
    %cst_60 = arith.constant dense<0xFF800000> : vector<1xf32>
    %230 = vector.multi_reduction <maximumf>, %229, %cst_60 [0] : vector<4x1xf32> to vector<1xf32>
    %231 = vector.shape_cast %230 : vector<1xf32> to vector<1x1xf32>
    %232 = vector.broadcast %231 : vector<1x1xf32> to vector<4x1xf32>
    %233 = arith.subf %229, %232 : vector<4x1xf32>
    %234 = math.exp %233 : vector<4x1xf32>
    %cst_61 = arith.constant dense<0.000000e+00> : vector<1xf32>
    %235 = vector.multi_reduction <add>, %234, %cst_61 [0] : vector<4x1xf32> to vector<1xf32>
    %236 = vector.shape_cast %235 : vector<1xf32> to vector<1x1xf32>
    %237 = tpu.reciprocal %236 {approx = true} : vector<1x1xf32> -> vector<1x1xf32>
    %238 = vector.broadcast %237 : vector<1x1xf32> to vector<4x1xf32>
    %239 = arith.mulf %234, %238 : vector<4x1xf32>
    %240 = vector.broadcast %239 : vector<4x1xf32> to vector<4x128xf32>
    %241 = arith.mulf %240, %217 : vector<4x128xf32>
    %242 = arith.truncf %241 : vector<4x128xf32> to vector<4x128xbf16>
    %cst_62 = arith.constant dense<0.000000e+00> : vector<4x512xf32>
    %243 = tpu.matmul %242, %3, %cst_62 {dimension_numbers = #tpu.dot_dimension_numbers<[1], [0], [0], [1], [0, 0, 1, 1], [], []>} : vector<4x128xbf16>, vector<128x512xbf16>, vector<4x512xf32> -> vector<4x512xf32>
    %244 = arith.addf %243, %224 : vector<4x512xf32>
    %245 = vector.broadcast %5 : vector<1x512xf32> to vector<4x512xf32>
    %246 = arith.addf %244, %245 : vector<4x512xf32>
    %247 = vector.extract_strided_slice %246 {offsets = [0, 0], sizes = [4, 384], strides = [1, 1]} : vector<4x512xf32> to vector<4x384xf32>
    %248 = arith.negf %247 : vector<4x384xf32>
    %249 = math.exp %248 : vector<4x384xf32>
    %cst_63 = arith.constant 1.000000e+00 : f32
    %250 = vector.broadcast %cst_63 : f32 to vector<4x384xf32>
    %251 = arith.addf %250, %249 : vector<4x384xf32>
    %252 = arith.divf %250, %251 : vector<4x384xf32>
    %253 = vector.extract_strided_slice %252 {offsets = [0, 0], sizes = [4, 128], strides = [1, 1]} : vector<4x384xf32> to vector<4x128xf32>
    %254 = vector.extract_strided_slice %252 {offsets = [0, 128], sizes = [4, 128], strides = [1, 1]} : vector<4x384xf32> to vector<4x128xf32>
    %255 = vector.extract_strided_slice %252 {offsets = [0, 256], sizes = [4, 128], strides = [1, 1]} : vector<4x384xf32> to vector<4x128xf32>
    %256 = vector.extract_strided_slice %246 {offsets = [0, 384], sizes = [4, 128], strides = [1, 1]} : vector<4x512xf32> to vector<4x128xf32>
    %257 = math.tanh %256 : vector<4x128xf32>
    %258 = arith.mulf %254, %208 : vector<4x128xf32>
    %259 = arith.mulf %253, %257 : vector<4x128xf32>
    %260 = arith.addf %258, %259 : vector<4x128xf32>
    %261 = math.tanh %260 : vector<4x128xf32>
    %262 = arith.mulf %255, %261 : vector<4x128xf32>
    %263 = arith.index_cast %c4_i32 : i32 to index
    %c0_64 = arith.constant 0 : index
    %c0_65 = arith.constant 0 : index
    %264 = vector.load %arg8[%263, %c0_64, %c0_65] : memref<8x4x128xf32, #tpu.memory_space<vmem>>, vector<1x4x128xf32>
    %265 = vector.shape_cast %264 : vector<1x4x128xf32> to vector<4x128xf32>
    %266 = vector.shape_cast %262 : vector<4x128xf32> to vector<1x4x128xf32>
    tpu.vector_store %arg8[%263, %c0_64, %c0_65], %266 {strides = array<i32>} : memref<8x4x128xf32, #tpu.memory_space<vmem>>, vector<1x4x128xf32>,
    %c5_i32 = arith.constant 5 : i32
    %267 = arith.index_cast %c5_i32 : i32 to index
    %c0_66 = arith.constant 0 : index
    %c0_67 = arith.constant 0 : index
    %268 = vector.load %arg1[%267, %c0_66, %c0_67] : memref<8x4x128xf32, #tpu.memory_space<vmem>>, vector<1x4x128xf32>
    %269 = vector.shape_cast %268 : vector<1x4x128xf32> to vector<4x128xf32>
    %270 = tpu.concatenate %262, %260, %269 in 1 : vector<4x128xf32>, vector<4x128xf32>, vector<4x128xf32> -> vector<4x384xf32>
    %271 = arith.truncf %270 : vector<4x384xf32> to vector<4x384xbf16>
    %cst_68 = arith.constant dense<0.000000e+00> : vector<4x128xf32>
    %272 = tpu.matmul %271, %0, %cst_68 {dimension_numbers = #tpu.dot_dimension_numbers<[1], [0], [0], [1], [0, 0, 1, 1], [], []>} : vector<4x384xbf16>, vector<384x128xbf16>, vector<4x128xf32> -> vector<4x128xf32>
    %273 = vector.broadcast %1 : vector<1x128xf32> to vector<4x128xf32>
    %274 = arith.addf %272, %273 : vector<4x128xf32>
    %275 = arith.truncf %262 : vector<4x128xf32> to vector<4x128xbf16>
    %cst_69 = arith.constant dense<0.000000e+00> : vector<4x512xf32>
    %276 = tpu.matmul %275, %4, %cst_69 {dimension_numbers = #tpu.dot_dimension_numbers<[1], [0], [0], [1], [0, 0, 1, 1], [], []>} : vector<4x128xbf16>, vector<128x512xbf16>, vector<4x512xf32> -> vector<4x512xf32>
    %277 = math.tanh %274 : vector<4x128xf32>
    %278 = vector.broadcast %2 : vector<1x128xf32> to vector<4x128xf32>
    %279 = arith.mulf %277, %278 : vector<4x128xf32>
    %cst_70 = arith.constant dense<0.000000e+00> : vector<4xf32>
    %280 = vector.multi_reduction <add>, %279, %cst_70 [1] : vector<4x128xf32> to vector<4xf32>
    %281 = vector.shape_cast %280 : vector<4xf32> to vector<4x1xf32>
    %cst_71 = arith.constant dense<0xFF800000> : vector<1xf32>
    %282 = vector.multi_reduction <maximumf>, %281, %cst_71 [0] : vector<4x1xf32> to vector<1xf32>
    %283 = vector.shape_cast %282 : vector<1xf32> to vector<1x1xf32>
    %284 = vector.broadcast %283 : vector<1x1xf32> to vector<4x1xf32>
    %285 = arith.subf %281, %284 : vector<4x1xf32>
    %286 = math.exp %285 : vector<4x1xf32>
    %cst_72 = arith.constant dense<0.000000e+00> : vector<1xf32>
    %287 = vector.multi_reduction <add>, %286, %cst_72 [0] : vector<4x1xf32> to vector<1xf32>
    %288 = vector.shape_cast %287 : vector<1xf32> to vector<1x1xf32>
    %289 = tpu.reciprocal %288 {approx = true} : vector<1x1xf32> -> vector<1x1xf32>
    %290 = vector.broadcast %289 : vector<1x1xf32> to vector<4x1xf32>
    %291 = arith.mulf %286, %290 : vector<4x1xf32>
    %292 = vector.broadcast %291 : vector<4x1xf32> to vector<4x128xf32>
    %293 = arith.mulf %292, %269 : vector<4x128xf32>
    %294 = arith.truncf %293 : vector<4x128xf32> to vector<4x128xbf16>
    %cst_73 = arith.constant dense<0.000000e+00> : vector<4x512xf32>
    %295 = tpu.matmul %294, %3, %cst_73 {dimension_numbers = #tpu.dot_dimension_numbers<[1], [0], [0], [1], [0, 0, 1, 1], [], []>} : vector<4x128xbf16>, vector<128x512xbf16>, vector<4x512xf32> -> vector<4x512xf32>
    %296 = arith.addf %295, %276 : vector<4x512xf32>
    %297 = vector.broadcast %5 : vector<1x512xf32> to vector<4x512xf32>
    %298 = arith.addf %296, %297 : vector<4x512xf32>
    %299 = vector.extract_strided_slice %298 {offsets = [0, 0], sizes = [4, 384], strides = [1, 1]} : vector<4x512xf32> to vector<4x384xf32>
    %300 = arith.negf %299 : vector<4x384xf32>
    %301 = math.exp %300 : vector<4x384xf32>
    %cst_74 = arith.constant 1.000000e+00 : f32
    %302 = vector.broadcast %cst_74 : f32 to vector<4x384xf32>
    %303 = arith.addf %302, %301 : vector<4x384xf32>
    %304 = arith.divf %302, %303 : vector<4x384xf32>
    %305 = vector.extract_strided_slice %304 {offsets = [0, 0], sizes = [4, 128], strides = [1, 1]} : vector<4x384xf32> to vector<4x128xf32>
    %306 = vector.extract_strided_slice %304 {offsets = [0, 128], sizes = [4, 128], strides = [1, 1]} : vector<4x384xf32> to vector<4x128xf32>
    %307 = vector.extract_strided_slice %304 {offsets = [0, 256], sizes = [4, 128], strides = [1, 1]} : vector<4x384xf32> to vector<4x128xf32>
    %308 = vector.extract_strided_slice %298 {offsets = [0, 384], sizes = [4, 128], strides = [1, 1]} : vector<4x512xf32> to vector<4x128xf32>
    %309 = math.tanh %308 : vector<4x128xf32>
    %310 = arith.mulf %306, %260 : vector<4x128xf32>
    %311 = arith.mulf %305, %309 : vector<4x128xf32>
    %312 = arith.addf %310, %311 : vector<4x128xf32>
    %313 = math.tanh %312 : vector<4x128xf32>
    %314 = arith.mulf %307, %313 : vector<4x128xf32>
    %315 = arith.index_cast %c5_i32 : i32 to index
    %c0_75 = arith.constant 0 : index
    %c0_76 = arith.constant 0 : index
    %316 = vector.load %arg8[%315, %c0_75, %c0_76] : memref<8x4x128xf32, #tpu.memory_space<vmem>>, vector<1x4x128xf32>
    %317 = vector.shape_cast %316 : vector<1x4x128xf32> to vector<4x128xf32>
    %318 = vector.shape_cast %314 : vector<4x128xf32> to vector<1x4x128xf32>
    tpu.vector_store %arg8[%315, %c0_75, %c0_76], %318 {strides = array<i32>} : memref<8x4x128xf32, #tpu.memory_space<vmem>>, vector<1x4x128xf32>,
    %c6_i32 = arith.constant 6 : i32
    %319 = arith.index_cast %c6_i32 : i32 to index
    %c0_77 = arith.constant 0 : index
    %c0_78 = arith.constant 0 : index
    %320 = vector.load %arg1[%319, %c0_77, %c0_78] : memref<8x4x128xf32, #tpu.memory_space<vmem>>, vector<1x4x128xf32>
    %321 = vector.shape_cast %320 : vector<1x4x128xf32> to vector<4x128xf32>
    %322 = tpu.concatenate %314, %312, %321 in 1 : vector<4x128xf32>, vector<4x128xf32>, vector<4x128xf32> -> vector<4x384xf32>
    %323 = arith.truncf %322 : vector<4x384xf32> to vector<4x384xbf16>
    %cst_79 = arith.constant dense<0.000000e+00> : vector<4x128xf32>
    %324 = tpu.matmul %323, %0, %cst_79 {dimension_numbers = #tpu.dot_dimension_numbers<[1], [0], [0], [1], [0, 0, 1, 1], [], []>} : vector<4x384xbf16>, vector<384x128xbf16>, vector<4x128xf32> -> vector<4x128xf32>
    %325 = vector.broadcast %1 : vector<1x128xf32> to vector<4x128xf32>
    %326 = arith.addf %324, %325 : vector<4x128xf32>
    %327 = arith.truncf %314 : vector<4x128xf32> to vector<4x128xbf16>
    %cst_80 = arith.constant dense<0.000000e+00> : vector<4x512xf32>
    %328 = tpu.matmul %327, %4, %cst_80 {dimension_numbers = #tpu.dot_dimension_numbers<[1], [0], [0], [1], [0, 0, 1, 1], [], []>} : vector<4x128xbf16>, vector<128x512xbf16>, vector<4x512xf32> -> vector<4x512xf32>
    %329 = math.tanh %326 : vector<4x128xf32>
    %330 = vector.broadcast %2 : vector<1x128xf32> to vector<4x128xf32>
    %331 = arith.mulf %329, %330 : vector<4x128xf32>
    %cst_81 = arith.constant dense<0.000000e+00> : vector<4xf32>
    %332 = vector.multi_reduction <add>, %331, %cst_81 [1] : vector<4x128xf32> to vector<4xf32>
    %333 = vector.shape_cast %332 : vector<4xf32> to vector<4x1xf32>
    %cst_82 = arith.constant dense<0xFF800000> : vector<1xf32>
    %334 = vector.multi_reduction <maximumf>, %333, %cst_82 [0] : vector<4x1xf32> to vector<1xf32>
    %335 = vector.shape_cast %334 : vector<1xf32> to vector<1x1xf32>
    %336 = vector.broadcast %335 : vector<1x1xf32> to vector<4x1xf32>
    %337 = arith.subf %333, %336 : vector<4x1xf32>
    %338 = math.exp %337 : vector<4x1xf32>
    %cst_83 = arith.constant dense<0.000000e+00> : vector<1xf32>
    %339 = vector.multi_reduction <add>, %338, %cst_83 [0] : vector<4x1xf32> to vector<1xf32>
    %340 = vector.shape_cast %339 : vector<1xf32> to vector<1x1xf32>
    %341 = tpu.reciprocal %340 {approx = true} : vector<1x1xf32> -> vector<1x1xf32>
    %342 = vector.broadcast %341 : vector<1x1xf32> to vector<4x1xf32>
    %343 = arith.mulf %338, %342 : vector<4x1xf32>
    %344 = vector.broadcast %343 : vector<4x1xf32> to vector<4x128xf32>
    %345 = arith.mulf %344, %321 : vector<4x128xf32>
    %346 = arith.truncf %345 : vector<4x128xf32> to vector<4x128xbf16>
    %cst_84 = arith.constant dense<0.000000e+00> : vector<4x512xf32>
    %347 = tpu.matmul %346, %3, %cst_84 {dimension_numbers = #tpu.dot_dimension_numbers<[1], [0], [0], [1], [0, 0, 1, 1], [], []>} : vector<4x128xbf16>, vector<128x512xbf16>, vector<4x512xf32> -> vector<4x512xf32>
    %348 = arith.addf %347, %328 : vector<4x512xf32>
    %349 = vector.broadcast %5 : vector<1x512xf32> to vector<4x512xf32>
    %350 = arith.addf %348, %349 : vector<4x512xf32>
    %351 = vector.extract_strided_slice %350 {offsets = [0, 0], sizes = [4, 384], strides = [1, 1]} : vector<4x512xf32> to vector<4x384xf32>
    %352 = arith.negf %351 : vector<4x384xf32>
    %353 = math.exp %352 : vector<4x384xf32>
    %cst_85 = arith.constant 1.000000e+00 : f32
    %354 = vector.broadcast %cst_85 : f32 to vector<4x384xf32>
    %355 = arith.addf %354, %353 : vector<4x384xf32>
    %356 = arith.divf %354, %355 : vector<4x384xf32>
    %357 = vector.extract_strided_slice %356 {offsets = [0, 0], sizes = [4, 128], strides = [1, 1]} : vector<4x384xf32> to vector<4x128xf32>
    %358 = vector.extract_strided_slice %356 {offsets = [0, 128], sizes = [4, 128], strides = [1, 1]} : vector<4x384xf32> to vector<4x128xf32>
    %359 = vector.extract_strided_slice %356 {offsets = [0, 256], sizes = [4, 128], strides = [1, 1]} : vector<4x384xf32> to vector<4x128xf32>
    %360 = vector.extract_strided_slice %350 {offsets = [0, 384], sizes = [4, 128], strides = [1, 1]} : vector<4x512xf32> to vector<4x128xf32>
    %361 = math.tanh %360 : vector<4x128xf32>
    %362 = arith.mulf %358, %312 : vector<4x128xf32>
    %363 = arith.mulf %357, %361 : vector<4x128xf32>
    %364 = arith.addf %362, %363 : vector<4x128xf32>
    %365 = math.tanh %364 : vector<4x128xf32>
    %366 = arith.mulf %359, %365 : vector<4x128xf32>
    %367 = arith.index_cast %c6_i32 : i32 to index
    %c0_86 = arith.constant 0 : index
    %c0_87 = arith.constant 0 : index
    %368 = vector.load %arg8[%367, %c0_86, %c0_87] : memref<8x4x128xf32, #tpu.memory_space<vmem>>, vector<1x4x128xf32>
    %369 = vector.shape_cast %368 : vector<1x4x128xf32> to vector<4x128xf32>
    %370 = vector.shape_cast %366 : vector<4x128xf32> to vector<1x4x128xf32>
    tpu.vector_store %arg8[%367, %c0_86, %c0_87], %370 {strides = array<i32>} : memref<8x4x128xf32, #tpu.memory_space<vmem>>, vector<1x4x128xf32>,
    %c7_i32 = arith.constant 7 : i32
    %371 = arith.index_cast %c7_i32 : i32 to index
    %c0_88 = arith.constant 0 : index
    %c0_89 = arith.constant 0 : index
    %372 = vector.load %arg1[%371, %c0_88, %c0_89] : memref<8x4x128xf32, #tpu.memory_space<vmem>>, vector<1x4x128xf32>
    %373 = vector.shape_cast %372 : vector<1x4x128xf32> to vector<4x128xf32>
    %374 = tpu.concatenate %366, %364, %373 in 1 : vector<4x128xf32>, vector<4x128xf32>, vector<4x128xf32> -> vector<4x384xf32>
    %375 = arith.truncf %374 : vector<4x384xf32> to vector<4x384xbf16>
    %cst_90 = arith.constant dense<0.000000e+00> : vector<4x128xf32>
    %376 = tpu.matmul %375, %0, %cst_90 {dimension_numbers = #tpu.dot_dimension_numbers<[1], [0], [0], [1], [0, 0, 1, 1], [], []>} : vector<4x384xbf16>, vector<384x128xbf16>, vector<4x128xf32> -> vector<4x128xf32>
    %377 = vector.broadcast %1 : vector<1x128xf32> to vector<4x128xf32>
    %378 = arith.addf %376, %377 : vector<4x128xf32>
    %379 = arith.truncf %366 : vector<4x128xf32> to vector<4x128xbf16>
    %cst_91 = arith.constant dense<0.000000e+00> : vector<4x512xf32>
    %380 = tpu.matmul %379, %4, %cst_91 {dimension_numbers = #tpu.dot_dimension_numbers<[1], [0], [0], [1], [0, 0, 1, 1], [], []>} : vector<4x128xbf16>, vector<128x512xbf16>, vector<4x512xf32> -> vector<4x512xf32>
    %381 = math.tanh %378 : vector<4x128xf32>
    %382 = vector.broadcast %2 : vector<1x128xf32> to vector<4x128xf32>
    %383 = arith.mulf %381, %382 : vector<4x128xf32>
    %cst_92 = arith.constant dense<0.000000e+00> : vector<4xf32>
    %384 = vector.multi_reduction <add>, %383, %cst_92 [1] : vector<4x128xf32> to vector<4xf32>
    %385 = vector.shape_cast %384 : vector<4xf32> to vector<4x1xf32>
    %cst_93 = arith.constant dense<0xFF800000> : vector<1xf32>
    %386 = vector.multi_reduction <maximumf>, %385, %cst_93 [0] : vector<4x1xf32> to vector<1xf32>
    %387 = vector.shape_cast %386 : vector<1xf32> to vector<1x1xf32>
    %388 = vector.broadcast %387 : vector<1x1xf32> to vector<4x1xf32>
    %389 = arith.subf %385, %388 : vector<4x1xf32>
    %390 = math.exp %389 : vector<4x1xf32>
    %cst_94 = arith.constant dense<0.000000e+00> : vector<1xf32>
    %391 = vector.multi_reduction <add>, %390, %cst_94 [0] : vector<4x1xf32> to vector<1xf32>
    %392 = vector.shape_cast %391 : vector<1xf32> to vector<1x1xf32>
    %393 = tpu.reciprocal %392 {approx = true} : vector<1x1xf32> -> vector<1x1xf32>
    %394 = vector.broadcast %393 : vector<1x1xf32> to vector<4x1xf32>
    %395 = arith.mulf %390, %394 : vector<4x1xf32>
    %396 = vector.broadcast %395 : vector<4x1xf32> to vector<4x128xf32>
    %397 = arith.mulf %396, %373 : vector<4x128xf32>
    %398 = arith.truncf %397 : vector<4x128xf32> to vector<4x128xbf16>
    %cst_95 = arith.constant dense<0.000000e+00> : vector<4x512xf32>
    %399 = tpu.matmul %398, %3, %cst_95 {dimension_numbers = #tpu.dot_dimension_numbers<[1], [0], [0], [1], [0, 0, 1, 1], [], []>} : vector<4x128xbf16>, vector<128x512xbf16>, vector<4x512xf32> -> vector<4x512xf32>
    %400 = arith.addf %399, %380 : vector<4x512xf32>
    %401 = vector.broadcast %5 : vector<1x512xf32> to vector<4x512xf32>
    %402 = arith.addf %400, %401 : vector<4x512xf32>
    %403 = vector.extract_strided_slice %402 {offsets = [0, 0], sizes = [4, 384], strides = [1, 1]} : vector<4x512xf32> to vector<4x384xf32>
    %404 = arith.negf %403 : vector<4x384xf32>
    %405 = math.exp %404 : vector<4x384xf32>
    %cst_96 = arith.constant 1.000000e+00 : f32
    %406 = vector.broadcast %cst_96 : f32 to vector<4x384xf32>
    %407 = arith.addf %406, %405 : vector<4x384xf32>
    %408 = arith.divf %406, %407 : vector<4x384xf32>
    %409 = vector.extract_strided_slice %408 {offsets = [0, 0], sizes = [4, 128], strides = [1, 1]} : vector<4x384xf32> to vector<4x128xf32>
    %410 = vector.extract_strided_slice %408 {offsets = [0, 128], sizes = [4, 128], strides = [1, 1]} : vector<4x384xf32> to vector<4x128xf32>
    %411 = vector.extract_strided_slice %408 {offsets = [0, 256], sizes = [4, 128], strides = [1, 1]} : vector<4x384xf32> to vector<4x128xf32>
    %412 = vector.extract_strided_slice %402 {offsets = [0, 384], sizes = [4, 128], strides = [1, 1]} : vector<4x512xf32> to vector<4x128xf32>
    %413 = math.tanh %412 : vector<4x128xf32>
    %414 = arith.mulf %410, %364 : vector<4x128xf32>
    %415 = arith.mulf %409, %413 : vector<4x128xf32>
    %416 = arith.addf %414, %415 : vector<4x128xf32>
    %417 = math.tanh %416 : vector<4x128xf32>
    %418 = arith.mulf %411, %417 : vector<4x128xf32>
    %419 = arith.index_cast %c7_i32 : i32 to index
    %c0_97 = arith.constant 0 : index
    %c0_98 = arith.constant 0 : index
    %420 = vector.load %arg8[%419, %c0_97, %c0_98] : memref<8x4x128xf32, #tpu.memory_space<vmem>>, vector<1x4x128xf32>
    %421 = vector.shape_cast %420 : vector<1x4x128xf32> to vector<4x128xf32>
    %422 = vector.shape_cast %418 : vector<4x128xf32> to vector<1x4x128xf32>
    tpu.vector_store %arg8[%419, %c0_97, %c0_98], %422 {strides = array<i32>} : memref<8x4x128xf32, #tpu.memory_space<vmem>>, vector<1x4x128xf32>,
    %c8_i32 = arith.constant 8 : i32
    return
  }
  func.func @transform_0(%arg0: i32) -> (i32, i32, i32) {
    %c0_i32 = arith.constant 0 : i32
    %c0_i32_0 = arith.constant 0 : i32
    %c0_i32_1 = arith.constant 0 : i32
    %c0_i32_2 = arith.constant 0 : i32
    return %c0_i32, %c0_i32_0, %c0_i32_1 : i32, i32, i32
  }
  func.func @transform_1(%arg0: i32) -> (i32, i32) {
    %c0_i32 = arith.constant 0 : i32
    %c0_i32_0 = arith.constant 0 : i32
    %c0_i32_1 = arith.constant 0 : i32
    return %c0_i32, %c0_i32_0 : i32, i32
  }
  func.func @transform_2(%arg0: i32) -> (i32, i32) {
    %c0_i32 = arith.constant 0 : i32
    %c0_i32_0 = arith.constant 0 : i32
    %c0_i32_1 = arith.constant 0 : i32
    return %c0_i32, %c0_i32_0 : i32, i32
  }
  func.func @transform_3(%arg0: i32) -> (i32, i32) {
    %c0_i32 = arith.constant 0 : i32
    %c0_i32_0 = arith.constant 0 : i32
    %c0_i32_1 = arith.constant 0 : i32
    return %c0_i32, %c0_i32_0 : i32, i32
  }
  func.func @transform_4(%arg0: i32) -> (i32, i32) {
    %c0_i32 = arith.constant 0 : i32
    %c0_i32_0 = arith.constant 0 : i32
    %c0_i32_1 = arith.constant 0 : i32
    return %c0_i32, %c0_i32_0 : i32, i32
  }
  func.func @transform_5(%arg0: i32) -> (i32, i32) {
    %c0_i32 = arith.constant 0 : i32
    %c0_i32_0 = arith.constant 0 : i32
    %c0_i32_1 = arith.constant 0 : i32
    return %c0_i32, %c0_i32_0 : i32, i32
  }
  func.func @transform_6(%arg0: i32) -> (i32, i32) {
    %c0_i32 = arith.constant 0 : i32
    %c0_i32_0 = arith.constant 0 : i32
    %c0_i32_1 = arith.constant 0 : i32
    return %c0_i32, %c0_i32_0 : i32, i32
  }
  func.func @transform_7(%arg0: i32) -> (i32, i32, i32) {
    %c0_i32 = arith.constant 0 : i32
    %c0_i32_0 = arith.constant 0 : i32
    %c0_i32_1 = arith.constant 0 : i32
    %c0_i32_2 = arith.constant 0 : i32
    return %c0_i32, %c0_i32_0, %c0_i32_1 : i32, i32, i32
  }
}

</mosaic_0001>

<bundles_post_ra>
// kernel: att_forward.1
= control target key start
LH: loop header
LB: loop body
LE: loop exit
PB: predicated region body
PF: predicated region fallthrough
CT: control target
= control target key end

     0   :  { %12 = vsyncpa [#allocation3], 0  ;;  %s6007_s0 = inlined_call_operand.vmem [shape: f32[8,4,128], index: 0, kind: input, shape index: {}]   ;;  %s6008_s1 = inlined_call_operand.hbm [shape: bf16[384,128], index: 1, kind: input, shape index: {}]   ;;  %s6009_s2 = inlined_call_operand.vmem [shape: f32[1,128], index: 2, kind: input, shape index: {}]   ;;  %s6010_s3 = inlined_call_operand.vmem [shape: f32[1,128], index: 3, kind: input, shape index: {}]   ;;  %s6011_s4 = inlined_call_operand.hbm [shape: bf16[128,512], index: 4, kind: input, shape index: {}]   ;;  %s6012_s5 = inlined_call_operand.hbm [shape: bf16[128,512], index: 5, kind: input, shape index: {}]   ;;  %s6013_s6 = inlined_call_operand.vmem [shape: f32[1,512], index: 6, kind: input, shape index: {}]   ;;  %s6014_s7 = inlined_call_operand.hbm [shape: f32[8,4,128], index: 7, kind: output, shape index: {}]  }
   0x1   :  { %13 = vsyncpa [#allocation6], 0 }
   0x2   :  { %14 = vsyncpa [#allocation4], 0  ;;  %s4248_s24 = smov [#allocation5]   ;;  %s4154_s28 = scalar_lea.hbm %s6011_s4, 4096 }
   0x3   :  { %s38_s25 = sshll.u32 %s4248_s24, 4  ;;  %p4155_p0 = scmp.ne.s32.totalorder %s6011_s4, %s4154_s28  ;;  %s39_s25 = int_to_ptr.vmem [resolvable:$true] %s38_s25 }
   0x4   :  { %p4158_p1 = scmp.lt.u32.totalorder %s4154_s28, %s6011_s4 }
   0x6   :  { %p4160_p2 = pnand %p4158_p1, %p4155_p0 }
   0x8   :  { %4163 = shalt.err (!%p4160_p2)
}
   0x9   :  { %s4164_s10 = scalar_lea.vmem %s39_s25, 4096  ;;  %p4169_p4 = scmp.lt.s32.totalorder %s39_s25, %s39_s25 }
   0xa   :  { %p4165_p3 = scmp.ne.s32.totalorder %s39_s25, %s4164_s10  ;;  %p4170_p5 = scmp.lt.s32.totalorder %s4164_s10, %s4164_s10 }
   0xc   :  { %p4171_p6 = por %p4170_p5, %p4169_p4 }
   0xe   :  { %p4172_p7 = pnand %p4171_p6, %p4165_p3 }
  0x10   :  { %4175 = shalt.err (!%p4172_p7)
}
  0x11   :  { %s4249_s11 = smov 256   ;;  %s4250_s12 = smov 16  }
  0x12   :  { %44 = dma.hbm_to_vmem [thread:$0]  %s6011_s4, 4096, %s39_s25, [#allocation6], %s4249_s11, %s4249_s11, %s4250_s12  }
  0x13   :  { %s4251_s15 = smov [#allocation2]   ;;  %s4176_s19 = scalar_lea.hbm %s6008_s1, 3072 }
  0x14   :  { %s22_s16 = sshll.u32 %s4251_s15, 4  ;;  %p4177_p8 = scmp.ne.s32.totalorder %s6008_s1, %s4176_s19  ;;  %s23_s16 = int_to_ptr.vmem [resolvable:$true] %s22_s16 }
  0x15   :  { %p4180_p9 = scmp.lt.u32.totalorder %s4176_s19, %s6008_s1 }
  0x17   :  { %p4182_p10 = pnand %p4180_p9, %p4177_p8 }
  0x19   :  { %4185 = shalt.err (!%p4182_p10)
}
  0x1a   :  { %s4186_s24 = scalar_lea.vmem %s23_s16, 3072  ;;  %p4191_p12 = scmp.lt.s32.totalorder %s23_s16, %s23_s16 }
  0x1b   :  { %p4187_p11 = scmp.ne.s32.totalorder %s23_s16, %s4186_s24  ;;  %p4192_p13 = scmp.lt.s32.totalorder %s4186_s24, %s4186_s24 }
  0x1d   :  { %p4193_p0 = por %p4192_p13, %p4191_p12 }
  0x1f   :  { %p4194_p1 = pnand %p4193_p0, %p4187_p11 }
  0x21   :  { %4197 = shalt.err (!%p4194_p1)
}
  0x22   :  { %s4252_s4 = smov 64   ;;  %s4253_s25 = smov 4  }
  0x23   :  { %28 = dma.hbm_to_vmem [thread:$0]  %s6008_s1, 3072, %s23_s16, [#allocation3], %s4252_s4, %s4252_s4, %s4253_s25  }
  0x24   :  { %s4254_s28 = smov [#allocation7]   ;;  %s4198_s9 = scalar_lea.hbm %s6012_s5, 4096 }
  0x25   :  { %s50_s29 = sshll.u32 %s4254_s28, 4  ;;  %p4199_p2 = scmp.ne.s32.totalorder %s6012_s5, %s4198_s9  ;;  %s51_s29 = int_to_ptr.vmem [resolvable:$true] %s50_s29 }
  0x26   :  { %p4202_p3 = scmp.lt.u32.totalorder %s4198_s9, %s6012_s5 }
  0x28   :  { %p4204_p4 = pnand %p4202_p3, %p4199_p2 }
  0x2a   :  { %4207 = shalt.err (!%p4204_p4)
}
  0x2b   :  { %s4208_s17 = scalar_lea.vmem %s51_s29, 4096  ;;  %p4213_p6 = scmp.lt.s32.totalorder %s51_s29, %s51_s29 }
  0x2c   :  { %p4209_p5 = scmp.ne.s32.totalorder %s51_s29, %s4208_s17  ;;  %p4214_p7 = scmp.lt.s32.totalorder %s4208_s17, %s4208_s17 }
  0x2e   :  { %p4215_p8 = por %p4214_p7, %p4213_p6 }
  0x30   :  { %p4216_p9 = pnand %p4215_p8, %p4209_p5 }
  0x32   :  { %4219 = shalt.err (!%p4216_p9)
}
  0x33   :  { %56 = dma.hbm_to_vmem [thread:$0]  %s6012_s5, 4096, %s51_s29, [#allocation6], %s4249_s11, %s4249_s11, %s4250_s12  }
  0x34   :  { %4242 = dma.done.wait [#allocation3], 3072  }
  0x35   :  { %4243 = vsyncadd [#allocation3], 4294964224 }
  0x36   :  { %4244 = dma.done.wait [#allocation6], 8192  }
  0x37   :  { %4245 = vsyncadd [#allocation6], 4294959104  ;;  %v6015_v0 = vmov 0.0   ;;  %v4256_v1 = vmov 0.0|0.0   ;;  %vm4257_vm0 = vmmov 0   ;;  %v4348_v2 = vld [vmem:[#allocation2 + $0x40] sm:$0xff]  }
  0x38   :  { %3506 = vmatprep.subr.bf16.mxu1 %v6015_v0  ;;  %369 = vmatprep.mubr.bf16.mxu0 %v4256_v1  ;;  %v4350_v3 = vld [vmem:[#allocation2] sm:$0xff]   ;;  %v4356_v5 = vld [vmem:[#allocation2 + $0x48] sm:$0xff]   ;;  %v4365_v8 = vld [vmem:[#allocation2 + $0x50] sm:$0xff]   ;;  %vm667_vm1 = vcmask 1043456  }
  0x39   :  { %3522 = vmatprep.mubr.msk.bf16.mxu1 %vm4257_vm0, %v6015_v0  ;;  %3258 = vmatprep.subr.bf16.mxu0 %v4348_v2  ;;  %v4353_v4 = vld [vmem:[#allocation2 + $0x80] sm:$0xff]   ;;  %v4359_v6 = vld [vmem:[#allocation2 + $0x8] sm:$0xff]   ;;  %v4368_v9 = vld [vmem:[#allocation2 + $0x10] sm:$0xff]  }
  0x3a   :  { %3259 = vmatpush3.bf16.msra.mxu0 %v4350_v3  ;;  %3507 = vmatpush3.bf16.msra.mxu1 %v4353_v4  ;;  %v4363_v7 = vld [vmem:[#allocation2 + $0x88] sm:$0xff]   ;;  %v4372_v10 = vld [vmem:[#allocation2 + $0x90] sm:$0xff]   ;;  %v4375_v11 = vld [vmem:[#allocation2 + $0x58] sm:$0xff]  }
  0x3b   :  { %3260 = vmatprep.subr.bf16.mxu0 %v4356_v5  ;;  %3508 = vmatprep.subr.bf16.mxu1 %v6015_v0  ;;  %v4377_v12 = vld [vmem:[#allocation2 + $0x18] sm:$0xff]   ;;  %v4384_v14 = vld [vmem:[#allocation2 + $0x60] sm:$0xff]   ;;  %v4394_v17 = vld [vmem:[#allocation2 + $0x68] sm:$0xff]  }
  0x3c   :  { %v4380_v13 = vld [vmem:[#allocation2 + $0x98] sm:$0xff]   ;;  %v4387_v15 = vld [vmem:[#allocation2 + $0x20] sm:$0xff]   ;;  %v4397_v18 = vld [vmem:[#allocation2 + $0x28] sm:$0xff]  }
  0x3d   :  { %v4390_v16 = vld [vmem:[#allocation2 + $0xa0] sm:$0xff]   ;;  %v4400_v19 = vld [vmem:[#allocation2 + $0xa8] sm:$0xff]   ;;  %v4404_v20 = vld [vmem:[#allocation2 + $0x70] sm:$0xff]  }
  0x3e   :  { %3261 = vmatpush3.bf16.msra.mxu0 %v4359_v6  ;;  %3509 = vmatpush3.bf16.msra.mxu1 %v4363_v7  ;;  %v4407_v21 = vld [vmem:[#allocation2 + $0x30] sm:$0xff]   ;;  %v4414_v23 = vld [vmem:[#allocation2 + $0x78] sm:$0xff]   ;;  %v4424_v26 = vld [vmem:[%s6007_s0] sm:$0xf] }
  0x3f   :  { %3262 = vmatprep.subr.bf16.mxu0 %v4365_v8  ;;  %3510 = vmatprep.subr.bf16.mxu1 %v6015_v0  ;;  %v4410_v22 = vld [vmem:[#allocation2 + $0xb0] sm:$0xff]   ;;  %v4417_v24 = vld [vmem:[#allocation2 + $0x38] sm:$0xff]   ;;  %v186_v27 = vpack.c.bf16 %v4424_v26, %v4424_v26  ;;  %v4461_v38 = vld [vmem:[%s6009_s2] ss:$0 sm:$0xff] }
  0x40   :  { %v4419_v25 = vld [vmem:[#allocation2 + $0xb8] sm:$0xff]   ;;  %v4434_v28 = vld [vmem:[#allocation7 + $0x4] ss:$16 sps:$4 sm:$0xff]   ;;  %v4436_v29 = vld [vmem:[#allocation7] ss:$16 sps:$4 sm:$0xff]   ;;  %6289 = vst [vmem:[#allocation14_spill] sm:$0xff] %v4461_v38 }
  0x41   :  { %v4438_v30 = vld [vmem:[#allocation7 + $0xc] ss:$16 sps:$4 sm:$0xff]   ;;  %v4440_v31 = vld [vmem:[#allocation7 + $0x8] ss:$16 sps:$4 sm:$0xff]   ;;  %v4442_v32 = vld [vmem:[#allocation7 + $0x24] ss:$16 sps:$4 sm:$0xff]  }
  0x42   :  { %3263 = vmatpush3.bf16.msra.mxu0 %v4368_v9  ;;  %3511 = vmatpush3.bf16.msra.mxu1 %v4372_v10  ;;  %6287 = vst [vmem:[#allocation12_spill] sm:$0xff] %v4442_v32  ;;  %v4446_v33 = vld [vmem:[#allocation7 + $0x2c] ss:$16 sps:$4 sm:$0xff]   ;;  %v4450_v34 = vld [vmem:[#allocation7 + $0x20] ss:$16 sps:$4 sm:$0xff]  }
  0x43   :  { %3264 = vmatprep.subr.bf16.mxu0 %v4375_v11  ;;  %3512 = vmatprep.subr.bf16.mxu1 %v6015_v0  ;;  %6288 = vst [vmem:[#allocation13_spill] sm:$0xff] %v4450_v34  ;;  %v4452_v35 = vld [vmem:[#allocation7 + $0x28] ss:$16 sps:$4 sm:$0xff]   ;;  %v4467_v48 = vld [vmem:[%s6010_s3] ss:$0 sm:$0xff] }
  0x44   :  { %6290 = vst [vmem:[#allocation15_spill] sm:$0xff] %v4467_v48  ;;  %v4471_v52 = vld [vmem:[#allocation7 + $0x44] ss:$16 sps:$4 sm:$0xff]   ;;  %v4473_v53 = vld [vmem:[#allocation7 + $0x40] ss:$16 sps:$4 sm:$0xff]  }
  0x45   :  { %6291 = vst [vmem:[#allocation16_spill] sm:$0xff] %v4471_v52  ;;  %6292 = vst [vmem:[#allocation17_spill] sm:$0xff] %v4473_v53  ;;  %v4476_v54 = vld [vmem:[#allocation7 + $0x4c] ss:$16 sps:$4 sm:$0xff]   ;;  %v4479_v55 = vld [vmem:[#allocation7 + $0x48] ss:$16 sps:$4 sm:$0xff]  }
  0x46   :  { %3265 = vmatpush3.bf16.msra.mxu0 %v4377_v12  ;;  %3513 = vmatpush3.bf16.msra.mxu1 %v4380_v13  ;;  %v4482_v56 = vld [vmem:[#allocation7 + $0x64] ss:$16 sps:$4 sm:$0xff]   ;;  %v4485_v57 = vld [vmem:[#allocation7 + $0x60] ss:$16 sps:$4 sm:$0xff]   ;;  %v4488_v58 = vld [vmem:[#allocation7 + $0x6c] ss:$16 sps:$4 sm:$0xff]  }
  0x47   :  { %3266 = vmatprep.subr.bf16.mxu0 %v4384_v14  ;;  %3514 = vmatprep.subr.bf16.mxu1 %v6015_v0  ;;  %6293 = vst [vmem:[#allocation18_spill] sm:$0xff] %v4482_v56  ;;  %6294 = vst [vmem:[#allocation19_spill] sm:$0xff] %v4485_v57  ;;  %v4491_v59 = vld [vmem:[#allocation7 + $0x68] ss:$16 sps:$4 sm:$0xff]   ;;  %v4494_v60 = vld [vmem:[#allocation7 + $0x84] ss:$16 sps:$4 sm:$0xff]  }
  0x48   :  { %6295 = vst [vmem:[#allocation20_spill] sm:$0xff] %v4494_v60  ;;  %v4497_v61 = vld [vmem:[#allocation7 + $0x80] ss:$16 sps:$4 sm:$0xff]   ;;  %v4500_v62 = vld [vmem:[#allocation7 + $0x8c] ss:$16 sps:$4 sm:$0xff]  }
  0x49   :  { %6296 = vst [vmem:[#allocation21_spill] sm:$0xff] %v4497_v61  ;;  %v4503_v63 = vld [vmem:[#allocation7 + $0x88] ss:$16 sps:$4 sm:$0xff]  }
  0x4a   :  { %3267 = vmatpush3.bf16.msra.mxu0 %v4387_v15  ;;  %3515 = vmatpush3.bf16.msra.mxu1 %v4390_v16 }
  0x4b   :  { %3268 = vmatprep.subr.bf16.mxu0 %v4394_v17  ;;  %3516 = vmatprep.subr.bf16.mxu1 %v6015_v0 }
  0x4e   :  { %3269 = vmatpush3.bf16.msra.mxu0 %v4397_v18  ;;  %3517 = vmatpush3.bf16.msra.mxu1 %v4400_v19 }
  0x4f   :  { %3270 = vmatprep.subr.bf16.mxu0 %v4404_v20  ;;  %3518 = vmatprep.subr.bf16.mxu1 %v6015_v0 }
  0x52   :  { %3271 = vmatpush3.bf16.msra.mxu0 %v4407_v21  ;;  %3519 = vmatpush3.bf16.msra.mxu1 %v4410_v22 }
  0x53   :  { %3272 = vmatprep.subr.bf16.mxu0 %v4414_v23  ;;  %3520 = vmatprep.subr.bf16.mxu1 %v6015_v0  ;;  %v4552_v0 = vld [vmem:[#allocation5 + $0x8] ss:$16 sps:$4 sm:$0xff]  }
  0x54   :  { %6305 = vst [vmem:[#allocation30_spill] sm:$0xff] %v4552_v0 }
  0x56   :  { %3273 = vmatpush3.bf16.msra.mxu0 %v4417_v24  ;;  %3521 = vmatpush3.bf16.msra.mxu1 %v4419_v25 }
  0x57   :  { %577 = vmatprep.subr.bf16.mxu0 %v4434_v28  ;;  %618 = vmatprep.subr.bf16.mxu1 %v4438_v30 }
  0x59   :  { %370 = vmatmul.mubr.bf16.vlgmr.msra.gmra.mrb[0].mxu0 %v4256_v1  ;;  %3523 = vmatmul.mubr.bf16.vlgmr.msra.gmra.mrb[0].mxu1 %v186_v27  ;;  %v4506_v1 = vld [vmem:[#allocation7 + $0xa4] ss:$16 sps:$4 sm:$0xff]   ;;  %v4509_v27 = vld [vmem:[#allocation7 + $0xa0] ss:$16 sps:$4 sm:$0xff]  }
  0x5a   :  { %578 = vmatpush1.bf16.msra.mxu0 %v4436_v29  ;;  %619 = vmatpush1.bf16.msra.mxu1 %v4440_v31  ;;  %6297 = vst [vmem:[#allocation22_spill] sm:$0xff] %v4506_v1  ;;  %6298 = vst [vmem:[#allocation23_spill] sm:$0xff] %v4509_v27 }
  0x5b   :  { %579 = vmatprep.subr.bf16.mxu0 %v4442_v32  ;;  %620 = vmatprep.subr.bf16.mxu1 %v4446_v33 }
  0x5e   :  { %580 = vmatpush1.bf16.msra.mxu0 %v4450_v34  ;;  %621 = vmatpush1.bf16.msra.mxu1 %v4452_v35 }
  0x5f   :  { %581 = vmatprep.subr.bf16.mxu0 %v4471_v52  ;;  %622 = vmatprep.subr.bf16.mxu1 %v4476_v54 }
  0x62   :  { %582 = vmatpush1.bf16.msra.mxu0 %v4473_v53  ;;  %623 = vmatpush1.bf16.msra.mxu1 %v4479_v55 }
  0x63   :  { %583 = vmatprep.subr.bf16.mxu0 %v4482_v56  ;;  %624 = vmatprep.subr.bf16.mxu1 %v4488_v58 }
  0x66   :  { %584 = vmatpush1.bf16.msra.mxu0 %v4485_v57  ;;  %625 = vmatpush1.bf16.msra.mxu1 %v4491_v59  ;;  %v4618_v57 = vld [vmem:[#allocation5 + $0xc4] ss:$16 sps:$4 sm:$0xff]  }
  0x67   :  { %585 = vmatprep.subr.bf16.mxu0 %v4494_v60  ;;  %626 = vmatprep.subr.bf16.mxu1 %v4500_v62  ;;  %v4605_v60 = vld [vmem:[#allocation5 + $0xa4] ss:$16 sps:$4 sm:$0xff]   ;;  %6326 = vst [vmem:[#allocation51_spill] sm:$0xff] %v4618_v57 }
  0x68   :  { %6322 = vst [vmem:[#allocation47_spill] sm:$0xff] %v4605_v60 }
  0x6a   :  { %586 = vmatpush1.bf16.msra.mxu0 %v4497_v61  ;;  %627 = vmatpush1.bf16.msra.mxu1 %v4503_v63  ;;  %v4603_v61 = vld [vmem:[#allocation5 + $0x88] ss:$16 sps:$4 sm:$0xff]  }
  0x6b   :  { %587 = vmatprep.subr.bf16.mxu0 %v4506_v1  ;;  %v4601_v1 = vld [vmem:[#allocation5 + $0x80] ss:$16 sps:$4 sm:$0xff]   ;;  %6321 = vst [vmem:[#allocation46_spill] sm:$0xff] %v4603_v61 }
  0x6c   :  { %6320 = vst [vmem:[#allocation45_spill] sm:$0xff] %v4601_v1 }
  0x6e   :  { %588 = vmatpush1.bf16.msra.mxu0 %v4509_v27  ;;  %v4591_v27 = vld [vmem:[#allocation5 + $0x68] ss:$16 sps:$4 sm:$0xff]  }
  0x6f   :  { %6317 = vst [vmem:[#allocation42_spill] sm:$0xff] %v4591_v27 }
 0x12c   :  { %v3274_v36 = vpop.f32.mrb[0].mxu0  ;;  %v411_v39 = vpop.f32.mrb[0].mxu1 }
 0x12d   :  { %v3275_v37 = vpop.f32.mrb[1].mxu0  ;;  %v3524_v42 = vpop.f32.mrb[1].mxu1 }
 0x12e   :  { %v3276_v40 = vadd.f32 %v3275_v37, %v3274_v36  ;;  %v3277_v41 = vpop.f32.mrb[2].mxu0  ;;  %v414_v44 = vpop.f32.mrb[2].mxu1  ;;  %v4512_v36 = vld [vmem:[#allocation7 + $0xac] ss:$16 sps:$4 sm:$0xff]   ;;  %v4515_v37 = vld [vmem:[#allocation7 + $0xa8] ss:$16 sps:$4 sm:$0xff]  }
 0x12f   :  { %v3278_v43 = vpop.f32.mrb[3].mxu0  ;;  %v3525_v46 = vpop.f32.mrb[3].mxu1  ;;  %628 = vmatprep.subr.bf16.mxu1 %v4512_v36  ;;  %v4524_v41 = vld [vmem:[#allocation7 + $0xcc] ss:$16 sps:$4 sm:$0xff]   ;;  %v4527_v42 = vld [vmem:[#allocation7 + $0xc8] ss:$16 sps:$4 sm:$0xff]  }
 0x130   :  { %v372_v45 = vadd.f32 %v3276_v40, %v4461_v38  ;;  %629 = vmatpush1.bf16.msra.mxu1 %v4515_v37  ;;  %v4521_v40 = vld [vmem:[#allocation7 + $0xc0] ss:$16 sps:$4 sm:$0xff]   ;;  %v4530_v43 = vld [vmem:[#allocation7 + $0xe4] ss:$16 sps:$4 sm:$0xff]   ;;  %v4539_v46 = vld [vmem:[#allocation7 + $0xe8] ss:$16 sps:$4 sm:$0xff]  }
 0x131   :  { %6300 = vst [vmem:[#allocation25_spill] sm:$0xff] %v4521_v40  ;;  %630 = vmatprep.subr.bf16.mxu1 %v4524_v41  ;;  %6301 = vst [vmem:[#allocation26_spill] sm:$0xff] %v4530_v43  ;;  %v4533_v44 = vld [vmem:[#allocation7 + $0xe0] ss:$16 sps:$4 sm:$0xff]   ;;  %v4562_v38 = vld [vmem:[#allocation5 + $0x2c] ss:$16 sps:$4 sm:$0xff]  }
 0x132   :  { %v412_v47 = vadd.f32 %v411_v39, %v372_v45  ;;  %v4518_v39 = vld [vmem:[#allocation7 + $0xc4] ss:$16 sps:$4 sm:$0xff]   ;;  %6302 = vst [vmem:[#allocation27_spill] sm:$0xff] %v4533_v44  ;;  %v4536_v45 = vld [vmem:[#allocation7 + $0xec] ss:$16 sps:$4 sm:$0xff]   ;;  %6307 = vst [vmem:[#allocation32_spill] sm:$0xff] %v4562_v38 }
 0x133   :  { %6299 = vst [vmem:[#allocation24_spill] sm:$0xff] %v4518_v39  ;;  %589 = vmatprep.subr.bf16.mxu0 %v4518_v39  ;;  %v4579_v39 = vld [vmem:[#allocation5 + $0x48] ss:$16 sps:$4 sm:$0xff]  }
 0x134   :  { %3798 = vtanh.f32 %v412_v47  ;;  %590 = vmatpush1.bf16.msra.mxu0 %v4521_v40  ;;  %631 = vmatpush1.bf16.msra.mxu1 %v4527_v42  ;;  %v6031_v47 = vmov 0   ;;  %v4577_v40 = vld [vmem:[#allocation5 + $0x40] ss:$16 sps:$4 sm:$0xff]   ;;  %6313 = vst [vmem:[#allocation38_spill] sm:$0xff] %v4579_v39 }
 0x135   :  { %591 = vmatprep.subr.bf16.mxu0 %v4530_v43  ;;  %632 = vmatprep.subr.bf16.mxu1 %v4536_v45  ;;  %v4567_v43 = vld [vmem:[#allocation5 + $0x28] ss:$16 sps:$4 sm:$0xff]   ;;  %6312 = vst [vmem:[#allocation37_spill] sm:$0xff] %v4577_v40 }
 0x136   :  { %609 = vmatprep.mubr.bf16.mxu0 %v6031_v47  ;;  %650 = vmatprep.mubr.bf16.mxu1 %v6031_v47  ;;  %6309 = vst [vmem:[#allocation34_spill] sm:$0xff] %v4567_v43 }
 0x138   :  { %592 = vmatpush1.bf16.msra.mxu0 %v4533_v44  ;;  %633 = vmatpush1.bf16.msra.mxu1 %v4539_v46  ;;  %v4565_v44 = vld [vmem:[#allocation5 + $0x20] ss:$16 sps:$4 sm:$0xff]  }
 0x139   :  { %6308 = vst [vmem:[#allocation33_spill] sm:$0xff] %v4565_v44 }
 0x13b   :  { %610 = vmatmul.mubr.bf16.vlgmr.msra.gmra.mrb[4].mxu0 %v6031_v47  ;;  %651 = vmatmul.mubr.bf16.vlgmr.msra.gmra.mrb[4].mxu1 %v6031_v47 }
 0x13c   :  { %884 = vmatprep.mubr.bf16.mxu0 %v6031_v47  ;;  %925 = vmatprep.mubr.bf16.mxu1 %v6031_v47  ;;  %v4585_v47 = vld [vmem:[#allocation5 + $0x64] ss:$16 sps:$4 sm:$0xff]  }
 0x13d   :  { %6314 = vst [vmem:[#allocation39_spill] sm:$0xff] %v4585_v47 }
 0x13e   :  { %v3799_v49 = vpop.eup %3798 }
 0x13f   :  { %v666_v50 = vmul.f32 %v3799_v49, %v4467_v48  ;;  %v4546_v49 = vld [vmem:[#allocation5 + $0x4] ss:$16 sps:$4 sm:$0xff]  }
 0x140   :  { %6303 = vst [vmem:[#allocation28_spill] sm:$0xff] %v4546_v49  ;;  %852 = vmatprep.subr.bf16.mxu0 %v4546_v49  ;;  %v4560_v48 = vld [vmem:[#allocation5 + $0x24] ss:$16 sps:$4 sm:$0xff]   ;;  %v4575_v49 = vld [vmem:[#allocation5 + $0x4c] ss:$16 sps:$4 sm:$0xff]  }
 0x141   :  { %v668_v51 = vsel %vm667_vm1, %v666_v50, 0.0  ;;  %v4548_v50 = vld [vmem:[#allocation5 + $0xc] ss:$16 sps:$4 sm:$0xff]   ;;  %6306 = vst [vmem:[#allocation31_spill] sm:$0xff] %v4560_v48  ;;  %6311 = vst [vmem:[#allocation36_spill] sm:$0xff] %v4575_v49 }
 0x142   :  { %669 = vadd.xlane.f32.xlu0 %v668_v51  ;;  %v4550_v51 = vld [vmem:[#allocation5] ss:$16 sps:$4 sm:$0xff]   ;;  %893 = vmatprep.subr.bf16.mxu1 %v4548_v50 }
 0x143   :  { %6304 = vst [vmem:[#allocation29_spill] sm:$0xff] %v4550_v51  ;;  %853 = vmatpush1.bf16.msra.mxu0 %v4550_v51  ;;  %894 = vmatpush1.bf16.msra.mxu1 %v4552_v0  ;;  %v4573_v51 = vld [vmem:[#allocation5 + $0x44] ss:$16 sps:$4 sm:$0xff]  }
 0x144   :  { %854 = vmatprep.subr.bf16.mxu0 %v4560_v48  ;;  %895 = vmatprep.subr.bf16.mxu1 %v4562_v38  ;;  %6310 = vst [vmem:[#allocation35_spill] sm:$0xff] %v4573_v51  ;;  %v4589_v48 = vld [vmem:[#allocation5 + $0x60] ss:$16 sps:$4 sm:$0xff]  }
 0x145   :  { %6316 = vst [vmem:[#allocation41_spill] sm:$0xff] %v4589_v48 }
 0x147   :  { %855 = vmatpush1.bf16.msra.mxu0 %v4565_v44  ;;  %896 = vmatpush1.bf16.msra.mxu1 %v4567_v43  ;;  %v4587_v44 = vld [vmem:[#allocation5 + $0x6c] ss:$16 sps:$4 sm:$0xff]  }
 0x148   :  { %856 = vmatprep.subr.bf16.mxu0 %v4573_v51  ;;  %897 = vmatprep.subr.bf16.mxu1 %v4575_v49  ;;  %6315 = vst [vmem:[#allocation40_spill] sm:$0xff] %v4587_v44  ;;  %v4597_v51 = vld [vmem:[#allocation5 + $0x84] ss:$16 sps:$4 sm:$0xff]  }
 0x149   :  { %6318 = vst [vmem:[#allocation43_spill] sm:$0xff] %v4597_v51 }
 0x14b   :  { %857 = vmatpush1.bf16.msra.mxu0 %v4577_v40  ;;  %898 = vmatpush1.bf16.msra.mxu1 %v4579_v39  ;;  %v4599_v40 = vld [vmem:[#allocation5 + $0x8c] ss:$16 sps:$4 sm:$0xff]  }
 0x14c   :  { %858 = vmatprep.subr.bf16.mxu0 %v4585_v47  ;;  %899 = vmatprep.subr.bf16.mxu1 %v4587_v44  ;;  %6319 = vst [vmem:[#allocation44_spill] sm:$0xff] %v4599_v40  ;;  %v4609_v47 = vld [vmem:[#allocation5 + $0xac] ss:$16 sps:$4 sm:$0xff]  }
 0x14d   :  { %6323 = vst [vmem:[#allocation48_spill] sm:$0xff] %v4609_v47  ;;  %v4621_v44 = vld [vmem:[#allocation5 + $0xcc] ss:$16 sps:$4 sm:$0xff]  }
 0x14e   :  { %6327 = vst [vmem:[#allocation52_spill] sm:$0xff] %v4621_v44 }
 0x14f   :  { %859 = vmatpush1.bf16.msra.mxu0 %v4589_v48  ;;  %900 = vmatpush1.bf16.msra.mxu1 %v4591_v27  ;;  %v4612_v48 = vld [vmem:[#allocation5 + $0xa0] ss:$16 sps:$4 sm:$0xff]   ;;  %v4616_v27 = vld [vmem:[#allocation5 + $0xa8] ss:$16 sps:$4 sm:$0xff]  }
 0x150   :  { %860 = vmatprep.subr.bf16.mxu0 %v4597_v51  ;;  %901 = vmatprep.subr.bf16.mxu1 %v4599_v40  ;;  %6324 = vst [vmem:[#allocation49_spill] sm:$0xff] %v4612_v48  ;;  %6325 = vst [vmem:[#allocation50_spill] sm:$0xff] %v4616_v27  ;;  %v4624_v51 = vld [vmem:[#allocation5 + $0xc0] ss:$16 sps:$4 sm:$0xff]  }
 0x151   :  { %6328 = vst [vmem:[#allocation53_spill] sm:$0xff] %v4624_v51 }
 0x153   :  { %861 = vmatpush1.bf16.msra.mxu0 %v4601_v1  ;;  %902 = vmatpush1.bf16.msra.mxu1 %v4603_v61  ;;  %v4628_v1 = vld [vmem:[#allocation5 + $0xc8] ss:$16 sps:$4 sm:$0xff]   ;;  %v4630_v61 = vld [vmem:[#allocation5 + $0xe4] ss:$16 sps:$4 sm:$0xff]  }
 0x154   :  { %862 = vmatprep.subr.bf16.mxu0 %v4605_v60  ;;  %903 = vmatprep.subr.bf16.mxu1 %v4609_v47  ;;  %6329 = vst [vmem:[#allocation54_spill] sm:$0xff] %v4628_v1  ;;  %6330 = vst [vmem:[#allocation55_spill] sm:$0xff] %v4630_v61  ;;  %v4633_v60 = vld [vmem:[#allocation5 + $0xec] ss:$16 sps:$4 sm:$0xff]   ;;  %v4636_v47 = vld [vmem:[#allocation5 + $0xe0] ss:$16 sps:$4 sm:$0xff]  }
 0x155   :  { %6331 = vst [vmem:[#allocation56_spill] sm:$0xff] %v4633_v60  ;;  %6332 = vst [vmem:[#allocation57_spill] sm:$0xff] %v4636_v47 }
 0x157   :  { %863 = vmatpush1.bf16.msra.mxu0 %v4612_v48  ;;  %904 = vmatpush1.bf16.msra.mxu1 %v4616_v27  ;;  %v4640_v48 = vld [vmem:[#allocation5 + $0xe8] ss:$16 sps:$4 sm:$0xff]  }
 0x158   :  { %864 = vmatprep.subr.bf16.mxu0 %v4618_v57  ;;  %905 = vmatprep.subr.bf16.mxu1 %v4621_v44  ;;  %6333 = vst [vmem:[#allocation58_spill] sm:$0xff] %v4640_v48  ;;  %v6334_v57 = vmov 0.0  }
 0x15b   :  { %865 = vmatpush1.bf16.msra.mxu0 %v4624_v51  ;;  %906 = vmatpush1.bf16.msra.mxu1 %v4628_v1 }
 0x15c   :  { %866 = vmatprep.subr.bf16.mxu0 %v4630_v61  ;;  %907 = vmatprep.subr.bf16.mxu1 %v4633_v60 }
 0x15f   :  { %867 = vmatpush1.bf16.msra.mxu0 %v4636_v47  ;;  %908 = vmatpush1.bf16.msra.mxu1 %v4640_v48 }
 0x160   :  { %3289 = vmatprep.subr.bf16.mxu0 %v4348_v2  ;;  %3526 = vmatprep.subr.bf16.mxu1 %v6334_v57 }
 0x1cf   :  { %v670_v44 = vpop.xlane.xlu0 %669 }
 0x1d0   :  { %v671_v51 = vsel %vm667_vm1, %v670_v44, -inf }
 0x1d1   :  { %v672_v27 = vrot.slane %v671_v51, 4 }
 0x1d3   :  { %v673_v40 = vmax.f32 %v671_v51, %v672_v27 }
 0x1d5   :  { %v674_v1 = vrot.slane %v673_v40, 2 }
 0x1d7   :  { %v675_v39 = vmax.f32 %v673_v40, %v674_v1 }
 0x1d9   :  { %v676_v61 = vrot.slane %v675_v39, 1 }
 0x1db   :  { %v677_v56 = vmax.f32 %v675_v39, %v676_v61 }
 0x1dd   :  { %v678_v53 = vsub.f32 %v670_v44, %v677_v56 }
 0x1df   :  { %v679_v49 = vmul.f32 1.442695, %v678_v53 }
 0x1e1   :  { %3800 = vpow2.f32 %v679_v49 }
 0x1eb   :  { %v3801_v60 = vpop.eup %3800 }
 0x1ec   :  { %v681_v47 = vsel %vm667_vm1, %v3801_v60, 0.0 }
 0x1ed   :  { %v682_v48 = vrot.slane %v681_v47, 4 }
 0x1ef   :  { %v683_v43 = vadd.f32 %v682_v48, %v681_v47 }
 0x1f1   :  { %v684_v2 = vrot.slane %v683_v43, 2 }
 0x1f3   :  { %v685_v52 = vadd.f32 %v684_v2, %v683_v43 }
 0x1f5   :  { %v686_v34 = vrot.slane %v685_v52, 1 }
 0x1f7   :  { %v687_v38 = vadd.f32 %v686_v34, %v685_v52 }
 0x1f9   :  { %3802 = vrcp.f32 %v687_v38 }
 0x203   :  { %v3803_v0 = vpop.eup %3802 }
 0x204   :  { %v689_v32 = vmul.f32 %v3803_v0, %v3801_v60 }
 0x206   :  { %v690_v27 = vmul.f32 %v689_v32, %v4424_v26 }
 0x208   :  { %v691_v1 = vpack.c.bf16 %v690_v27, %v690_v27 }
 0x20a   :  { %885 = vmatmul.mubr.bf16.vlgmr.msra.gmra.mrb[8].mxu0 %v691_v1  ;;  %926 = vmatmul.mubr.bf16.vlgmr.msra.gmra.mrb[8].mxu1 %v691_v1 }
 0x20b   :  { %3527 = vmatpush3.bf16.msra.mxu1 %v4353_v4  ;;  %3290 = vmatpush3.bf16.msra.mxu0 %v4350_v3 }
 0x20c   :  { %3528 = vmatprep.subr.bf16.mxu1 %v6334_v57  ;;  %3542 = vmatprep.mubr.msk.bf16.mxu1 %vm4257_vm0, %v6334_v57 }
 0x20d   :  { %3291 = vmatprep.subr.bf16.mxu0 %v4356_v5 }
 0x20e   :  { %v611_v0 = vpop.f32.mrb[4].mxu0 }
 0x20f   :  { %3529 = vmatpush3.bf16.msra.mxu1 %v4363_v7  ;;  %3292 = vmatpush3.bf16.msra.mxu0 %v4359_v6  ;;  %v613_v3 = vpop.f32.mrb[5].mxu0  ;;  %v652_v6 = vpop.f32.mrb[4].mxu1 }
 0x210   :  { %3530 = vmatprep.subr.bf16.mxu1 %v6334_v57  ;;  %3293 = vmatprep.subr.bf16.mxu0 %v4365_v8  ;;  %v615_v4 = vpop.f32.mrb[6].mxu0  ;;  %v654_v7 = vpop.f32.mrb[5].mxu1 }
 0x211   :  { %v616_v5 = vpop.f32.mrb[7].mxu0  ;;  %v656_v8 = vpop.f32.mrb[6].mxu1 }
 0x213   :  { %3531 = vmatpush3.bf16.msra.mxu1 %v4372_v10  ;;  %3294 = vmatpush3.bf16.msra.mxu0 %v4368_v9  ;;  %v657_v9 = vpop.f32.mrb[7].mxu1  ;;  %v4687_v10 = vld [vmem:[%s6007_s0 + $0x4] sm:$0xf] }
 0x214   :  { %3532 = vmatprep.subr.bf16.mxu1 %v6334_v57  ;;  %3295 = vmatprep.subr.bf16.mxu0 %v4375_v11  ;;  %v988_v11 = vpack.c.bf16 %v4687_v10, %v4687_v10 }
 0x217   :  { %3533 = vmatpush3.bf16.msra.mxu1 %v4380_v13  ;;  %3296 = vmatpush3.bf16.msra.mxu0 %v4377_v12  ;;  %v6335_v12 = vmov 0   ;;  %v935_v13 = vlaneseq }
 0x218   :  { %3534 = vmatprep.subr.bf16.mxu1 %v6334_v57  ;;  %3297 = vmatprep.subr.bf16.mxu0 %v4384_v14 }
 0x219   :  { %v936_v14 = vshrl.u32 %v935_v13, 7 }
 0x21b   :  { %3535 = vmatpush3.bf16.msra.mxu1 %v4390_v16  ;;  %3298 = vmatpush3.bf16.msra.mxu0 %v4387_v15  ;;  %v937_v15 = vsub.s32 0, %v936_v14  ;;  %v183_v16 = vld [vmem:[%s6013_s6] sm:$0xf]  ;;  %v945_v60 = vsub.s32 2, %v936_v14  ;;  %v949_v47 = vsub.s32 3, %v936_v14 }
 0x21c   :  { %3536 = vmatprep.subr.bf16.mxu1 %v6334_v57  ;;  %3299 = vmatprep.subr.bf16.mxu0 %v4394_v17  ;;  %v941_v17 = vsub.s32 1, %v936_v14 }
 0x21d   :  { %v4717_v49 = vrot.slane %v183_v16, %v945_v60  ;;  %v4719_v51 = vrot.slane %v183_v16, %v949_v47  ;;  %v6344_v60 = vld [vmem:[#allocation18_spill] sm:$0xff]  ;;  %v6350_v47 = vld [vmem:[#allocation44_spill] sm:$0xff] }
 0x21f   :  { %3537 = vmatpush3.bf16.msra.mxu1 %v4400_v19  ;;  %3300 = vmatpush3.bf16.msra.mxu0 %v4397_v18  ;;  %v4711_v18 = vrot.slane %v183_v16, %v937_v15 }
 0x220   :  { %3538 = vmatprep.subr.bf16.mxu1 %v6334_v57  ;;  %3301 = vmatprep.subr.bf16.mxu0 %v4404_v20 }
 0x223   :  { %3539 = vmatpush3.bf16.msra.mxu1 %v4410_v22  ;;  %3302 = vmatpush3.bf16.msra.mxu0 %v4407_v21  ;;  %v4713_v21 = vrot.slane %v183_v16, %v941_v17 }
 0x224   :  { %3540 = vmatprep.subr.bf16.mxu1 %v6334_v57  ;;  %3303 = vmatprep.subr.bf16.mxu0 %v4414_v23 }
 0x227   :  { %3541 = vmatpush3.bf16.msra.mxu1 %v4419_v25  ;;  %3304 = vmatpush3.bf16.msra.mxu0 %v4417_v24 }
 0x228   :  { %1110 = vmatprep.subr.bf16.mxu1 %v4438_v30  ;;  %1069 = vmatprep.subr.bf16.mxu0 %v4434_v28 }
 0x22a   :  { %3543 = vmatmul.mubr.bf16.vlgmr.msra.gmra.mrb[12].mxu1 %v988_v11 }
 0x22b   :  { %1111 = vmatpush1.bf16.msra.mxu1 %v4440_v31  ;;  %1142 = vmatprep.mubr.bf16.mxu1 %v6335_v12 }
 0x22c   :  { %1112 = vmatprep.subr.bf16.mxu1 %v4446_v33 }
 0x22f   :  { %1113 = vmatpush1.bf16.msra.mxu1 %v4452_v35 }
 0x230   :  { %1114 = vmatprep.subr.bf16.mxu1 %v4476_v54 }
 0x233   :  { %1115 = vmatpush1.bf16.msra.mxu1 %v4479_v55 }
 0x234   :  { %1116 = vmatprep.subr.bf16.mxu1 %v4488_v58 }
 0x237   :  { %1117 = vmatpush1.bf16.msra.mxu1 %v4491_v59 }
 0x238   :  { %1118 = vmatprep.subr.bf16.mxu1 %v4500_v62 }
 0x23b   :  { %1119 = vmatpush1.bf16.msra.mxu1 %v4503_v63 }
 0x23c   :  { %1120 = vmatprep.subr.bf16.mxu1 %v4512_v36 }
 0x23f   :  { %1121 = vmatpush1.bf16.msra.mxu1 %v4515_v37 }
 0x240   :  { %1122 = vmatprep.subr.bf16.mxu1 %v4524_v41 }
 0x243   :  { %1123 = vmatpush1.bf16.msra.mxu1 %v4527_v42 }
 0x244   :  { %1124 = vmatprep.subr.bf16.mxu1 %v4536_v45 }
 0x247   :  { %1125 = vmatpush1.bf16.msra.mxu1 %v4539_v46 }
 0x248   :  { %1218 = vmatprep.subr.bf16.mxu1 %v4548_v50 }
 0x2dd   :  { %v886_v19 = vpop.f32.mrb[8].mxu0  ;;  %v927_v20 = vpop.f32.mrb[8].mxu1 }
 0x2de   :  { %v887_v22 = vadd.f32 %v886_v19, %v611_v0  ;;  %v928_v26 = vadd.f32 %v927_v20, %v652_v6  ;;  %v888_v32 = vpop.f32.mrb[9].mxu0  ;;  %v929_v34 = vpop.f32.mrb[9].mxu1 }
 0x2df   :  { %v889_v38 = vadd.f32 %v888_v32, %v613_v3  ;;  %v930_v48 = vadd.f32 %v929_v34, %v654_v7  ;;  %v890_v52 = vpop.f32.mrb[10].mxu0  ;;  %v931_v53 = vpop.f32.mrb[10].mxu1  ;;  %v6337_v32 = vld [vmem:[#allocation30_spill] sm:$0xff]  ;;  %v6338_v34 = vld [vmem:[#allocation32_spill] sm:$0xff] }
 0x2e0   :  { %v955_v56 = vadd.f32 %v4711_v18, %v887_v22  ;;  %v891_v61 = vpop.f32.mrb[11].mxu0  ;;  %v932_v39 = vpop.f32.mrb[11].mxu1  ;;  %v957_v2 = vadd.f32 %v4717_v49, %v928_v26  ;;  %v6336_v26 = vld [vmem:[#allocation12_spill] sm:$0xff]  ;;  %v6341_v52 = vld [vmem:[#allocation34_spill] sm:$0xff] }
 0x2e1   :  { %v956_v40 = vadd.f32 %v4713_v21, %v889_v38  ;;  %v958_v27 = vadd.f32 %v4719_v51, %v930_v48  ;;  %v6339_v38 = vld [vmem:[#allocation13_spill] sm:$0xff]  ;;  %v6340_v48 = vld [vmem:[#allocation16_spill] sm:$0xff]  ;;  %v6345_v61 = vld [vmem:[#allocation38_spill] sm:$0xff] }
 0x2e2   :  { %v3227_v43 = vmul.f32 -1.442695, %v955_v56  ;;  %v3229_v1 = vmul.f32 -1.442695, %v957_v2  ;;  %v6342_v53 = vld [vmem:[#allocation36_spill] sm:$0xff]  ;;  %v6343_v56 = vld [vmem:[#allocation17_spill] sm:$0xff] }
 0x2e3   :  { %v3228_v44 = vmul.f32 -1.442695, %v956_v40  ;;  %v6346_v39 = vld [vmem:[#allocation40_spill] sm:$0xff]  ;;  %v6347_v40 = vld [vmem:[#allocation19_spill] sm:$0xff]  ;;  %v6351_v2 = vld [vmem:[#allocation21_spill] sm:$0xff] }
 0x2e4   :  { %3804 = vpow2.f32 %v3227_v43  ;;  %v6348_v43 = vld [vmem:[#allocation20_spill] sm:$0xff] }
 0x2e5   :  { %3806 = vpow2.f32 %v3228_v44  ;;  %v6349_v44 = vld [vmem:[#allocation42_spill] sm:$0xff] }
 0x2e6   :  { %3808 = vtanh.f32 %v958_v27  ;;  %v6352_v27 = vld [vmem:[#allocation22_spill] sm:$0xff] }
 0x2e7   :  { %3810 = vpow2.f32 %v3229_v1  ;;  %v6353_v1 = vld [vmem:[#allocation46_spill] sm:$0xff] }
 0x2ee   :  { %v3805_v0 = vpop.eup %3804 }
 0x2ef   :  { %v968_v3 = vadd.f32 1.0, %v3805_v0  ;;  %v3807_v4 = vpop.eup %3806  ;;  %v6354_v0 = vld [vmem:[#allocation48_spill] sm:$0xff] }
 0x2f0   :  { %v969_v5 = vadd.f32 1.0, %v3807_v4  ;;  %v3809_v6 = vpop.eup %3808  ;;  %v6356_v4 = vld [vmem:[#allocation24_spill] sm:$0xff] }
 0x2f1   :  { %3812 = vrcp.f32 %v968_v3  ;;  %v3811_v7 = vpop.eup %3810  ;;  %v6355_v3 = vld [vmem:[#allocation23_spill] sm:$0xff] }
 0x2f2   :  { %3814 = vrcp.f32 %v969_v5  ;;  %v970_v13 = vadd.f32 1.0, %v3811_v7  ;;  %v6357_v5 = vld [vmem:[#allocation50_spill] sm:$0xff]  ;;  %v6359_v7 = vld [vmem:[#allocation25_spill] sm:$0xff] }
 0x2f4   :  { %3816 = vrcp.f32 %v970_v13  ;;  %v6363_v13 = vld [vmem:[#allocation27_spill] sm:$0xff] }
 0x2fb   :  { %v3813_v8 = vpop.eup %3812 }
 0x2fc   :  { %v979_v9 = vmul.f32 %v3813_v8, %v3809_v6  ;;  %v3815_v11 = vpop.eup %3814  ;;  %v6358_v6 = vld [vmem:[#allocation52_spill] sm:$0xff]  ;;  %v6360_v8 = vld [vmem:[#allocation26_spill] sm:$0xff] }
 0x2fd   :  { %v978_v14 = vmul.f32 0.0, %v3815_v11  ;;  %v6362_v11 = vld [vmem:[#allocation56_spill] sm:$0xff] }
 0x2fe   :  { %v3817_v17 = vpop.eup %3816 }
 0x2ff   :  { %v4723_v15 = vadd.f32 %v979_v9, %v978_v14  ;;  %v6361_v9 = vld [vmem:[#allocation54_spill] sm:$0xff]  ;;  %v6364_v14 = vld [vmem:[#allocation28_spill] sm:$0xff] }
 0x301   :  { %3818 = vtanh.f32 %v4723_v15  ;;  %v987_v16 = vpack.c.bf16 %v4723_v15, %v4723_v15 }
 0x303   :  { %1021 = vmatprep.mubr.bf16.mxu0 %v987_v16  ;;  %v6365_v16 = vld [vmem:[#allocation58_spill] sm:$0xff] }
 0x30b   :  { %v3819_v19 = vpop.eup %3818 }
 0x30c   :  { %v982_v20 = vmul.f32 %v3819_v19, %v3817_v17  ;;  %v6366_v17 = vld [vmem:[#allocation29_spill] sm:$0xff]  ;;  %v6367_v19 = vld [vmem:[#allocation31_spill] sm:$0xff] }
 0x30e   :  { %983 = vst [vmem:[#allocation8] sm:$0xf] %v982_v20  ;;  %v986_v22 = vpack.c.bf16 %v982_v20, %v982_v20  ;;  %v6368_v20 = vld [vmem:[#allocation33_spill] sm:$0xff] }
 0x310   :  { %1022 = vmatmul.mubr.bf16.vlgmr.msra.gmra.mrb[12].mxu0 %v986_v22  ;;  %1143 = vmatmul.mubr.bf16.vlgmr.msra.gmra.mrb[16].mxu1 %v986_v22 }
 0x311   :  { %1070 = vmatpush1.bf16.msra.mxu0 %v4436_v29  ;;  %1101 = vmatprep.mubr.bf16.mxu0 %v6335_v12 }
 0x312   :  { %1071 = vmatprep.subr.bf16.mxu0 %v6336_v26  ;;  %1219 = vmatpush1.bf16.msra.mxu1 %v6337_v32 }
 0x313   :  { %1220 = vmatprep.subr.bf16.mxu1 %v6338_v34  ;;  %1250 = vmatprep.mubr.bf16.mxu1 %v6335_v12 }
 0x315   :  { %1072 = vmatpush1.bf16.msra.mxu0 %v6339_v38 }
 0x316   :  { %1073 = vmatprep.subr.bf16.mxu0 %v6340_v48  ;;  %1221 = vmatpush1.bf16.msra.mxu1 %v6341_v52 }
 0x317   :  { %1222 = vmatprep.subr.bf16.mxu1 %v6342_v53 }
 0x319   :  { %1074 = vmatpush1.bf16.msra.mxu0 %v6343_v56 }
 0x31a   :  { %1075 = vmatprep.subr.bf16.mxu0 %v6344_v60  ;;  %1223 = vmatpush1.bf16.msra.mxu1 %v6345_v61 }
 0x31b   :  { %1224 = vmatprep.subr.bf16.mxu1 %v6346_v39 }
 0x31d   :  { %1076 = vmatpush1.bf16.msra.mxu0 %v6347_v40 }
 0x31e   :  { %1077 = vmatprep.subr.bf16.mxu0 %v6348_v43  ;;  %1225 = vmatpush1.bf16.msra.mxu1 %v6349_v44 }
 0x31f   :  { %1226 = vmatprep.subr.bf16.mxu1 %v6350_v47 }
 0x321   :  { %1078 = vmatpush1.bf16.msra.mxu0 %v6351_v2 }
 0x322   :  { %1079 = vmatprep.subr.bf16.mxu0 %v6352_v27  ;;  %1227 = vmatpush1.bf16.msra.mxu1 %v6353_v1 }
 0x323   :  { %1228 = vmatprep.subr.bf16.mxu1 %v6354_v0  ;;  %v6383_v0 = vld [vmem:[#allocation15_spill] sm:$0xff] }
 0x325   :  { %1080 = vmatpush1.bf16.msra.mxu0 %v6355_v3 }
 0x326   :  { %1081 = vmatprep.subr.bf16.mxu0 %v6356_v4  ;;  %1229 = vmatpush1.bf16.msra.mxu1 %v6357_v5  ;;  %v6378_v5 = vld [vmem:[#allocation53_spill] sm:$0xff] }
 0x327   :  { %1230 = vmatprep.subr.bf16.mxu1 %v6358_v6  ;;  %v6376_v6 = vld [vmem:[#allocation49_spill] sm:$0xff] }
 0x329   :  { %1082 = vmatpush1.bf16.msra.mxu0 %v6359_v7 }
 0x32a   :  { %1083 = vmatprep.subr.bf16.mxu0 %v6360_v8  ;;  %1231 = vmatpush1.bf16.msra.mxu1 %v6361_v9  ;;  %v6369_v9 = vld [vmem:[#allocation35_spill] sm:$0xff]  ;;  %v6374_v8 = vld [vmem:[#allocation45_spill] sm:$0xff] }
 0x32b   :  { %1232 = vmatprep.subr.bf16.mxu1 %v6362_v11  ;;  %v6370_v11 = vld [vmem:[#allocation37_spill] sm:$0xff] }
 0x32d   :  { %1084 = vmatpush1.bf16.msra.mxu0 %v6363_v13  ;;  %v6371_v13 = vld [vmem:[#allocation39_spill] sm:$0xff] }
 0x32e   :  { %1177 = vmatprep.subr.bf16.mxu0 %v6364_v14  ;;  %1233 = vmatpush1.bf16.msra.mxu1 %v6365_v16  ;;  %v6372_v14 = vld [vmem:[#allocation41_spill] sm:$0xff]  ;;  %v6373_v16 = vld [vmem:[#allocation43_spill] sm:$0xff] }
 0x32f   :  { %3546 = vmatprep.subr.bf16.mxu1 %v6334_v57 }
 0x330   :  { %1102 = vmatmul.mubr.bf16.vlgmr.msra.gmra.mrb[16].mxu0 %v986_v22  ;;  %v6375_v22 = vld [vmem:[#allocation47_spill] sm:$0xff] }
 0x331   :  { %1178 = vmatpush1.bf16.msra.mxu0 %v6366_v17  ;;  %1209 = vmatprep.mubr.bf16.mxu0 %v6335_v12  ;;  %v1063_v17 = vpop.f32.mrb[12].mxu1 }
 0x332   :  { %1179 = vmatprep.subr.bf16.mxu0 %v6367_v19  ;;  %v3544_v7 = vpop.f32.mrb[13].mxu1 }
 0x333   :  { %v1066_v19 = vpop.f32.mrb[14].mxu1 }
 0x335   :  { %1180 = vmatpush1.bf16.msra.mxu0 %v6368_v20  ;;  %v6377_v20 = vld [vmem:[#allocation51_spill] sm:$0xff] }
 0x336   :  { %1181 = vmatprep.subr.bf16.mxu0 %v6369_v9  ;;  %v3545_v9 = vpop.f32.mrb[15].mxu1 }
 0x339   :  { %1182 = vmatpush1.bf16.msra.mxu0 %v6370_v11  ;;  %v6379_v11 = vld [vmem:[#allocation55_spill] sm:$0xff] }
 0x33a   :  { %1183 = vmatprep.subr.bf16.mxu0 %v6371_v13  ;;  %v6380_v13 = vld [vmem:[#allocation57_spill] sm:$0xff] }
 0x33d   :  { %1184 = vmatpush1.bf16.msra.mxu0 %v6372_v14  ;;  %v4778_v14 = vld [vmem:[#allocation2 + $0x40] sm:$0xff]  }
 0x33e   :  { %1185 = vmatprep.subr.bf16.mxu0 %v6373_v16  ;;  %6381 = vst [vmem:[#allocation12_spill] sm:$0xff] %v4778_v14 }
 0x341   :  { %1186 = vmatpush1.bf16.msra.mxu0 %v6374_v8 }
 0x342   :  { %1187 = vmatprep.subr.bf16.mxu0 %v6375_v22 }
 0x345   :  { %1188 = vmatpush1.bf16.msra.mxu0 %v6376_v6 }
 0x346   :  { %1189 = vmatprep.subr.bf16.mxu0 %v6377_v20 }
 0x349   :  { %1190 = vmatpush1.bf16.msra.mxu0 %v6378_v5  ;;  %v6382_v5 = vld [vmem:[#allocation14_spill] sm:$0xff] }
 0x34a   :  { %1191 = vmatprep.subr.bf16.mxu0 %v6379_v11 }
 0x34d   :  { %1192 = vmatpush1.bf16.msra.mxu0 %v6380_v13 }
 0x34e   :  { %3320 = vmatprep.subr.bf16.mxu0 %v4778_v14 }
 0x3e3   :  { %v3305_v8 = vpop.f32.mrb[12].mxu0  ;;  %v4781_v22 = vpop.f32.mrb[16].mxu1 }
 0x3e4   :  { %v3306_v7 = vpop.f32.mrb[13].mxu0  ;;  %v4783_v16 = vpop.f32.mrb[17].mxu1 }
 0x3e5   :  { %v3307_v19 = vadd.f32 %v3306_v7, %v3305_v8  ;;  %v3308_v6 = vpop.f32.mrb[14].mxu0  ;;  %v1148_v20 = vpop.f32.mrb[18].mxu1 }
 0x3e6   :  { %v3309_v9 = vpop.f32.mrb[15].mxu0  ;;  %v1149_v4 = vpop.f32.mrb[19].mxu1 }
 0x3e7   :  { %v1024_v3 = vadd.f32 %v3307_v19, %v6382_v5 }
 0x3e9   :  { %v1064_v11 = vadd.f32 %v1063_v17, %v1024_v3 }
 0x3eb   :  { %3820 = vtanh.f32 %v1064_v11 }
 0x3f5   :  { %v3821_v13 = vpop.eup %3820 }
 0x3f6   :  { %v1152_v1 = vmul.f32 %v3821_v13, %v6383_v0 }
 0x3f8   :  { %v1153_v14 = vsel %vm667_vm1, %v1152_v1, 0.0 }
 0x3f9   :  { %1154 = vadd.xlane.f32.xlu0 %v1153_v14 }
 0x403   :  { %v4788_v27 = vpop.f32.mrb[16].mxu0 }
 0x404   :  { %v4790_v2 = vpop.f32.mrb[17].mxu0 }
 0x405   :  { %v1107_v47 = vpop.f32.mrb[18].mxu0 }
 0x406   :  { %v1108_v8 = vpop.f32.mrb[19].mxu0 }
 0x486   :  { %v1155_v6 = vpop.xlane.xlu0 %1154 }
 0x487   :  { %v1156_v20 = vsel %vm667_vm1, %v1155_v6, -inf }
 0x488   :  { %v1157_v4 = vrot.slane %v1156_v20, 4 }
 0x48a   :  { %v1158_v7 = vmax.f32 %v1156_v20, %v1157_v4 }
 0x48c   :  { %v1159_v5 = vrot.slane %v1158_v7, 2 }
 0x48e   :  { %v1160_v3 = vmax.f32 %v1158_v7, %v1159_v5  ;;  %v4798_v7 = vld [vmem:[#allocation2] sm:$0xff]   ;;  %v4820_v5 = vld [vmem:[#allocation2 + $0x10] sm:$0xff]  }
 0x490   :  { %v1161_v11 = vrot.slane %v1160_v3, 1 }
 0x492   :  { %v1162_v17 = vmax.f32 %v1160_v3, %v1161_v11  ;;  %v4824_v3 = vld [vmem:[#allocation2 + $0x58] sm:$0xff]  }
 0x493   :  { %v4827_v11 = vld [vmem:[#allocation2 + $0x98] sm:$0xff]  }
 0x494   :  { %v1163_v19 = vsub.f32 %v1155_v6, %v1162_v17  ;;  %v4795_v6 = vld [vmem:[#allocation2 + $0x80] sm:$0xff]   ;;  %v4830_v17 = vld [vmem:[#allocation2 + $0x18] sm:$0xff]  }
 0x496   :  { %v1164_v0 = vmul.f32 1.442695, %v1163_v19  ;;  %v4834_v19 = vld [vmem:[#allocation2 + $0x60] sm:$0xff]  }
 0x498   :  { %3822 = vpow2.f32 %v1164_v0  ;;  %v4837_v0 = vld [vmem:[#allocation2 + $0xa0] sm:$0xff]  }
 0x4a2   :  { %v3823_v1 = vpop.eup %3822 }
 0x4a3   :  { %v1166_v13 = vsel %vm667_vm1, %v3823_v1, 0.0 }
 0x4a4   :  { %v1167_v14 = vrot.slane %v1166_v13, 4 }
 0x4a6   :  { %v1168_v9 = vadd.f32 %v1167_v14, %v1166_v13  ;;  %v4844_v13 = vld [vmem:[#allocation2 + $0x68] sm:$0xff]  }
 0x4a7   :  { %v4847_v14 = vld [vmem:[#allocation2 + $0xa8] sm:$0xff]  }
 0x4a8   :  { %v1169_v44 = vrot.slane %v1168_v9, 2 }
 0x4aa   :  { %v1170_v47 = vadd.f32 %v1169_v44, %v1168_v9  ;;  %v4817_v44 = vld [vmem:[#allocation2 + $0x90] sm:$0xff]   ;;  %v4850_v9 = vld [vmem:[#allocation2 + $0x28] sm:$0xff]  }
 0x4ac   :  { %v1171_v8 = vrot.slane %v1170_v47, 1 }
 0x4ae   :  { %v1172_v43 = vadd.f32 %v1171_v8, %v1170_v47  ;;  %v4854_v47 = vld [vmem:[#allocation2 + $0x70] sm:$0xff]  }
 0x4af   :  { %v4857_v8 = vld [vmem:[#allocation2 + $0xb0] sm:$0xff]  }
 0x4b0   :  { %3824 = vrcp.f32 %v1172_v43  ;;  %v4804_v43 = vld [vmem:[#allocation2 + $0x48] sm:$0xff]  }
 0x4ba   :  { %v3825_v40 = vpop.eup %3824 }
 0x4bb   :  { %v1174_v39 = vmul.f32 %v3825_v40, %v3823_v1  ;;  %v4814_v40 = vld [vmem:[#allocation2 + $0x50] sm:$0xff]   ;;  %v4840_v1 = vld [vmem:[#allocation2 + $0x20] sm:$0xff]  }
 0x4bd   :  { %v1175_v20 = vmul.f32 %v4687_v10, %v1174_v39  ;;  %v4807_v10 = vld [vmem:[#allocation2 + $0x88] sm:$0xff]  }
 0x4be   :  { %v4810_v39 = vld [vmem:[#allocation2 + $0x8] sm:$0xff]  }
 0x4bf   :  { %v1176_v4 = vpack.c.bf16 %v1175_v20, %v1175_v20  ;;  %v4860_v20 = vld [vmem:[#allocation2 + $0x30] sm:$0xff]  }
 0x4c0   :  { %6384 = vst [vmem:[#allocation30_spill] sm:$0xff] %v4860_v20 }
 0x4c1   :  { %1210 = vmatmul.mubr.bf16.vlgmr.msra.gmra.mrb[20].mxu0 %v1176_v4  ;;  %1251 = vmatmul.mubr.bf16.vlgmr.msra.gmra.mrb[20].mxu1 %v1176_v4  ;;  %v4872_v4 = vld [vmem:[%s6007_s0 + $0x8] sm:$0xf] }
 0x4c2   :  { %3547 = vmatpush3.bf16.msra.mxu1 %v4795_v6  ;;  %3321 = vmatpush3.bf16.msra.mxu0 %v4798_v7 }
 0x4c3   :  { %3548 = vmatprep.subr.bf16.mxu1 %v6334_v57  ;;  %3562 = vmatprep.mubr.msk.bf16.mxu1 %vm4257_vm0, %v6334_v57 }
 0x4c4   :  { %3322 = vmatprep.subr.bf16.mxu0 %v4804_v43 }
 0x4c6   :  { %3549 = vmatpush3.bf16.msra.mxu1 %v4807_v10  ;;  %3323 = vmatpush3.bf16.msra.mxu0 %v4810_v39 }
 0x4c7   :  { %3550 = vmatprep.subr.bf16.mxu1 %v6334_v57  ;;  %3324 = vmatprep.subr.bf16.mxu0 %v4814_v40 }
 0x4ca   :  { %3551 = vmatpush3.bf16.msra.mxu1 %v4817_v44  ;;  %3325 = vmatpush3.bf16.msra.mxu0 %v4820_v5 }
 0x4cb   :  { %3552 = vmatprep.subr.bf16.mxu1 %v6334_v57  ;;  %3326 = vmatprep.subr.bf16.mxu0 %v4824_v3 }
 0x4ce   :  { %3553 = vmatpush3.bf16.msra.mxu1 %v4827_v11  ;;  %3327 = vmatpush3.bf16.msra.mxu0 %v4830_v17 }
 0x4cf   :  { %3554 = vmatprep.subr.bf16.mxu1 %v6334_v57  ;;  %3328 = vmatprep.subr.bf16.mxu0 %v4834_v19 }
 0x4d2   :  { %3555 = vmatpush3.bf16.msra.mxu1 %v4837_v0  ;;  %3329 = vmatpush3.bf16.msra.mxu0 %v4840_v1 }
 0x4d3   :  { %3556 = vmatprep.subr.bf16.mxu1 %v6334_v57  ;;  %3330 = vmatprep.subr.bf16.mxu0 %v4844_v13 }
 0x4d6   :  { %3557 = vmatpush3.bf16.msra.mxu1 %v4847_v14  ;;  %3331 = vmatpush3.bf16.msra.mxu0 %v4850_v9 }
 0x4d7   :  { %3558 = vmatprep.subr.bf16.mxu1 %v6334_v57  ;;  %3332 = vmatprep.subr.bf16.mxu0 %v4854_v47 }
 0x4da   :  { %3559 = vmatpush3.bf16.msra.mxu1 %v4857_v8  ;;  %3333 = vmatpush3.bf16.msra.mxu0 %v4860_v20  ;;  %v1293_v20 = vpack.c.bf16 %v4872_v4, %v4872_v4 }
 0x4db   :  { %3560 = vmatprep.subr.bf16.mxu1 %v6334_v57  ;;  %3334 = vmatprep.subr.bf16.mxu0 %v4414_v23 }
 0x4de   :  { %3561 = vmatpush3.bf16.msra.mxu1 %v4419_v25  ;;  %3335 = vmatpush3.bf16.msra.mxu0 %v4417_v24 }
 0x4df   :  { %1415 = vmatprep.subr.bf16.mxu1 %v4438_v30  ;;  %1374 = vmatprep.subr.bf16.mxu0 %v4434_v28 }
 0x4e1   :  { %3563 = vmatmul.mubr.bf16.vlgmr.msra.gmra.mrb[24].mxu1 %v1293_v20 }
 0x4e2   :  { %1416 = vmatpush1.bf16.msra.mxu1 %v4440_v31  ;;  %1447 = vmatprep.mubr.bf16.mxu1 %v6335_v12 }
 0x4e3   :  { %1417 = vmatprep.subr.bf16.mxu1 %v4446_v33 }
 0x4e6   :  { %1418 = vmatpush1.bf16.msra.mxu1 %v4452_v35 }
 0x4e7   :  { %1419 = vmatprep.subr.bf16.mxu1 %v4476_v54 }
 0x4ea   :  { %1420 = vmatpush1.bf16.msra.mxu1 %v4479_v55 }
 0x4eb   :  { %1421 = vmatprep.subr.bf16.mxu1 %v4488_v58 }
 0x4ee   :  { %1422 = vmatpush1.bf16.msra.mxu1 %v4491_v59 }
 0x4ef   :  { %1423 = vmatprep.subr.bf16.mxu1 %v4500_v62 }
 0x4f2   :  { %1424 = vmatpush1.bf16.msra.mxu1 %v4503_v63 }
 0x4f3   :  { %1425 = vmatprep.subr.bf16.mxu1 %v4512_v36 }
 0x4f6   :  { %1426 = vmatpush1.bf16.msra.mxu1 %v4515_v37 }
 0x4f7   :  { %1427 = vmatprep.subr.bf16.mxu1 %v4524_v41 }
 0x4fa   :  { %1428 = vmatpush1.bf16.msra.mxu1 %v4527_v42 }
 0x4fb   :  { %1429 = vmatprep.subr.bf16.mxu1 %v4536_v45 }
 0x4fe   :  { %1430 = vmatpush1.bf16.msra.mxu1 %v4539_v46 }
 0x4ff   :  { %1523 = vmatprep.subr.bf16.mxu1 %v4548_v50 }
 0x594   :  { %v1211_v23 = vpop.f32.mrb[20].mxu0  ;;  %v1252_v24 = vpop.f32.mrb[20].mxu1 }
 0x595   :  { %v1212_v25 = vadd.f32 %v1211_v23, %v4788_v27  ;;  %v1253_v28 = vadd.f32 %v1252_v24, %v4781_v22  ;;  %v1213_v30 = vpop.f32.mrb[21].mxu0  ;;  %v1254_v31 = vpop.f32.mrb[21].mxu1 }
 0x596   :  { %v1214_v33 = vadd.f32 %v1213_v30, %v4790_v2  ;;  %v1255_v35 = vadd.f32 %v1254_v31, %v4783_v16  ;;  %v1215_v54 = vpop.f32.mrb[22].mxu0  ;;  %v1256_v55 = vpop.f32.mrb[22].mxu1 }
 0x597   :  { %v1259_v58 = vadd.f32 %v1212_v25, %v4711_v18  ;;  %v1216_v59 = vpop.f32.mrb[23].mxu0  ;;  %v1257_v62 = vpop.f32.mrb[23].mxu1  ;;  %v1261_v41 = vadd.f32 %v1253_v28, %v4717_v49 }
 0x598   :  { %v1260_v63 = vadd.f32 %v1214_v33, %v4713_v21  ;;  %v1262_v42 = vadd.f32 %v1255_v35, %v4719_v51  ;;  %v6398_v59 = vld [vmem:[#allocation25_spill] sm:$0xff]  ;;  %v6399_v62 = vld [vmem:[#allocation26_spill] sm:$0xff] }
 0x599   :  { %v3231_v36 = vmul.f32 -1.442695, %v1259_v58  ;;  %v3233_v45 = vmul.f32 -1.442695, %v1261_v41  ;;  %v6397_v58 = vld [vmem:[#allocation52_spill] sm:$0xff] }
 0x59a   :  { %v3232_v37 = vmul.f32 -1.442695, %v1260_v63  ;;  %v6400_v63 = vld [vmem:[#allocation54_spill] sm:$0xff]  ;;  %v6403_v41 = vld [vmem:[#allocation28_spill] sm:$0xff] }
 0x59b   :  { %3826 = vpow2.f32 %v3231_v36  ;;  %v6401_v36 = vld [vmem:[#allocation56_spill] sm:$0xff] }
 0x59c   :  { %3828 = vpow2.f32 %v3232_v37  ;;  %v6402_v37 = vld [vmem:[#allocation27_spill] sm:$0xff] }
 0x59d   :  { %3830 = vtanh.f32 %v1262_v42  ;;  %v6404_v42 = vld [vmem:[#allocation58_spill] sm:$0xff] }
 0x59e   :  { %3832 = vpow2.f32 %v3233_v45  ;;  %v6405_v45 = vld [vmem:[#allocation29_spill] sm:$0xff] }
 0x5a5   :  { %v3827_v46 = vpop.eup %3826 }
 0x5a6   :  { %v1272_v50 = vadd.f32 1.0, %v3827_v46  ;;  %v3829_v2 = vpop.eup %3828  ;;  %v6406_v46 = vld [vmem:[#allocation31_spill] sm:$0xff] }
 0x5a7   :  { %v1273_v27 = vadd.f32 1.0, %v3829_v2  ;;  %v3831_v16 = vpop.eup %3830  ;;  %v6408_v2 = vld [vmem:[#allocation35_spill] sm:$0xff] }
 0x5a8   :  { %3834 = vrcp.f32 %v1272_v50  ;;  %v3833_v22 = vpop.eup %3832  ;;  %v6407_v50 = vld [vmem:[#allocation33_spill] sm:$0xff] }
 0x5a9   :  { %3836 = vrcp.f32 %v1273_v27  ;;  %v1274_v25 = vadd.f32 1.0, %v3833_v22  ;;  %v6409_v27 = vld [vmem:[#allocation37_spill] sm:$0xff] }
 0x5aa   :  { %v6411_v22 = vld [vmem:[#allocation41_spill] sm:$0xff] }
 0x5ab   :  { %3838 = vrcp.f32 %v1274_v25 }
 0x5b2   :  { %v3835_v20 = vpop.eup %3834 }
 0x5b3   :  { %v1283_v23 = vmul.f32 %v3835_v20, %v3831_v16  ;;  %v3837_v24 = vpop.eup %3836  ;;  %v6410_v16 = vld [vmem:[#allocation39_spill] sm:$0xff] }
 0x5b4   :  { %v1282_v30 = vmul.f32 %v3837_v24, %v4723_v15  ;;  %v6386_v15 = vld [vmem:[#allocation19_spill] sm:$0xff]  ;;  %v1368_v25 = vpop.f32.mrb[24].mxu1 }
 0x5b5   :  { %v3839_v33 = vpop.eup %3838  ;;  %v6412_v20 = vld [vmem:[#allocation43_spill] sm:$0xff] }
 0x5b6   :  { %v4902_v28 = vadd.f32 %v1283_v23, %v1282_v30  ;;  %v6413_v23 = vld [vmem:[#allocation45_spill] sm:$0xff]  ;;  %v6414_v24 = vld [vmem:[#allocation47_spill] sm:$0xff]  ;;  %v3564_v30 = vpop.f32.mrb[25].mxu1 }
 0x5b8   :  { %3840 = vtanh.f32 %v4902_v28  ;;  %v1292_v31 = vpack.c.bf16 %v4902_v28, %v4902_v28 }
 0x5ba   :  { %1326 = vmatprep.mubr.bf16.mxu0 %v1292_v31  ;;  %v6415_v31 = vld [vmem:[#allocation49_spill] sm:$0xff] }
 0x5c2   :  { %v3841_v35 = vpop.eup %3840 }
 0x5c3   :  { %v1286_v54 = vmul.f32 %v3841_v35, %v3839_v33  ;;  %v1371_v33 = vpop.f32.mrb[26].mxu1  ;;  %v6416_v35 = vld [vmem:[#allocation51_spill] sm:$0xff] }
 0x5c5   :  { %1288 = vst [vmem:[#allocation8 + $0x4] sm:$0xf] %v1286_v54  ;;  %v1291_v55 = vpack.c.bf16 %v1286_v54, %v1286_v54  ;;  %v3565_v54 = vpop.f32.mrb[27].mxu1 }
 0x5c7   :  { %1327 = vmatmul.mubr.bf16.vlgmr.msra.gmra.mrb[24].mxu0 %v1291_v55  ;;  %1448 = vmatmul.mubr.bf16.vlgmr.msra.gmra.mrb[28].mxu1 %v1291_v55 }
 0x5c8   :  { %1375 = vmatpush1.bf16.msra.mxu0 %v4436_v29  ;;  %1406 = vmatprep.mubr.bf16.mxu0 %v6335_v12  ;;  %v6385_v29 = vld [vmem:[#allocation40_spill] sm:$0xff] }
 0x5c9   :  { %1376 = vmatprep.subr.bf16.mxu0 %v6336_v26  ;;  %1524 = vmatpush1.bf16.msra.mxu1 %v6337_v32  ;;  %v6387_v26 = vld [vmem:[#allocation20_spill] sm:$0xff]  ;;  %v6388_v32 = vld [vmem:[#allocation42_spill] sm:$0xff] }
 0x5ca   :  { %1525 = vmatprep.subr.bf16.mxu1 %v6338_v34  ;;  %1555 = vmatprep.mubr.bf16.mxu1 %v6335_v12  ;;  %v6389_v34 = vld [vmem:[#allocation44_spill] sm:$0xff] }
 0x5cc   :  { %1377 = vmatpush1.bf16.msra.mxu0 %v6339_v38  ;;  %v6390_v38 = vld [vmem:[#allocation21_spill] sm:$0xff] }
 0x5cd   :  { %1378 = vmatprep.subr.bf16.mxu0 %v6340_v48  ;;  %1526 = vmatpush1.bf16.msra.mxu1 %v6341_v52  ;;  %v6391_v48 = vld [vmem:[#allocation22_spill] sm:$0xff] }
 0x5ce   :  { %1527 = vmatprep.subr.bf16.mxu1 %v6342_v53  ;;  %v6392_v52 = vld [vmem:[#allocation46_spill] sm:$0xff]  ;;  %v6393_v53 = vld [vmem:[#allocation48_spill] sm:$0xff] }
 0x5d0   :  { %1379 = vmatpush1.bf16.msra.mxu0 %v6343_v56  ;;  %v6394_v56 = vld [vmem:[#allocation23_spill] sm:$0xff] }
 0x5d1   :  { %1380 = vmatprep.subr.bf16.mxu0 %v6344_v60  ;;  %1528 = vmatpush1.bf16.msra.mxu1 %v6345_v61  ;;  %v6395_v60 = vld [vmem:[#allocation24_spill] sm:$0xff]  ;;  %v6396_v61 = vld [vmem:[#allocation50_spill] sm:$0xff] }
 0x5d2   :  { %1529 = vmatprep.subr.bf16.mxu1 %v6385_v29  ;;  %v6418_v29 = vld [vmem:[#allocation55_spill] sm:$0xff] }
 0x5d4   :  { %1381 = vmatpush1.bf16.msra.mxu0 %v6386_v15  ;;  %v6419_v15 = vld [vmem:[#allocation57_spill] sm:$0xff] }
 0x5d5   :  { %1382 = vmatprep.subr.bf16.mxu0 %v6387_v26  ;;  %1530 = vmatpush1.bf16.msra.mxu1 %v6388_v32  ;;  %v6420_v26 = vld [vmem:[#allocation12_spill] sm:$0xff] }
 0x5d6   :  { %1531 = vmatprep.subr.bf16.mxu1 %v6389_v34 }
 0x5d8   :  { %1383 = vmatpush1.bf16.msra.mxu0 %v6390_v38 }
 0x5d9   :  { %1384 = vmatprep.subr.bf16.mxu0 %v6391_v48  ;;  %1532 = vmatpush1.bf16.msra.mxu1 %v6392_v52 }
 0x5da   :  { %1533 = vmatprep.subr.bf16.mxu1 %v6393_v53 }
 0x5dc   :  { %1385 = vmatpush1.bf16.msra.mxu0 %v6394_v56 }
 0x5dd   :  { %1386 = vmatprep.subr.bf16.mxu0 %v6395_v60  ;;  %1534 = vmatpush1.bf16.msra.mxu1 %v6396_v61 }
 0x5de   :  { %1535 = vmatprep.subr.bf16.mxu1 %v6397_v58  ;;  %v4965_v58 = vld [vmem:[%s6009_s2] ss:$0 sm:$0xff] }
 0x5df   :  { %6421 = vst [vmem:[#allocation32_spill] sm:$0xff] %v4965_v58 }
 0x5e0   :  { %1387 = vmatpush1.bf16.msra.mxu0 %v6398_v59 }
 0x5e1   :  { %1388 = vmatprep.subr.bf16.mxu0 %v6399_v62  ;;  %1536 = vmatpush1.bf16.msra.mxu1 %v6400_v63 }
 0x5e2   :  { %1537 = vmatprep.subr.bf16.mxu1 %v6401_v36  ;;  %v4971_v36 = vld [vmem:[%s6010_s3] ss:$0 sm:$0xff] }
 0x5e3   :  { %6422 = vst [vmem:[#allocation13_spill] sm:$0xff] %v4971_v36 }
 0x5e4   :  { %1389 = vmatpush1.bf16.msra.mxu0 %v6402_v37 }
 0x5e5   :  { %1482 = vmatprep.subr.bf16.mxu0 %v6403_v41  ;;  %1538 = vmatpush1.bf16.msra.mxu1 %v6404_v42 }
 0x5e6   :  { %3566 = vmatprep.subr.bf16.mxu1 %v6334_v57 }
 0x5e7   :  { %1407 = vmatmul.mubr.bf16.vlgmr.msra.gmra.mrb[28].mxu0 %v1291_v55  ;;  %v6417_v55 = vld [vmem:[#allocation53_spill] sm:$0xff] }
 0x5e8   :  { %1483 = vmatpush1.bf16.msra.mxu0 %v6405_v45  ;;  %1514 = vmatprep.mubr.bf16.mxu0 %v6335_v12 }
 0x5e9   :  { %1484 = vmatprep.subr.bf16.mxu0 %v6406_v46 }
 0x5ec   :  { %1485 = vmatpush1.bf16.msra.mxu0 %v6407_v50 }
 0x5ed   :  { %1486 = vmatprep.subr.bf16.mxu0 %v6408_v2 }
 0x5f0   :  { %1487 = vmatpush1.bf16.msra.mxu0 %v6409_v27 }
 0x5f1   :  { %1488 = vmatprep.subr.bf16.mxu0 %v6410_v16 }
 0x5f4   :  { %1489 = vmatpush1.bf16.msra.mxu0 %v6411_v22 }
 0x5f5   :  { %1490 = vmatprep.subr.bf16.mxu0 %v6412_v20 }
 0x5f8   :  { %1491 = vmatpush1.bf16.msra.mxu0 %v6413_v23 }
 0x5f9   :  { %1492 = vmatprep.subr.bf16.mxu0 %v6414_v24 }
 0x5fc   :  { %1493 = vmatpush1.bf16.msra.mxu0 %v6415_v31 }
 0x5fd   :  { %1494 = vmatprep.subr.bf16.mxu0 %v6416_v35 }
 0x600   :  { %1495 = vmatpush1.bf16.msra.mxu0 %v6417_v55 }
 0x601   :  { %1496 = vmatprep.subr.bf16.mxu0 %v6418_v29 }
 0x604   :  { %1497 = vmatpush1.bf16.msra.mxu0 %v6419_v15 }
 0x605   :  { %3351 = vmatprep.subr.bf16.mxu0 %v6420_v26 }
 0x69a   :  { %v3336_v32 = vpop.f32.mrb[24].mxu0  ;;  %v4958_v34 = vpop.f32.mrb[28].mxu1 }
 0x69b   :  { %v3337_v38 = vpop.f32.mrb[25].mxu0  ;;  %v4960_v48 = vpop.f32.mrb[29].mxu1 }
 0x69c   :  { %v3338_v52 = vadd.f32 %v3337_v38, %v3336_v32  ;;  %v3339_v53 = vpop.f32.mrb[26].mxu0  ;;  %v1453_v56 = vpop.f32.mrb[30].mxu1 }
 0x69d   :  { %v3340_v60 = vpop.f32.mrb[27].mxu0  ;;  %v1454_v61 = vpop.f32.mrb[31].mxu1 }
 0x69e   :  { %v1329_v59 = vadd.f32 %v4965_v58, %v3338_v52  ;;  %v5011_v61 = vld [vmem:[#allocation2 + $0x78] sm:$0xff]  }
 0x6a0   :  { %v1369_v62 = vadd.f32 %v1368_v25, %v1329_v59  ;;  %v5014_v59 = vld [vmem:[#allocation2 + $0xb8] sm:$0xff]  }
 0x6a2   :  { %3842 = vtanh.f32 %v1369_v62  ;;  %v5017_v62 = vld [vmem:[#allocation2 + $0x38] sm:$0xff]  }
 0x6ac   :  { %v3843_v63 = vpop.eup %3842 }
 0x6ad   :  { %v1457_v37 = vmul.f32 %v4971_v36, %v3843_v63  ;;  %v5020_v63 = vld [vmem:[#allocation7 + $0xc] ss:$16 sps:$4 sm:$0xff]  }
 0x6af   :  { %v1458_v41 = vsel %vm667_vm1, %v1457_v37, 0.0  ;;  %v5023_v37 = vld [vmem:[#allocation7 + $0x4] ss:$16 sps:$4 sm:$0xff]  }
 0x6b0   :  { %1459 = vadd.xlane.f32.xlu1 %v1458_v41  ;;  %v5029_v41 = vld [vmem:[%s6007_s0 + $0xc] sm:$0xf] }
 0x6ba   :  { %v4975_v42 = vpop.f32.mrb[28].mxu0 }
 0x6bb   :  { %v4977_v45 = vpop.f32.mrb[29].mxu0 }
 0x6bc   :  { %v1412_v46 = vpop.f32.mrb[30].mxu0 }
 0x6bd   :  { %v1413_v50 = vpop.f32.mrb[31].mxu0  ;;  %v1598_v46 = vpack.c.bf16 %v5029_v41, %v5029_v41 }
 0x6be   :  { %v5033_v50 = vld [vmem:[#allocation7 + $0x8] ss:$16 sps:$4 sm:$0xff]  }
 0x73d   :  { %v1460_v2 = vpop.xlane.xlu1 %1459 }
 0x73e   :  { %v1461_v27 = vsel %vm667_vm1, %v1460_v2, -inf }
 0x73f   :  { %v1462_v16 = vrot.slane %v1461_v27, 4 }
 0x741   :  { %v1463_v22 = vmax.f32 %v1461_v27, %v1462_v16  ;;  %v5040_v27 = vld [vmem:[#allocation7 + $0x28] ss:$16 sps:$4 sm:$0xff]   ;;  %v5043_v16 = vld [vmem:[#allocation7 + $0x4c] ss:$16 sps:$4 sm:$0xff]  }
 0x743   :  { %v1464_v20 = vrot.slane %v1463_v22, 2 }
 0x745   :  { %v1465_v23 = vmax.f32 %v1463_v22, %v1464_v20  ;;  %v5046_v22 = vld [vmem:[#allocation7 + $0x48] ss:$16 sps:$4 sm:$0xff]   ;;  %v5049_v20 = vld [vmem:[#allocation7 + $0x6c] ss:$16 sps:$4 sm:$0xff]  }
 0x747   :  { %v1466_v24 = vrot.slane %v1465_v23, 1 }
 0x749   :  { %v1467_v25 = vmax.f32 %v1465_v23, %v1466_v24  ;;  %v5052_v23 = vld [vmem:[#allocation7 + $0x68] ss:$16 sps:$4 sm:$0xff]   ;;  %v5055_v24 = vld [vmem:[#allocation7 + $0x8c] ss:$16 sps:$4 sm:$0xff]  }
 0x74b   :  { %v1468_v30 = vsub.f32 %v1460_v2, %v1467_v25  ;;  %v5037_v2 = vld [vmem:[#allocation7 + $0x2c] ss:$16 sps:$4 sm:$0xff]   ;;  %v5058_v25 = vld [vmem:[#allocation7 + $0x88] ss:$16 sps:$4 sm:$0xff]  }
 0x74c   :  { %6424 = vst [vmem:[#allocation16_spill] sm:$0xff] %v5058_v25 }
 0x74d   :  { %v1469_v31 = vmul.f32 1.442695, %v1468_v30  ;;  %v5061_v30 = vld [vmem:[#allocation7 + $0xac] ss:$16 sps:$4 sm:$0xff]  }
 0x74e   :  { %6425 = vst [vmem:[#allocation34_spill] sm:$0xff] %v5061_v30 }
 0x74f   :  { %3844 = vpow2.f32 %v1469_v31  ;;  %v5064_v31 = vld [vmem:[#allocation7 + $0xa8] ss:$16 sps:$4 sm:$0xff]  }
 0x750   :  { %6426 = vst [vmem:[#allocation36_spill] sm:$0xff] %v5064_v31 }
 0x759   :  { %v3845_v33 = vpop.eup %3844 }
 0x75a   :  { %v1471_v35 = vsel %vm667_vm1, %v3845_v33, 0.0 }
 0x75b   :  { %v1472_v54 = vrot.slane %v1471_v35, 4 }
 0x75d   :  { %v1473_v55 = vadd.f32 %v1472_v54, %v1471_v35  ;;  %v5070_v35 = vld [vmem:[#allocation7 + $0xc8] ss:$16 sps:$4 sm:$0xff]   ;;  %v5073_v54 = vld [vmem:[#allocation7 + $0xec] ss:$16 sps:$4 sm:$0xff]  }
 0x75e   :  { %6428 = vst [vmem:[#allocation18_spill] sm:$0xff] %v5070_v35  ;;  %6429 = vst [vmem:[#allocation38_spill] sm:$0xff] %v5073_v54 }
 0x75f   :  { %v1474_v29 = vrot.slane %v1473_v55, 2 }
 0x761   :  { %v1475_v15 = vadd.f32 %v1474_v29, %v1473_v55  ;;  %v5076_v55 = vld [vmem:[#allocation7 + $0xe8] ss:$16 sps:$4 sm:$0xff]   ;;  %v5079_v29 = vld [vmem:[#allocation5 + $0xc] ss:$16 sps:$4 sm:$0xff]  }
 0x762   :  { %6430 = vst [vmem:[#allocation14_spill] sm:$0xff] %v5076_v55  ;;  %6431 = vst [vmem:[#allocation15_spill] sm:$0xff] %v5079_v29 }
 0x763   :  { %v1476_v32 = vrot.slane %v1475_v15, 1 }
 0x765   :  { %v1477_v38 = vadd.f32 %v1476_v32, %v1475_v15 }
 0x767   :  { %3846 = vrcp.f32 %v1477_v38 }
 0x771   :  { %v3847_v52 = vpop.eup %3846 }
 0x772   :  { %v1479_v53 = vmul.f32 %v3847_v52, %v3845_v33  ;;  %v5067_v33 = vld [vmem:[#allocation7 + $0xcc] ss:$16 sps:$4 sm:$0xff]  }
 0x773   :  { %6427 = vst [vmem:[#allocation17_spill] sm:$0xff] %v5067_v33 }
 0x774   :  { %v1480_v56 = vmul.f32 %v4872_v4, %v1479_v53  ;;  %v6423_v4 = vld [vmem:[#allocation30_spill] sm:$0xff] }
 0x776   :  { %v1481_v60 = vpack.c.bf16 %v1480_v56, %v1480_v56 }
 0x778   :  { %1515 = vmatmul.mubr.bf16.vlgmr.msra.gmra.mrb[32].mxu0 %v1481_v60  ;;  %1556 = vmatmul.mubr.bf16.vlgmr.msra.gmra.mrb[32].mxu1 %v1481_v60 }
 0x779   :  { %3567 = vmatpush3.bf16.msra.mxu1 %v4795_v6  ;;  %3352 = vmatpush3.bf16.msra.mxu0 %v4798_v7 }
 0x77a   :  { %3568 = vmatprep.subr.bf16.mxu1 %v6334_v57  ;;  %3582 = vmatprep.mubr.msk.bf16.mxu1 %vm4257_vm0, %v6334_v57 }
 0x77b   :  { %3353 = vmatprep.subr.bf16.mxu0 %v4804_v43 }
 0x77d   :  { %3569 = vmatpush3.bf16.msra.mxu1 %v4807_v10  ;;  %3354 = vmatpush3.bf16.msra.mxu0 %v4810_v39 }
 0x77e   :  { %3570 = vmatprep.subr.bf16.mxu1 %v6334_v57  ;;  %3355 = vmatprep.subr.bf16.mxu0 %v4814_v40 }
 0x781   :  { %3571 = vmatpush3.bf16.msra.mxu1 %v4817_v44  ;;  %3356 = vmatpush3.bf16.msra.mxu0 %v4820_v5 }
 0x782   :  { %3572 = vmatprep.subr.bf16.mxu1 %v6334_v57  ;;  %3357 = vmatprep.subr.bf16.mxu0 %v4824_v3 }
 0x785   :  { %3573 = vmatpush3.bf16.msra.mxu1 %v4827_v11  ;;  %3358 = vmatpush3.bf16.msra.mxu0 %v4830_v17 }
 0x786   :  { %3574 = vmatprep.subr.bf16.mxu1 %v6334_v57  ;;  %3359 = vmatprep.subr.bf16.mxu0 %v4834_v19 }
 0x789   :  { %3575 = vmatpush3.bf16.msra.mxu1 %v4837_v0  ;;  %3360 = vmatpush3.bf16.msra.mxu0 %v4840_v1 }
 0x78a   :  { %3576 = vmatprep.subr.bf16.mxu1 %v6334_v57  ;;  %3361 = vmatprep.subr.bf16.mxu0 %v4844_v13 }
 0x78d   :  { %3577 = vmatpush3.bf16.msra.mxu1 %v4847_v14  ;;  %3362 = vmatpush3.bf16.msra.mxu0 %v4850_v9 }
 0x78e   :  { %3578 = vmatprep.subr.bf16.mxu1 %v6334_v57  ;;  %3363 = vmatprep.subr.bf16.mxu0 %v4854_v47 }
 0x791   :  { %3579 = vmatpush3.bf16.msra.mxu1 %v4857_v8  ;;  %3364 = vmatpush3.bf16.msra.mxu0 %v6423_v4 }
 0x792   :  { %3580 = vmatprep.subr.bf16.mxu1 %v6334_v57  ;;  %3365 = vmatprep.subr.bf16.mxu0 %v5011_v61 }
 0x795   :  { %3581 = vmatpush3.bf16.msra.mxu1 %v5014_v59  ;;  %3366 = vmatpush3.bf16.msra.mxu0 %v5017_v62 }
 0x796   :  { %1720 = vmatprep.subr.bf16.mxu1 %v5020_v63  ;;  %1679 = vmatprep.subr.bf16.mxu0 %v5023_v37 }
 0x798   :  { %3583 = vmatmul.mubr.bf16.vlgmr.msra.gmra.mrb[36].mxu1 %v1598_v46 }
 0x799   :  { %1721 = vmatpush1.bf16.msra.mxu1 %v5033_v50  ;;  %1752 = vmatprep.mubr.bf16.mxu1 %v6335_v12 }
 0x79a   :  { %1722 = vmatprep.subr.bf16.mxu1 %v5037_v2 }
 0x79d   :  { %1723 = vmatpush1.bf16.msra.mxu1 %v5040_v27 }
 0x79e   :  { %1724 = vmatprep.subr.bf16.mxu1 %v5043_v16 }
 0x7a1   :  { %1725 = vmatpush1.bf16.msra.mxu1 %v5046_v22 }
 0x7a2   :  { %1726 = vmatprep.subr.bf16.mxu1 %v5049_v20 }
 0x7a5   :  { %1727 = vmatpush1.bf16.msra.mxu1 %v5052_v23 }
 0x7a6   :  { %1728 = vmatprep.subr.bf16.mxu1 %v5055_v24 }
 0x7a9   :  { %1729 = vmatpush1.bf16.msra.mxu1 %v5058_v25 }
 0x7aa   :  { %1730 = vmatprep.subr.bf16.mxu1 %v5061_v30 }
 0x7ad   :  { %1731 = vmatpush1.bf16.msra.mxu1 %v5064_v31 }
 0x7ae   :  { %1732 = vmatprep.subr.bf16.mxu1 %v5067_v33 }
 0x7b1   :  { %1733 = vmatpush1.bf16.msra.mxu1 %v5070_v35 }
 0x7b2   :  { %1734 = vmatprep.subr.bf16.mxu1 %v5073_v54 }
 0x7b5   :  { %1735 = vmatpush1.bf16.msra.mxu1 %v5076_v55 }
 0x7b6   :  { %1828 = vmatprep.subr.bf16.mxu1 %v5079_v29 }
 0x84b   :  { %v1516_v15 = vpop.f32.mrb[32].mxu0  ;;  %v1557_v32 = vpop.f32.mrb[32].mxu1 }
 0x84c   :  { %v1517_v38 = vadd.f32 %v1516_v15, %v4975_v42  ;;  %v1558_v52 = vadd.f32 %v1557_v32, %v4958_v34  ;;  %v1518_v53 = vpop.f32.mrb[33].mxu0  ;;  %v1559_v56 = vpop.f32.mrb[33].mxu1 }
 0x84d   :  { %v1519_v60 = vadd.f32 %v1518_v53, %v4977_v45  ;;  %v1560_v46 = vadd.f32 %v1559_v56, %v4960_v48  ;;  %v1520_v54 = vpop.f32.mrb[34].mxu0  ;;  %v1561_v35 = vpop.f32.mrb[34].mxu1 }
 0x84e   :  { %v1564_v55 = vadd.f32 %v1517_v38, %v4711_v18  ;;  %v1521_v33 = vpop.f32.mrb[35].mxu0  ;;  %v1562_v31 = vpop.f32.mrb[35].mxu1  ;;  %v1566_v34 = vadd.f32 %v1558_v52, %v4717_v49 }
 0x84f   :  { %v1565_v29 = vadd.f32 %v1519_v60, %v4713_v21  ;;  %v1567_v42 = vadd.f32 %v1560_v46, %v4719_v51 }
 0x850   :  { %v3235_v30 = vmul.f32 -1.442695, %v1564_v55  ;;  %v3237_v15 = vmul.f32 -1.442695, %v1566_v34  ;;  %v5104_v34 = vld [vmem:[#allocation7 + $0x24] ss:$16 sps:$4 sm:$0xff]  }
 0x851   :  { %v3236_v25 = vmul.f32 -1.442695, %v1565_v29  ;;  %6434 = vst [vmem:[#allocation20_spill] sm:$0xff] %v5104_v34 }
 0x852   :  { %3848 = vpow2.f32 %v3235_v30 }
 0x853   :  { %3850 = vpow2.f32 %v3236_v25 }
 0x854   :  { %3852 = vtanh.f32 %v1567_v42  ;;  %v5107_v42 = vld [vmem:[#allocation5 + $0x8] ss:$16 sps:$4 sm:$0xff]  }
 0x855   :  { %3854 = vpow2.f32 %v3237_v15  ;;  %6435 = vst [vmem:[#allocation42_spill] sm:$0xff] %v5107_v42  ;;  %v5110_v15 = vld [vmem:[#allocation5 + $0x2c] ss:$16 sps:$4 sm:$0xff]  }
 0x856   :  { %6436 = vst [vmem:[#allocation44_spill] sm:$0xff] %v5110_v15 }
 0x85c   :  { %v3849_v45 = vpop.eup %3848 }
 0x85d   :  { %v1577_v32 = vadd.f32 1.0, %v3849_v45  ;;  %v3851_v48 = vpop.eup %3850  ;;  %v5114_v45 = vld [vmem:[#allocation7 + $0x20] ss:$16 sps:$4 sm:$0xff]  }
 0x85e   :  { %v1578_v35 = vadd.f32 1.0, %v3851_v48  ;;  %v3853_v31 = vpop.eup %3852  ;;  %6437 = vst [vmem:[#allocation21_spill] sm:$0xff] %v5114_v45  ;;  %v5120_v48 = vld [vmem:[#allocation5 + $0x28] ss:$16 sps:$4 sm:$0xff]  }
 0x85f   :  { %3856 = vrcp.f32 %v1577_v32  ;;  %v3855_v33 = vpop.eup %3854  ;;  %v5117_v32 = vld [vmem:[#allocation7 + $0x44] ss:$16 sps:$4 sm:$0xff]   ;;  %6439 = vst [vmem:[#allocation46_spill] sm:$0xff] %v5120_v48 }
 0x860   :  { %3858 = vrcp.f32 %v1578_v35  ;;  %v1579_v30 = vadd.f32 1.0, %v3855_v33  ;;  %6438 = vst [vmem:[#allocation22_spill] sm:$0xff] %v5117_v32  ;;  %v5123_v35 = vld [vmem:[#allocation5 + $0x4c] ss:$16 sps:$4 sm:$0xff]   ;;  %v5129_v33 = vld [vmem:[#allocation7 + $0x64] ss:$16 sps:$4 sm:$0xff]  }
 0x861   :  { %6440 = vst [vmem:[#allocation48_spill] sm:$0xff] %v5123_v35  ;;  %6442 = vst [vmem:[#allocation24_spill] sm:$0xff] %v5129_v33 }
 0x862   :  { %3860 = vrcp.f32 %v1579_v30  ;;  %v5141_v30 = vld [vmem:[#allocation7 + $0x84] ss:$16 sps:$4 sm:$0xff]  }
 0x863   :  { %6446 = vst [vmem:[#allocation26_spill] sm:$0xff] %v5141_v30 }
 0x869   :  { %v3857_v54 = vpop.eup %3856 }
 0x86a   :  { %v1588_v55 = vmul.f32 %v3857_v54, %v3853_v31  ;;  %v3859_v29 = vpop.eup %3858  ;;  %v5126_v31 = vld [vmem:[#allocation7 + $0x40] ss:$16 sps:$4 sm:$0xff]   ;;  %v5132_v54 = vld [vmem:[#allocation5 + $0x48] ss:$16 sps:$4 sm:$0xff]  }
 0x86b   :  { %v1587_v25 = vmul.f32 %v3859_v29, %v4902_v28  ;;  %v5100_v28 = vld [vmem:[#allocation7] ss:$16 sps:$4 sm:$0xff]   ;;  %6441 = vst [vmem:[#allocation23_spill] sm:$0xff] %v5126_v31  ;;  %6443 = vst [vmem:[#allocation50_spill] sm:$0xff] %v5132_v54 }
 0x86c   :  { %v3861_v53 = vpop.eup %3860  ;;  %6433 = vst [vmem:[#allocation19_spill] sm:$0xff] %v5100_v28  ;;  %v5138_v29 = vld [vmem:[#allocation7 + $0x60] ss:$16 sps:$4 sm:$0xff]  }
 0x86d   :  { %v5091_v38 = vadd.f32 %v1588_v55, %v1587_v25  ;;  %v5135_v55 = vld [vmem:[#allocation5 + $0x6c] ss:$16 sps:$4 sm:$0xff]   ;;  %6445 = vst [vmem:[#allocation25_spill] sm:$0xff] %v5138_v29  ;;  %v5144_v25 = vld [vmem:[#allocation5 + $0x68] ss:$16 sps:$4 sm:$0xff]  }
 0x86e   :  { %6444 = vst [vmem:[#allocation52_spill] sm:$0xff] %v5135_v55  ;;  %6447 = vst [vmem:[#allocation54_spill] sm:$0xff] %v5144_v25 }
 0x86f   :  { %6432 = vst [vmem:[#allocation40_spill] sm:$0xff] %v5091_v38  ;;  %3862 = vtanh.f32 %v5091_v38  ;;  %v1597_v52 = vpack.c.bf16 %v5091_v38, %v5091_v38 }
 0x871   :  { %1631 = vmatprep.mubr.bf16.mxu0 %v1597_v52  ;;  %v5147_v52 = vld [vmem:[#allocation5 + $0x8c] ss:$16 sps:$4 sm:$0xff]  }
 0x872   :  { %6448 = vst [vmem:[#allocation56_spill] sm:$0xff] %v5147_v52 }
 0x879   :  { %v3863_v56 = vpop.eup %3862 }
 0x87a   :  { %v1591_v60 = vmul.f32 %v3863_v56, %v3861_v53  ;;  %v5150_v53 = vld [vmem:[#allocation7 + $0x80] ss:$16 sps:$4 sm:$0xff]   ;;  %v5153_v56 = vld [vmem:[#allocation7 + $0xa4] ss:$16 sps:$4 sm:$0xff]  }
 0x87b   :  { %6449 = vst [vmem:[#allocation27_spill] sm:$0xff] %v5150_v53  ;;  %6450 = vst [vmem:[#allocation28_spill] sm:$0xff] %v5153_v56 }
 0x87c   :  { %1593 = vst [vmem:[#allocation8 + $0x8] sm:$0xf] %v1591_v60  ;;  %v5096_v46 = vpack.c.bf16 %v1591_v60, %v1591_v60  ;;  %v5156_v60 = vld [vmem:[#allocation5 + $0x88] ss:$16 sps:$4 sm:$0xff]  }
 0x87d   :  { %6451 = vst [vmem:[#allocation58_spill] sm:$0xff] %v5156_v60 }
 0x87e   :  { %1632 = vmatmul.mubr.bf16.vlgmr.msra.gmra.mrb[36].mxu0 %v5096_v46  ;;  %1753 = vmatmul.mubr.bf16.vlgmr.msra.gmra.mrb[40].mxu1 %v5096_v46 }
 0x87f   :  { %1680 = vmatpush1.bf16.msra.mxu0 %v5100_v28  ;;  %1711 = vmatprep.mubr.bf16.mxu0 %v6335_v12 }
 0x880   :  { %1681 = vmatprep.subr.bf16.mxu0 %v5104_v34  ;;  %1829 = vmatpush1.bf16.msra.mxu1 %v5107_v42 }
 0x881   :  { %1830 = vmatprep.subr.bf16.mxu1 %v5110_v15  ;;  %1860 = vmatprep.mubr.bf16.mxu1 %v6335_v12 }
 0x883   :  { %1682 = vmatpush1.bf16.msra.mxu0 %v5114_v45 }
 0x884   :  { %1683 = vmatprep.subr.bf16.mxu0 %v5117_v32  ;;  %1831 = vmatpush1.bf16.msra.mxu1 %v5120_v48 }
 0x885   :  { %1832 = vmatprep.subr.bf16.mxu1 %v5123_v35 }
 0x887   :  { %1684 = vmatpush1.bf16.msra.mxu0 %v5126_v31 }
 0x888   :  { %1685 = vmatprep.subr.bf16.mxu0 %v5129_v33  ;;  %1833 = vmatpush1.bf16.msra.mxu1 %v5132_v54 }
 0x889   :  { %1834 = vmatprep.subr.bf16.mxu1 %v5135_v55  ;;  %v5234_v55 = vld [vmem:[#allocation5 + $0xc0] ss:$16 sps:$4 sm:$0xff]  }
 0x88a   :  { %6476 = vst [vmem:[#allocation66_spill] sm:$0xff] %v5234_v55 }
 0x88b   :  { %1686 = vmatpush1.bf16.msra.mxu0 %v5138_v29  ;;  %v5228_v29 = vld [vmem:[#allocation5 + $0xa0] ss:$16 sps:$4 sm:$0xff]  }
 0x88c   :  { %1687 = vmatprep.subr.bf16.mxu0 %v5141_v30  ;;  %1835 = vmatpush1.bf16.msra.mxu1 %v5144_v25  ;;  %v5159_v30 = vld [vmem:[#allocation5 + $0xac] ss:$16 sps:$4 sm:$0xff]   ;;  %v5162_v25 = vld [vmem:[#allocation7 + $0xa0] ss:$16 sps:$4 sm:$0xff]   ;;  %6474 = vst [vmem:[#allocation64_spill] sm:$0xff] %v5228_v29 }
 0x88d   :  { %1836 = vmatprep.subr.bf16.mxu1 %v5147_v52  ;;  %6452 = vst [vmem:[#allocation29_spill] sm:$0xff] %v5159_v30  ;;  %6453 = vst [vmem:[#allocation31_spill] sm:$0xff] %v5162_v25  ;;  %v5165_v52 = vld [vmem:[#allocation7 + $0xc4] ss:$16 sps:$4 sm:$0xff]  }
 0x88e   :  { %6454 = vst [vmem:[#allocation33_spill] sm:$0xff] %v5165_v52 }
 0x88f   :  { %1688 = vmatpush1.bf16.msra.mxu0 %v5150_v53  ;;  %v5168_v53 = vld [vmem:[#allocation5 + $0xa8] ss:$16 sps:$4 sm:$0xff]  }
 0x890   :  { %1689 = vmatprep.subr.bf16.mxu0 %v5153_v56  ;;  %1837 = vmatpush1.bf16.msra.mxu1 %v5156_v60  ;;  %6455 = vst [vmem:[#allocation35_spill] sm:$0xff] %v5168_v53  ;;  %v5171_v56 = vld [vmem:[#allocation5 + $0xcc] ss:$16 sps:$4 sm:$0xff]   ;;  %v5174_v60 = vld [vmem:[#allocation7 + $0xc0] ss:$16 sps:$4 sm:$0xff]  }
 0x891   :  { %1838 = vmatprep.subr.bf16.mxu1 %v5159_v30  ;;  %6456 = vst [vmem:[#allocation37_spill] sm:$0xff] %v5171_v56  ;;  %6457 = vst [vmem:[#allocation39_spill] sm:$0xff] %v5174_v60  ;;  %v5177_v30 = vld [vmem:[#allocation7 + $0xe4] ss:$16 sps:$4 sm:$0xff]  }
 0x892   :  { %6458 = vst [vmem:[#allocation41_spill] sm:$0xff] %v5177_v30 }
 0x893   :  { %1690 = vmatpush1.bf16.msra.mxu0 %v5162_v25  ;;  %v5180_v25 = vld [vmem:[#allocation5 + $0xc8] ss:$16 sps:$4 sm:$0xff]  }
 0x894   :  { %1691 = vmatprep.subr.bf16.mxu0 %v5165_v52  ;;  %1839 = vmatpush1.bf16.msra.mxu1 %v5168_v53  ;;  %6459 = vst [vmem:[#allocation43_spill] sm:$0xff] %v5180_v25  ;;  %v5183_v52 = vld [vmem:[#allocation5 + $0xec] ss:$16 sps:$4 sm:$0xff]   ;;  %v5186_v53 = vld [vmem:[#allocation7 + $0xe0] ss:$16 sps:$4 sm:$0xff]  }
 0x895   :  { %1840 = vmatprep.subr.bf16.mxu1 %v5171_v56  ;;  %6460 = vst [vmem:[#allocation45_spill] sm:$0xff] %v5183_v52  ;;  %6461 = vst [vmem:[#allocation47_spill] sm:$0xff] %v5186_v53  ;;  %v5189_v56 = vld [vmem:[#allocation5 + $0x4] ss:$16 sps:$4 sm:$0xff]  }
 0x896   :  { %6462 = vst [vmem:[#allocation49_spill] sm:$0xff] %v5189_v56 }
 0x897   :  { %1692 = vmatpush1.bf16.msra.mxu0 %v5174_v60  ;;  %v5192_v60 = vld [vmem:[#allocation5 + $0xe8] ss:$16 sps:$4 sm:$0xff]  }
 0x898   :  { %1693 = vmatprep.subr.bf16.mxu0 %v5177_v30  ;;  %1841 = vmatpush1.bf16.msra.mxu1 %v5180_v25  ;;  %6463 = vst [vmem:[#allocation51_spill] sm:$0xff] %v5192_v60  ;;  %v5197_v25 = vld [vmem:[#allocation5] ss:$16 sps:$4 sm:$0xff]  }
 0x899   :  { %1842 = vmatprep.subr.bf16.mxu1 %v5183_v52  ;;  %6464 = vst [vmem:[#allocation53_spill] sm:$0xff] %v5197_v25  ;;  %v5201_v52 = vld [vmem:[#allocation5 + $0x24] ss:$16 sps:$4 sm:$0xff]  }
 0x89a   :  { %6465 = vst [vmem:[#allocation55_spill] sm:$0xff] %v5201_v52 }
 0x89b   :  { %1694 = vmatpush1.bf16.msra.mxu0 %v5186_v53  ;;  %v5204_v53 = vld [vmem:[#allocation5 + $0x20] ss:$16 sps:$4 sm:$0xff]  }
 0x89c   :  { %1787 = vmatprep.subr.bf16.mxu0 %v5189_v56  ;;  %1843 = vmatpush1.bf16.msra.mxu1 %v5192_v60  ;;  %6466 = vst [vmem:[#allocation57_spill] sm:$0xff] %v5204_v53  ;;  %v5207_v56 = vld [vmem:[#allocation5 + $0x44] ss:$16 sps:$4 sm:$0xff]   ;;  %v5210_v60 = vld [vmem:[#allocation5 + $0x40] ss:$16 sps:$4 sm:$0xff]  }
 0x89d   :  { %3586 = vmatprep.subr.bf16.mxu1 %v6334_v57  ;;  %6467 = vst [vmem:[#allocation12_spill] sm:$0xff] %v5207_v56  ;;  %6468 = vst [vmem:[#allocation30_spill] sm:$0xff] %v5210_v60 }
 0x89e   :  { %1712 = vmatmul.mubr.bf16.vlgmr.msra.gmra.mrb[40].mxu0 %v5096_v46  ;;  %v5213_v46 = vld [vmem:[#allocation5 + $0x64] ss:$16 sps:$4 sm:$0xff]  }
 0x89f   :  { %1788 = vmatpush1.bf16.msra.mxu0 %v5197_v25  ;;  %1819 = vmatprep.mubr.bf16.mxu0 %v6335_v12  ;;  %6469 = vst [vmem:[#allocation59_spill] sm:$0xff] %v5213_v46  ;;  %v5216_v25 = vld [vmem:[#allocation5 + $0x60] ss:$16 sps:$4 sm:$0xff]  }
 0x8a0   :  { %1789 = vmatprep.subr.bf16.mxu0 %v5201_v52  ;;  %6470 = vst [vmem:[#allocation60_spill] sm:$0xff] %v5216_v25  ;;  %v5219_v52 = vld [vmem:[#allocation5 + $0x84] ss:$16 sps:$4 sm:$0xff]  }
 0x8a1   :  { %6471 = vst [vmem:[#allocation61_spill] sm:$0xff] %v5219_v52 }
 0x8a3   :  { %1790 = vmatpush1.bf16.msra.mxu0 %v5204_v53  ;;  %v5222_v53 = vld [vmem:[#allocation5 + $0x80] ss:$16 sps:$4 sm:$0xff]  }
 0x8a4   :  { %1791 = vmatprep.subr.bf16.mxu0 %v5207_v56  ;;  %6472 = vst [vmem:[#allocation62_spill] sm:$0xff] %v5222_v53  ;;  %v5225_v56 = vld [vmem:[#allocation5 + $0xa4] ss:$16 sps:$4 sm:$0xff]  }
 0x8a5   :  { %6473 = vst [vmem:[#allocation63_spill] sm:$0xff] %v5225_v56 }
 0x8a7   :  { %1792 = vmatpush1.bf16.msra.mxu0 %v5210_v60  ;;  %v1673_v60 = vpop.f32.mrb[36].mxu1 }
 0x8a8   :  { %1793 = vmatprep.subr.bf16.mxu0 %v5213_v46  ;;  %v3584_v30 = vpop.f32.mrb[37].mxu1 }
 0x8a9   :  { %v1676_v46 = vpop.f32.mrb[38].mxu1 }
 0x8ab   :  { %1794 = vmatpush1.bf16.msra.mxu0 %v5216_v25  ;;  %v5231_v25 = vld [vmem:[#allocation5 + $0xc4] ss:$16 sps:$4 sm:$0xff]  }
 0x8ac   :  { %1795 = vmatprep.subr.bf16.mxu0 %v5219_v52  ;;  %6475 = vst [vmem:[#allocation65_spill] sm:$0xff] %v5231_v25  ;;  %v3585_v52 = vpop.f32.mrb[39].mxu1 }
 0x8af   :  { %1796 = vmatpush1.bf16.msra.mxu0 %v5222_v53  ;;  %v5237_v53 = vld [vmem:[#allocation5 + $0xe4] ss:$16 sps:$4 sm:$0xff]  }
 0x8b0   :  { %1797 = vmatprep.subr.bf16.mxu0 %v5225_v56  ;;  %6477 = vst [vmem:[#allocation67_spill] sm:$0xff] %v5237_v53  ;;  %v5240_v56 = vld [vmem:[#allocation5 + $0xe0] ss:$16 sps:$4 sm:$0xff]  }
 0x8b1   :  { %6478 = vst [vmem:[#allocation68_spill] sm:$0xff] %v5240_v56 }
 0x8b3   :  { %1798 = vmatpush1.bf16.msra.mxu0 %v5228_v29 }
 0x8b4   :  { %1799 = vmatprep.subr.bf16.mxu0 %v5231_v25 }
 0x8b7   :  { %1800 = vmatpush1.bf16.msra.mxu0 %v5234_v55 }
 0x8b8   :  { %1801 = vmatprep.subr.bf16.mxu0 %v5237_v53 }
 0x8bb   :  { %1802 = vmatpush1.bf16.msra.mxu0 %v5240_v56 }
 0x8bc   :  { %3382 = vmatprep.subr.bf16.mxu0 %v6420_v26 }
 0x951   :  { %v3367_v30 = vpop.f32.mrb[36].mxu0  ;;  %v5244_v46 = vpop.f32.mrb[40].mxu1 }
 0x952   :  { %v3368_v29 = vpop.f32.mrb[37].mxu0  ;;  %v5246_v25 = vpop.f32.mrb[41].mxu1 }
 0x953   :  { %v3369_v52 = vadd.f32 %v3368_v29, %v3367_v30  ;;  %v3370_v54 = vpop.f32.mrb[38].mxu0  ;;  %v1758_v33 = vpop.f32.mrb[42].mxu1 }
 0x954   :  { %v3371_v55 = vpop.f32.mrb[39].mxu0  ;;  %v1759_v31 = vpop.f32.mrb[43].mxu1 }
 0x955   :  { %v1634_v35 = vadd.f32 %v4965_v58, %v3369_v52 }
 0x957   :  { %v1674_v53 = vadd.f32 %v1673_v60, %v1634_v35 }
 0x959   :  { %3864 = vtanh.f32 %v1674_v53 }
 0x963   :  { %v3865_v48 = vpop.eup %3864 }
 0x964   :  { %v1762_v56 = vmul.f32 %v4971_v36, %v3865_v48 }
 0x966   :  { %v1763_v26 = vsel %vm667_vm1, %v1762_v56, 0.0 }
 0x967   :  { %1764 = vadd.xlane.f32.xlu1 %v1763_v26 }
 0x971   :  { %v5251_v32 = vpop.f32.mrb[40].mxu0 }
 0x972   :  { %v5253_v45 = vpop.f32.mrb[41].mxu0 }
 0x973   :  { %v1717_v15 = vpop.f32.mrb[42].mxu0 }
 0x974   :  { %v1718_v29 = vpop.f32.mrb[43].mxu0 }
 0x9f4   :  { %v1765_v54 = vpop.xlane.xlu1 %1764 }
 0x9f5   :  { %v1766_v33 = vsel %vm667_vm1, %v1765_v54, -inf }
 0x9f6   :  { %v1767_v31 = vrot.slane %v1766_v33, 4 }
 0x9f8   :  { %v1768_v55 = vmax.f32 %v1766_v33, %v1767_v31 }
 0x9fa   :  { %v1769_v30 = vrot.slane %v1768_v55, 2 }
 0x9fc   :  { %v1770_v35 = vmax.f32 %v1768_v55, %v1769_v30 }
 0x9fe   :  { %v1771_v53 = vrot.slane %v1770_v35, 1 }
 0xa00   :  { %v1772_v60 = vmax.f32 %v1770_v35, %v1771_v53 }
 0xa02   :  { %v1773_v52 = vsub.f32 %v1765_v54, %v1772_v60 }
 0xa04   :  { %v1774_v48 = vmul.f32 1.442695, %v1773_v52 }
 0xa06   :  { %3866 = vpow2.f32 %v1774_v48 }
 0xa10   :  { %v3867_v56 = vpop.eup %3866 }
 0xa11   :  { %v1776_v26 = vsel %vm667_vm1, %v3867_v56, 0.0 }
 0xa12   :  { %v1777_v36 = vrot.slane %v1776_v26, 4 }
 0xa14   :  { %v1778_v58 = vadd.f32 %v1777_v36, %v1776_v26 }
 0xa16   :  { %v1779_v42 = vrot.slane %v1778_v58, 2 }
 0xa18   :  { %v1780_v15 = vadd.f32 %v1779_v42, %v1778_v58 }
 0xa1a   :  { %v1781_v29 = vrot.slane %v1780_v15, 1 }
 0xa1c   :  { %v1782_v34 = vadd.f32 %v1781_v29, %v1780_v15 }
 0xa1e   :  { %3868 = vrcp.f32 %v1782_v34 }
 0xa28   :  { %v3869_v28 = vpop.eup %3868 }
 0xa29   :  { %v1784_v38 = vmul.f32 %v3869_v28, %v3867_v56  ;;  %v6487_v56 = vld [vmem:[#allocation40_spill] sm:$0xff] }
 0xa2b   :  { %v1785_v33 = vmul.f32 %v5029_v41, %v1784_v38 }
 0xa2d   :  { %v1786_v31 = vpack.c.bf16 %v1785_v33, %v1785_v33 }
 0xa2f   :  { %1820 = vmatmul.mubr.bf16.vlgmr.msra.gmra.mrb[44].mxu0 %v1786_v31  ;;  %1861 = vmatmul.mubr.bf16.vlgmr.msra.gmra.mrb[44].mxu1 %v1786_v31 }
 0xa30   :  { %3587 = vmatpush3.bf16.msra.mxu1 %v4795_v6  ;;  %3383 = vmatpush3.bf16.msra.mxu0 %v4798_v7  ;;  %v5295_v6 = vld [vmem:[%s6007_s0 + $0x10] sm:$0xf] }
 0xa31   :  { %3588 = vmatprep.subr.bf16.mxu1 %v6334_v57  ;;  %3602 = vmatprep.mubr.msk.bf16.mxu1 %vm4257_vm0, %v6334_v57  ;;  %v1903_v7 = vpack.c.bf16 %v5295_v6, %v5295_v6 }
 0xa32   :  { %3384 = vmatprep.subr.bf16.mxu0 %v4804_v43  ;;  %v6479_v43 = vld [vmem:[#allocation16_spill] sm:$0xff] }
 0xa34   :  { %3589 = vmatpush3.bf16.msra.mxu1 %v4807_v10  ;;  %3385 = vmatpush3.bf16.msra.mxu0 %v4810_v39  ;;  %v6480_v10 = vld [vmem:[#allocation34_spill] sm:$0xff]  ;;  %v6481_v39 = vld [vmem:[#allocation36_spill] sm:$0xff] }
 0xa35   :  { %3590 = vmatprep.subr.bf16.mxu1 %v6334_v57  ;;  %3386 = vmatprep.subr.bf16.mxu0 %v4814_v40  ;;  %v6482_v40 = vld [vmem:[#allocation17_spill] sm:$0xff] }
 0xa38   :  { %3591 = vmatpush3.bf16.msra.mxu1 %v4817_v44  ;;  %3387 = vmatpush3.bf16.msra.mxu0 %v4820_v5  ;;  %v6483_v44 = vld [vmem:[#allocation18_spill] sm:$0xff] }
 0xa39   :  { %3592 = vmatprep.subr.bf16.mxu1 %v6334_v57  ;;  %3388 = vmatprep.subr.bf16.mxu0 %v4824_v3  ;;  %v6484_v5 = vld [vmem:[#allocation38_spill] sm:$0xff] }
 0xa3a   :  { %v6485_v3 = vld [vmem:[#allocation14_spill] sm:$0xff] }
 0xa3c   :  { %3593 = vmatpush3.bf16.msra.mxu1 %v4827_v11  ;;  %3389 = vmatpush3.bf16.msra.mxu0 %v4830_v17  ;;  %v6486_v11 = vld [vmem:[#allocation15_spill] sm:$0xff] }
 0xa3d   :  { %3594 = vmatprep.subr.bf16.mxu1 %v6334_v57  ;;  %3390 = vmatprep.subr.bf16.mxu0 %v4834_v19 }
 0xa40   :  { %3595 = vmatpush3.bf16.msra.mxu1 %v4837_v0  ;;  %3391 = vmatpush3.bf16.msra.mxu0 %v4840_v1 }
 0xa41   :  { %3596 = vmatprep.subr.bf16.mxu1 %v6334_v57  ;;  %3392 = vmatprep.subr.bf16.mxu0 %v4844_v13 }
 0xa44   :  { %3597 = vmatpush3.bf16.msra.mxu1 %v4847_v14  ;;  %3393 = vmatpush3.bf16.msra.mxu0 %v4850_v9 }
 0xa45   :  { %3598 = vmatprep.subr.bf16.mxu1 %v6334_v57  ;;  %3394 = vmatprep.subr.bf16.mxu0 %v4854_v47 }
 0xa48   :  { %3599 = vmatpush3.bf16.msra.mxu1 %v4857_v8  ;;  %3395 = vmatpush3.bf16.msra.mxu0 %v6423_v4 }
 0xa49   :  { %3600 = vmatprep.subr.bf16.mxu1 %v6334_v57  ;;  %3396 = vmatprep.subr.bf16.mxu0 %v5011_v61 }
 0xa4c   :  { %3601 = vmatpush3.bf16.msra.mxu1 %v5014_v59  ;;  %3397 = vmatpush3.bf16.msra.mxu0 %v5017_v62 }
 0xa4d   :  { %2025 = vmatprep.subr.bf16.mxu1 %v5020_v63  ;;  %1984 = vmatprep.subr.bf16.mxu0 %v5023_v37 }
 0xa4f   :  { %3603 = vmatmul.mubr.bf16.vlgmr.msra.gmra.mrb[48].mxu1 %v1903_v7 }
 0xa50   :  { %2026 = vmatpush1.bf16.msra.mxu1 %v5033_v50  ;;  %2057 = vmatprep.mubr.bf16.mxu1 %v6335_v12 }
 0xa51   :  { %2027 = vmatprep.subr.bf16.mxu1 %v5037_v2 }
 0xa54   :  { %2028 = vmatpush1.bf16.msra.mxu1 %v5040_v27 }
 0xa55   :  { %2029 = vmatprep.subr.bf16.mxu1 %v5043_v16 }
 0xa58   :  { %2030 = vmatpush1.bf16.msra.mxu1 %v5046_v22 }
 0xa59   :  { %2031 = vmatprep.subr.bf16.mxu1 %v5049_v20 }
 0xa5c   :  { %2032 = vmatpush1.bf16.msra.mxu1 %v5052_v23 }
 0xa5d   :  { %2033 = vmatprep.subr.bf16.mxu1 %v5055_v24 }
 0xa60   :  { %2034 = vmatpush1.bf16.msra.mxu1 %v6479_v43 }
 0xa61   :  { %2035 = vmatprep.subr.bf16.mxu1 %v6480_v10 }
 0xa64   :  { %2036 = vmatpush1.bf16.msra.mxu1 %v6481_v39 }
 0xa65   :  { %2037 = vmatprep.subr.bf16.mxu1 %v6482_v40 }
 0xa68   :  { %2038 = vmatpush1.bf16.msra.mxu1 %v6483_v44 }
 0xa69   :  { %2039 = vmatprep.subr.bf16.mxu1 %v6484_v5 }
 0xa6c   :  { %2040 = vmatpush1.bf16.msra.mxu1 %v6485_v3 }
 0xa6d   :  { %2133 = vmatprep.subr.bf16.mxu1 %v6486_v11 }
 0xb02   :  { %v1821_v17 = vpop.f32.mrb[44].mxu0  ;;  %v1862_v19 = vpop.f32.mrb[44].mxu1 }
 0xb03   :  { %v1822_v0 = vadd.f32 %v1821_v17, %v5251_v32  ;;  %v1863_v1 = vadd.f32 %v1862_v19, %v5244_v46  ;;  %v1823_v13 = vpop.f32.mrb[45].mxu0  ;;  %v1864_v14 = vpop.f32.mrb[45].mxu1  ;;  %v6488_v19 = vld [vmem:[#allocation19_spill] sm:$0xff] }
 0xb04   :  { %v1824_v9 = vadd.f32 %v1823_v13, %v5253_v45  ;;  %v1865_v47 = vadd.f32 %v1864_v14, %v5246_v25  ;;  %v1825_v8 = vpop.f32.mrb[46].mxu0  ;;  %v1866_v58 = vpop.f32.mrb[46].mxu1  ;;  %v6491_v13 = vld [vmem:[#allocation44_spill] sm:$0xff]  ;;  %v6492_v14 = vld [vmem:[#allocation21_spill] sm:$0xff] }
 0xb05   :  { %v1869_v36 = vadd.f32 %v1822_v0, %v4711_v18  ;;  %v1826_v4 = vpop.f32.mrb[47].mxu0  ;;  %v1867_v41 = vpop.f32.mrb[47].mxu1  ;;  %v1871_v42 = vadd.f32 %v1863_v1, %v4717_v49  ;;  %v6489_v0 = vld [vmem:[#allocation20_spill] sm:$0xff]  ;;  %v6490_v1 = vld [vmem:[#allocation42_spill] sm:$0xff]  ;;  %v6496_v58 = vld [vmem:[#allocation23_spill] sm:$0xff] }
 0xb06   :  { %v1870_v38 = vadd.f32 %v1824_v9, %v4713_v21  ;;  %v1872_v32 = vadd.f32 %v1865_v47, %v4719_v51  ;;  %v6493_v9 = vld [vmem:[#allocation22_spill] sm:$0xff]  ;;  %v6495_v8 = vld [vmem:[#allocation48_spill] sm:$0xff] }
 0xb07   :  { %v3239_v28 = vmul.f32 -1.442695, %v1869_v36  ;;  %v3241_v46 = vmul.f32 -1.442695, %v1871_v42  ;;  %v6494_v47 = vld [vmem:[#allocation46_spill] sm:$0xff]  ;;  %v6497_v36 = vld [vmem:[#allocation24_spill] sm:$0xff] }
 0xb08   :  { %v3240_v34 = vmul.f32 -1.442695, %v1870_v38  ;;  %v6498_v4 = vld [vmem:[#allocation50_spill] sm:$0xff]  ;;  %v6499_v41 = vld [vmem:[#allocation52_spill] sm:$0xff]  ;;  %v6500_v38 = vld [vmem:[#allocation25_spill] sm:$0xff] }
 0xb09   :  { %3870 = vpow2.f32 %v3239_v28  ;;  %v6501_v28 = vld [vmem:[#allocation26_spill] sm:$0xff]  ;;  %v6503_v42 = vld [vmem:[#allocation56_spill] sm:$0xff] }
 0xb0a   :  { %3872 = vpow2.f32 %v3240_v34  ;;  %v6502_v34 = vld [vmem:[#allocation54_spill] sm:$0xff] }
 0xb0b   :  { %3874 = vtanh.f32 %v1872_v32  ;;  %v6504_v32 = vld [vmem:[#allocation27_spill] sm:$0xff] }
 0xb0c   :  { %3876 = vpow2.f32 %v3241_v46  ;;  %v6505_v46 = vld [vmem:[#allocation28_spill] sm:$0xff] }
 0xb13   :  { %v3871_v45 = vpop.eup %3870 }
 0xb14   :  { %v1882_v54 = vadd.f32 1.0, %v3871_v45  ;;  %v3873_v25 = vpop.eup %3872  ;;  %v6506_v45 = vld [vmem:[#allocation58_spill] sm:$0xff] }
 0xb15   :  { %v1883_v55 = vadd.f32 1.0, %v3873_v25  ;;  %v3875_v30 = vpop.eup %3874  ;;  %v6508_v25 = vld [vmem:[#allocation31_spill] sm:$0xff] }
 0xb16   :  { %3878 = vrcp.f32 %v1882_v54  ;;  %v3877_v35 = vpop.eup %3876  ;;  %v6507_v54 = vld [vmem:[#allocation29_spill] sm:$0xff] }
 0xb17   :  { %3880 = vrcp.f32 %v1883_v55  ;;  %v1884_v48 = vadd.f32 1.0, %v3877_v35  ;;  %v6509_v55 = vld [vmem:[#allocation33_spill] sm:$0xff] }
 0xb18   :  { %v6511_v35 = vld [vmem:[#allocation37_spill] sm:$0xff] }
 0xb19   :  { %3882 = vrcp.f32 %v1884_v48  ;;  %v6515_v48 = vld [vmem:[#allocation45_spill] sm:$0xff] }
 0xb20   :  { %v3879_v53 = vpop.eup %3878 }
 0xb21   :  { %v1893_v60 = vmul.f32 %v3879_v53, %v3875_v30  ;;  %v3881_v52 = vpop.eup %3880  ;;  %v6510_v30 = vld [vmem:[#allocation35_spill] sm:$0xff] }
 0xb22   :  { %v1892_v26 = vmul.f32 %v3881_v52, %v6487_v56  ;;  %v6512_v53 = vld [vmem:[#allocation39_spill] sm:$0xff] }
 0xb23   :  { %v3883_v33 = vpop.eup %3882  ;;  %v6514_v52 = vld [vmem:[#allocation43_spill] sm:$0xff] }
 0xb24   :  { %v5325_v15 = vadd.f32 %v1893_v60, %v1892_v26  ;;  %v6513_v60 = vld [vmem:[#allocation41_spill] sm:$0xff]  ;;  %v6516_v56 = vld [vmem:[#allocation47_spill] sm:$0xff] }
 0xb25   :  { %v6517_v26 = vld [vmem:[#allocation49_spill] sm:$0xff] }
 0xb26   :  { %3884 = vtanh.f32 %v5325_v15  ;;  %v1902_v29 = vpack.c.bf16 %v5325_v15, %v5325_v15 }
 0xb28   :  { %1936 = vmatprep.mubr.bf16.mxu0 %v1902_v29  ;;  %v6518_v29 = vld [vmem:[#allocation51_spill] sm:$0xff] }
 0xb30   :  { %v3885_v31 = vpop.eup %3884 }
 0xb31   :  { %v1896_v7 = vmul.f32 %v3885_v31, %v3883_v33  ;;  %v6519_v33 = vld [vmem:[#allocation53_spill] sm:$0xff]  ;;  %v6520_v31 = vld [vmem:[#allocation55_spill] sm:$0xff] }
 0xb33   :  { %1898 = vst [vmem:[#allocation8 + $0xc] sm:$0xf] %v1896_v7  ;;  %v1901_v17 = vpack.c.bf16 %v1896_v7, %v1896_v7  ;;  %v6521_v7 = vld [vmem:[#allocation57_spill] sm:$0xff] }
 0xb35   :  { %1937 = vmatmul.mubr.bf16.vlgmr.msra.gmra.mrb[48].mxu0 %v1901_v17  ;;  %2058 = vmatmul.mubr.bf16.vlgmr.msra.gmra.mrb[52].mxu1 %v1901_v17 }
 0xb36   :  { %1985 = vmatpush1.bf16.msra.mxu0 %v6488_v19  ;;  %2016 = vmatprep.mubr.bf16.mxu0 %v6335_v12 }
 0xb37   :  { %1986 = vmatprep.subr.bf16.mxu0 %v6489_v0  ;;  %2134 = vmatpush1.bf16.msra.mxu1 %v6490_v1 }
 0xb38   :  { %2135 = vmatprep.subr.bf16.mxu1 %v6491_v13  ;;  %2165 = vmatprep.mubr.bf16.mxu1 %v6335_v12 }
 0xb3a   :  { %1987 = vmatpush1.bf16.msra.mxu0 %v6492_v14 }
 0xb3b   :  { %1988 = vmatprep.subr.bf16.mxu0 %v6493_v9  ;;  %2136 = vmatpush1.bf16.msra.mxu1 %v6494_v47 }
 0xb3c   :  { %2137 = vmatprep.subr.bf16.mxu1 %v6495_v8 }
 0xb3e   :  { %1989 = vmatpush1.bf16.msra.mxu0 %v6496_v58 }
 0xb3f   :  { %1990 = vmatprep.subr.bf16.mxu0 %v6497_v36  ;;  %2138 = vmatpush1.bf16.msra.mxu1 %v6498_v4 }
 0xb40   :  { %2139 = vmatprep.subr.bf16.mxu1 %v6499_v41 }
 0xb42   :  { %1991 = vmatpush1.bf16.msra.mxu0 %v6500_v38 }
 0xb43   :  { %1992 = vmatprep.subr.bf16.mxu0 %v6501_v28  ;;  %2140 = vmatpush1.bf16.msra.mxu1 %v6502_v34 }
 0xb44   :  { %2141 = vmatprep.subr.bf16.mxu1 %v6503_v42 }
 0xb46   :  { %1993 = vmatpush1.bf16.msra.mxu0 %v6504_v32 }
 0xb47   :  { %1994 = vmatprep.subr.bf16.mxu0 %v6505_v46  ;;  %2142 = vmatpush1.bf16.msra.mxu1 %v6506_v45 }
 0xb48   :  { %2143 = vmatprep.subr.bf16.mxu1 %v6507_v54  ;;  %v6536_v54 = vld [vmem:[#allocation13_spill] sm:$0xff] }
 0xb4a   :  { %1995 = vmatpush1.bf16.msra.mxu0 %v6508_v25 }
 0xb4b   :  { %1996 = vmatprep.subr.bf16.mxu0 %v6509_v55  ;;  %2144 = vmatpush1.bf16.msra.mxu1 %v6510_v30  ;;  %v6531_v30 = vld [vmem:[#allocation66_spill] sm:$0xff] }
 0xb4c   :  { %2145 = vmatprep.subr.bf16.mxu1 %v6511_v35  ;;  %v6529_v35 = vld [vmem:[#allocation64_spill] sm:$0xff] }
 0xb4e   :  { %1997 = vmatpush1.bf16.msra.mxu0 %v6512_v53 }
 0xb4f   :  { %1998 = vmatprep.subr.bf16.mxu0 %v6513_v60  ;;  %2146 = vmatpush1.bf16.msra.mxu1 %v6514_v52  ;;  %v6522_v52 = vld [vmem:[#allocation12_spill] sm:$0xff]  ;;  %v6527_v60 = vld [vmem:[#allocation62_spill] sm:$0xff] }
 0xb50   :  { %2147 = vmatprep.subr.bf16.mxu1 %v6515_v48  ;;  %v6523_v48 = vld [vmem:[#allocation30_spill] sm:$0xff] }
 0xb52   :  { %1999 = vmatpush1.bf16.msra.mxu0 %v6516_v56  ;;  %v6524_v56 = vld [vmem:[#allocation59_spill] sm:$0xff] }
 0xb53   :  { %2092 = vmatprep.subr.bf16.mxu0 %v6517_v26  ;;  %2148 = vmatpush1.bf16.msra.mxu1 %v6518_v29  ;;  %v6525_v26 = vld [vmem:[#allocation60_spill] sm:$0xff]  ;;  %v6526_v29 = vld [vmem:[#allocation61_spill] sm:$0xff] }
 0xb54   :  { %3606 = vmatprep.subr.bf16.mxu1 %v6334_v57 }
 0xb55   :  { %2017 = vmatmul.mubr.bf16.vlgmr.msra.gmra.mrb[52].mxu0 %v1901_v17  ;;  %v6528_v17 = vld [vmem:[#allocation63_spill] sm:$0xff] }
 0xb56   :  { %2093 = vmatpush1.bf16.msra.mxu0 %v6519_v33  ;;  %2124 = vmatprep.mubr.bf16.mxu0 %v6335_v12  ;;  %v1978_v33 = vpop.f32.mrb[48].mxu1 }
 0xb57   :  { %2094 = vmatprep.subr.bf16.mxu0 %v6520_v31  ;;  %v3604_v53 = vpop.f32.mrb[49].mxu1 }
 0xb58   :  { %v1981_v31 = vpop.f32.mrb[50].mxu1 }
 0xb5a   :  { %2095 = vmatpush1.bf16.msra.mxu0 %v6521_v7  ;;  %v6530_v7 = vld [vmem:[#allocation65_spill] sm:$0xff] }
 0xb5b   :  { %2096 = vmatprep.subr.bf16.mxu0 %v6522_v52  ;;  %v3605_v52 = vpop.f32.mrb[51].mxu1 }
 0xb5e   :  { %2097 = vmatpush1.bf16.msra.mxu0 %v6523_v48  ;;  %v6532_v48 = vld [vmem:[#allocation67_spill] sm:$0xff] }
 0xb5f   :  { %2098 = vmatprep.subr.bf16.mxu0 %v6524_v56  ;;  %v6533_v56 = vld [vmem:[#allocation68_spill] sm:$0xff] }
 0xb62   :  { %2099 = vmatpush1.bf16.msra.mxu0 %v6525_v26  ;;  %v5380_v26 = vld [vmem:[#allocation2 + $0x40] sm:$0xff]  }
 0xb63   :  { %2100 = vmatprep.subr.bf16.mxu0 %v6526_v29  ;;  %6534 = vst [vmem:[#allocation16_spill] sm:$0xff] %v5380_v26 }
 0xb66   :  { %2101 = vmatpush1.bf16.msra.mxu0 %v6527_v60 }
 0xb67   :  { %2102 = vmatprep.subr.bf16.mxu0 %v6528_v17 }
 0xb6a   :  { %2103 = vmatpush1.bf16.msra.mxu0 %v6529_v35 }
 0xb6b   :  { %2104 = vmatprep.subr.bf16.mxu0 %v6530_v7 }
 0xb6e   :  { %2105 = vmatpush1.bf16.msra.mxu0 %v6531_v30  ;;  %v6535_v30 = vld [vmem:[#allocation32_spill] sm:$0xff] }
 0xb6f   :  { %2106 = vmatprep.subr.bf16.mxu0 %v6532_v48 }
 0xb72   :  { %2107 = vmatpush1.bf16.msra.mxu0 %v6533_v56 }
 0xb73   :  { %3413 = vmatprep.subr.bf16.mxu0 %v5380_v26 }
 0xc08   :  { %v3398_v60 = vpop.f32.mrb[48].mxu0  ;;  %v5383_v17 = vpop.f32.mrb[52].mxu1 }
 0xc09   :  { %v3399_v53 = vpop.f32.mrb[49].mxu0  ;;  %v5385_v29 = vpop.f32.mrb[53].mxu1 }
 0xc0a   :  { %v3400_v31 = vadd.f32 %v3399_v53, %v3398_v60  ;;  %v3401_v35 = vpop.f32.mrb[50].mxu0  ;;  %v2063_v7 = vpop.f32.mrb[54].mxu1 }
 0xc0b   :  { %v3402_v52 = vpop.f32.mrb[51].mxu0  ;;  %v2064_v55 = vpop.f32.mrb[55].mxu1 }
 0xc0c   :  { %v1939_v25 = vadd.f32 %v6535_v30, %v3400_v31 }
 0xc0e   :  { %v1979_v48 = vadd.f32 %v1978_v33, %v1939_v25 }
 0xc10   :  { %3886 = vtanh.f32 %v1979_v48 }
 0xc1a   :  { %v3887_v56 = vpop.eup %3886 }
 0xc1b   :  { %v2067_v45 = vmul.f32 %v6536_v54, %v3887_v56 }
 0xc1d   :  { %v2068_v26 = vsel %vm667_vm1, %v2067_v45, 0.0 }
 0xc1e   :  { %2069 = vadd.xlane.f32.xlu0 %v2068_v26 }
 0xc28   :  { %v5390_v46 = vpop.f32.mrb[52].mxu0 }
 0xc29   :  { %v5392_v32 = vpop.f32.mrb[53].mxu0 }
 0xc2a   :  { %v2022_v42 = vpop.f32.mrb[54].mxu0 }
 0xc2b   :  { %v2023_v60 = vpop.f32.mrb[55].mxu0 }
 0xcab   :  { %v2070_v35 = vpop.xlane.xlu0 %2069 }
 0xcac   :  { %v2071_v7 = vsel %vm667_vm1, %v2070_v35, -inf }
 0xcad   :  { %v2072_v55 = vrot.slane %v2071_v7, 4 }
 0xcaf   :  { %v2073_v53 = vmax.f32 %v2071_v7, %v2072_v55 }
 0xcb1   :  { %v2074_v30 = vrot.slane %v2073_v53, 2 }
 0xcb3   :  { %v2075_v25 = vmax.f32 %v2073_v53, %v2074_v30  ;;  %v5400_v53 = vld [vmem:[#allocation2] sm:$0xff]   ;;  %v5422_v30 = vld [vmem:[#allocation2 + $0x10] sm:$0xff]  }
 0xcb5   :  { %v2076_v48 = vrot.slane %v2075_v25, 1 }
 0xcb7   :  { %v2077_v33 = vmax.f32 %v2075_v25, %v2076_v48  ;;  %v5426_v25 = vld [vmem:[#allocation2 + $0x58] sm:$0xff]  }
 0xcb8   :  { %v5429_v48 = vld [vmem:[#allocation2 + $0x98] sm:$0xff]  }
 0xcb9   :  { %v2078_v31 = vsub.f32 %v2070_v35, %v2077_v33  ;;  %v5397_v35 = vld [vmem:[#allocation2 + $0x80] sm:$0xff]   ;;  %v5432_v33 = vld [vmem:[#allocation2 + $0x18] sm:$0xff]  }
 0xcbb   :  { %v2079_v54 = vmul.f32 1.442695, %v2078_v31  ;;  %v5436_v31 = vld [vmem:[#allocation2 + $0x60] sm:$0xff]  }
 0xcbd   :  { %3888 = vpow2.f32 %v2079_v54  ;;  %v5439_v54 = vld [vmem:[#allocation2 + $0xa0] sm:$0xff]  }
 0xcc7   :  { %v3889_v45 = vpop.eup %3888 }
 0xcc8   :  { %v2081_v56 = vsel %vm667_vm1, %v3889_v45, 0.0 }
 0xcc9   :  { %v2082_v26 = vrot.slane %v2081_v56, 4 }
 0xccb   :  { %v2083_v52 = vadd.f32 %v2082_v26, %v2081_v56  ;;  %v5446_v56 = vld [vmem:[#allocation2 + $0x68] sm:$0xff]  }
 0xccc   :  { %v5449_v26 = vld [vmem:[#allocation2 + $0xa8] sm:$0xff]  }
 0xccd   :  { %v2084_v34 = vrot.slane %v2083_v52, 2 }
 0xccf   :  { %v2085_v42 = vadd.f32 %v2084_v34, %v2083_v52  ;;  %v5419_v34 = vld [vmem:[#allocation2 + $0x90] sm:$0xff]   ;;  %v5452_v52 = vld [vmem:[#allocation2 + $0x28] sm:$0xff]  }
 0xcd1   :  { %v2086_v60 = vrot.slane %v2085_v42, 1 }
 0xcd3   :  { %v2087_v28 = vadd.f32 %v2086_v60, %v2085_v42  ;;  %v5456_v42 = vld [vmem:[#allocation2 + $0x70] sm:$0xff]  }
 0xcd4   :  { %v5459_v60 = vld [vmem:[#allocation2 + $0xb0] sm:$0xff]  }
 0xcd5   :  { %3890 = vrcp.f32 %v2087_v28  ;;  %v5406_v28 = vld [vmem:[#allocation2 + $0x48] sm:$0xff]  }
 0xcdf   :  { %v3891_v38 = vpop.eup %3890 }
 0xce0   :  { %v2089_v41 = vmul.f32 %v3891_v38, %v3889_v45  ;;  %v5416_v38 = vld [vmem:[#allocation2 + $0x50] sm:$0xff]   ;;  %v5442_v45 = vld [vmem:[#allocation2 + $0x20] sm:$0xff]  }
 0xce2   :  { %v2090_v7 = vmul.f32 %v5295_v6, %v2089_v41  ;;  %v5409_v6 = vld [vmem:[#allocation2 + $0x88] sm:$0xff]  }
 0xce3   :  { %v5412_v41 = vld [vmem:[#allocation2 + $0x8] sm:$0xff]  }
 0xce4   :  { %v2091_v55 = vpack.c.bf16 %v2090_v7, %v2090_v7  ;;  %v5462_v7 = vld [vmem:[#allocation2 + $0x30] sm:$0xff]  }
 0xce5   :  { %6537 = vst [vmem:[#allocation34_spill] sm:$0xff] %v5462_v7 }
 0xce6   :  { %2125 = vmatmul.mubr.bf16.vlgmr.msra.gmra.mrb[56].mxu0 %v2091_v55  ;;  %2166 = vmatmul.mubr.bf16.vlgmr.msra.gmra.mrb[56].mxu1 %v2091_v55  ;;  %v5474_v55 = vld [vmem:[%s6007_s0 + $0x14] sm:$0xf] }
 0xce7   :  { %3607 = vmatpush3.bf16.msra.mxu1 %v5397_v35  ;;  %3414 = vmatpush3.bf16.msra.mxu0 %v5400_v53 }
 0xce8   :  { %3608 = vmatprep.subr.bf16.mxu1 %v6334_v57  ;;  %3622 = vmatprep.mubr.msk.bf16.mxu1 %vm4257_vm0, %v6334_v57 }
 0xce9   :  { %3415 = vmatprep.subr.bf16.mxu0 %v5406_v28 }
 0xceb   :  { %3609 = vmatpush3.bf16.msra.mxu1 %v5409_v6  ;;  %3416 = vmatpush3.bf16.msra.mxu0 %v5412_v41 }
 0xcec   :  { %3610 = vmatprep.subr.bf16.mxu1 %v6334_v57  ;;  %3417 = vmatprep.subr.bf16.mxu0 %v5416_v38 }
 0xcef   :  { %3611 = vmatpush3.bf16.msra.mxu1 %v5419_v34  ;;  %3418 = vmatpush3.bf16.msra.mxu0 %v5422_v30 }
 0xcf0   :  { %3612 = vmatprep.subr.bf16.mxu1 %v6334_v57  ;;  %3419 = vmatprep.subr.bf16.mxu0 %v5426_v25 }
 0xcf3   :  { %3613 = vmatpush3.bf16.msra.mxu1 %v5429_v48  ;;  %3420 = vmatpush3.bf16.msra.mxu0 %v5432_v33 }
 0xcf4   :  { %3614 = vmatprep.subr.bf16.mxu1 %v6334_v57  ;;  %3421 = vmatprep.subr.bf16.mxu0 %v5436_v31 }
 0xcf7   :  { %3615 = vmatpush3.bf16.msra.mxu1 %v5439_v54  ;;  %3422 = vmatpush3.bf16.msra.mxu0 %v5442_v45 }
 0xcf8   :  { %3616 = vmatprep.subr.bf16.mxu1 %v6334_v57  ;;  %3423 = vmatprep.subr.bf16.mxu0 %v5446_v56 }
 0xcfb   :  { %3617 = vmatpush3.bf16.msra.mxu1 %v5449_v26  ;;  %3424 = vmatpush3.bf16.msra.mxu0 %v5452_v52 }
 0xcfc   :  { %3618 = vmatprep.subr.bf16.mxu1 %v6334_v57  ;;  %3425 = vmatprep.subr.bf16.mxu0 %v5456_v42 }
 0xcff   :  { %3619 = vmatpush3.bf16.msra.mxu1 %v5459_v60  ;;  %3426 = vmatpush3.bf16.msra.mxu0 %v5462_v7  ;;  %v2208_v7 = vpack.c.bf16 %v5474_v55, %v5474_v55 }
 0xd00   :  { %3620 = vmatprep.subr.bf16.mxu1 %v6334_v57  ;;  %3427 = vmatprep.subr.bf16.mxu0 %v5011_v61 }
 0xd03   :  { %3621 = vmatpush3.bf16.msra.mxu1 %v5014_v59  ;;  %3428 = vmatpush3.bf16.msra.mxu0 %v5017_v62 }
 0xd04   :  { %2330 = vmatprep.subr.bf16.mxu1 %v5020_v63  ;;  %2289 = vmatprep.subr.bf16.mxu0 %v5023_v37 }
 0xd06   :  { %3623 = vmatmul.mubr.bf16.vlgmr.msra.gmra.mrb[60].mxu1 %v2208_v7 }
 0xd07   :  { %2331 = vmatpush1.bf16.msra.mxu1 %v5033_v50  ;;  %2362 = vmatprep.mubr.bf16.mxu1 %v6335_v12 }
 0xd08   :  { %2332 = vmatprep.subr.bf16.mxu1 %v5037_v2 }
 0xd0b   :  { %2333 = vmatpush1.bf16.msra.mxu1 %v5040_v27 }
 0xd0c   :  { %2334 = vmatprep.subr.bf16.mxu1 %v5043_v16 }
 0xd0f   :  { %2335 = vmatpush1.bf16.msra.mxu1 %v5046_v22 }
 0xd10   :  { %2336 = vmatprep.subr.bf16.mxu1 %v5049_v20 }
 0xd13   :  { %2337 = vmatpush1.bf16.msra.mxu1 %v5052_v23 }
 0xd14   :  { %2338 = vmatprep.subr.bf16.mxu1 %v5055_v24 }
 0xd17   :  { %2339 = vmatpush1.bf16.msra.mxu1 %v6479_v43 }
 0xd18   :  { %2340 = vmatprep.subr.bf16.mxu1 %v6480_v10 }
 0xd1b   :  { %2341 = vmatpush1.bf16.msra.mxu1 %v6481_v39 }
 0xd1c   :  { %2342 = vmatprep.subr.bf16.mxu1 %v6482_v40 }
 0xd1f   :  { %2343 = vmatpush1.bf16.msra.mxu1 %v6483_v44 }
 0xd20   :  { %2344 = vmatprep.subr.bf16.mxu1 %v6484_v5 }
 0xd23   :  { %2345 = vmatpush1.bf16.msra.mxu1 %v6485_v3 }
 0xd24   :  { %2438 = vmatprep.subr.bf16.mxu1 %v6486_v11 }
 0xdb9   :  { %v2126_v61 = vpop.f32.mrb[56].mxu0  ;;  %v2167_v59 = vpop.f32.mrb[56].mxu1 }
 0xdba   :  { %v2127_v62 = vadd.f32 %v2126_v61, %v5390_v46  ;;  %v2168_v63 = vadd.f32 %v2167_v59, %v5383_v17  ;;  %v2128_v37 = vpop.f32.mrb[57].mxu0  ;;  %v2169_v50 = vpop.f32.mrb[57].mxu1 }
 0xdbb   :  { %v2129_v2 = vadd.f32 %v2128_v37, %v5392_v32  ;;  %v2170_v27 = vadd.f32 %v2169_v50, %v5385_v29  ;;  %v2130_v16 = vpop.f32.mrb[58].mxu0  ;;  %v2171_v22 = vpop.f32.mrb[58].mxu1 }
 0xdbc   :  { %v2174_v20 = vadd.f32 %v2127_v62, %v4711_v18  ;;  %v2131_v23 = vpop.f32.mrb[59].mxu0  ;;  %v2172_v24 = vpop.f32.mrb[59].mxu1  ;;  %v2176_v40 = vadd.f32 %v2168_v63, %v4717_v49 }
 0xdbd   :  { %v2175_v43 = vadd.f32 %v2129_v2, %v4713_v21  ;;  %v2177_v44 = vadd.f32 %v2170_v27, %v4719_v51  ;;  %v6551_v23 = vld [vmem:[#allocation39_spill] sm:$0xff]  ;;  %v6552_v24 = vld [vmem:[#allocation41_spill] sm:$0xff] }
 0xdbe   :  { %v3243_v10 = vmul.f32 -1.442695, %v2174_v20  ;;  %v3245_v5 = vmul.f32 -1.442695, %v2176_v40  ;;  %v6550_v20 = vld [vmem:[#allocation37_spill] sm:$0xff] }
 0xdbf   :  { %v3244_v39 = vmul.f32 -1.442695, %v2175_v43  ;;  %v6553_v43 = vld [vmem:[#allocation43_spill] sm:$0xff]  ;;  %v6556_v40 = vld [vmem:[#allocation49_spill] sm:$0xff] }
 0xdc0   :  { %3892 = vpow2.f32 %v3243_v10  ;;  %v6554_v10 = vld [vmem:[#allocation45_spill] sm:$0xff] }
 0xdc1   :  { %3894 = vpow2.f32 %v3244_v39  ;;  %v6555_v39 = vld [vmem:[#allocation47_spill] sm:$0xff] }
 0xdc2   :  { %3896 = vtanh.f32 %v2177_v44  ;;  %v6557_v44 = vld [vmem:[#allocation51_spill] sm:$0xff] }
 0xdc3   :  { %3898 = vpow2.f32 %v3245_v5  ;;  %v6558_v5 = vld [vmem:[#allocation53_spill] sm:$0xff] }
 0xdca   :  { %v3893_v3 = vpop.eup %3892 }
 0xdcb   :  { %v2187_v11 = vadd.f32 1.0, %v3893_v3  ;;  %v3895_v32 = vpop.eup %3894  ;;  %v6559_v3 = vld [vmem:[#allocation55_spill] sm:$0xff] }
 0xdcc   :  { %v2188_v46 = vadd.f32 1.0, %v3895_v32  ;;  %v3897_v29 = vpop.eup %3896  ;;  %v6561_v32 = vld [vmem:[#allocation12_spill] sm:$0xff] }
 0xdcd   :  { %3900 = vrcp.f32 %v2187_v11  ;;  %v3899_v17 = vpop.eup %3898  ;;  %v6560_v11 = vld [vmem:[#allocation57_spill] sm:$0xff] }
 0xdce   :  { %3902 = vrcp.f32 %v2188_v46  ;;  %v2189_v62 = vadd.f32 1.0, %v3899_v17  ;;  %v6562_v46 = vld [vmem:[#allocation30_spill] sm:$0xff]  ;;  %v6564_v17 = vld [vmem:[#allocation60_spill] sm:$0xff] }
 0xdd0   :  { %3904 = vrcp.f32 %v2189_v62 }
 0xdd7   :  { %v3901_v7 = vpop.eup %3900 }
 0xdd8   :  { %v2198_v61 = vmul.f32 %v3901_v7, %v3897_v29  ;;  %v3903_v59 = vpop.eup %3902  ;;  %v6563_v29 = vld [vmem:[#allocation59_spill] sm:$0xff]  ;;  %v6565_v7 = vld [vmem:[#allocation61_spill] sm:$0xff] }
 0xdd9   :  { %v2197_v37 = vmul.f32 %v3903_v59, %v5325_v15  ;;  %v6538_v15 = vld [vmem:[#allocation52_spill] sm:$0xff]  ;;  %v6567_v59 = vld [vmem:[#allocation63_spill] sm:$0xff]  ;;  %v2283_v62 = vpop.f32.mrb[60].mxu1 }
 0xdda   :  { %v3905_v2 = vpop.eup %3904 }
 0xddb   :  { %v5504_v63 = vadd.f32 %v2198_v61, %v2197_v37  ;;  %v6566_v61 = vld [vmem:[#allocation62_spill] sm:$0xff]  ;;  %v3624_v37 = vpop.f32.mrb[61].mxu1 }
 0xddd   :  { %3906 = vtanh.f32 %v5504_v63  ;;  %v2207_v50 = vpack.c.bf16 %v5504_v63, %v5504_v63 }
 0xddf   :  { %2241 = vmatprep.mubr.bf16.mxu0 %v2207_v50  ;;  %v6568_v50 = vld [vmem:[#allocation64_spill] sm:$0xff] }
 0xde7   :  { %v3907_v27 = vpop.eup %3906 }
 0xde8   :  { %v2201_v16 = vmul.f32 %v3907_v27, %v3905_v2  ;;  %v2286_v2 = vpop.f32.mrb[62].mxu1  ;;  %v6569_v27 = vld [vmem:[#allocation65_spill] sm:$0xff] }
 0xdea   :  { %2203 = vst [vmem:[#allocation8 + $0x10] sm:$0xf] %v2201_v16  ;;  %v2206_v22 = vpack.c.bf16 %v2201_v16, %v2201_v16  ;;  %v3625_v16 = vpop.f32.mrb[63].mxu1 }
 0xdec   :  { %2242 = vmatmul.mubr.bf16.vlgmr.msra.gmra.mrb[60].mxu0 %v2206_v22  ;;  %2363 = vmatmul.mubr.bf16.vlgmr.msra.gmra.mrb[64].mxu1 %v2206_v22 }
 0xded   :  { %2290 = vmatpush1.bf16.msra.mxu0 %v6488_v19  ;;  %2321 = vmatprep.mubr.bf16.mxu0 %v6335_v12  ;;  %v6539_v19 = vld [vmem:[#allocation25_spill] sm:$0xff] }
 0xdee   :  { %2291 = vmatprep.subr.bf16.mxu0 %v6489_v0  ;;  %2439 = vmatpush1.bf16.msra.mxu1 %v6490_v1  ;;  %v6540_v0 = vld [vmem:[#allocation26_spill] sm:$0xff] }
 0xdef   :  { %2440 = vmatprep.subr.bf16.mxu1 %v6491_v13  ;;  %2470 = vmatprep.mubr.bf16.mxu1 %v6335_v12  ;;  %v6541_v1 = vld [vmem:[#allocation54_spill] sm:$0xff]  ;;  %v6542_v13 = vld [vmem:[#allocation56_spill] sm:$0xff] }
 0xdf1   :  { %2292 = vmatpush1.bf16.msra.mxu0 %v6492_v14  ;;  %v6543_v14 = vld [vmem:[#allocation27_spill] sm:$0xff] }
 0xdf2   :  { %2293 = vmatprep.subr.bf16.mxu0 %v6493_v9  ;;  %2441 = vmatpush1.bf16.msra.mxu1 %v6494_v47  ;;  %v6544_v9 = vld [vmem:[#allocation28_spill] sm:$0xff]  ;;  %v6545_v47 = vld [vmem:[#allocation58_spill] sm:$0xff] }
 0xdf3   :  { %2442 = vmatprep.subr.bf16.mxu1 %v6495_v8  ;;  %v6546_v8 = vld [vmem:[#allocation29_spill] sm:$0xff] }
 0xdf5   :  { %2294 = vmatpush1.bf16.msra.mxu0 %v6496_v58  ;;  %v6547_v58 = vld [vmem:[#allocation31_spill] sm:$0xff] }
 0xdf6   :  { %2295 = vmatprep.subr.bf16.mxu0 %v6497_v36  ;;  %2443 = vmatpush1.bf16.msra.mxu1 %v6498_v4  ;;  %v6548_v36 = vld [vmem:[#allocation33_spill] sm:$0xff]  ;;  %v6549_v4 = vld [vmem:[#allocation35_spill] sm:$0xff] }
 0xdf7   :  { %2444 = vmatprep.subr.bf16.mxu1 %v6538_v15  ;;  %v6571_v15 = vld [vmem:[#allocation67_spill] sm:$0xff] }
 0xdf9   :  { %2296 = vmatpush1.bf16.msra.mxu0 %v6539_v19  ;;  %v6572_v19 = vld [vmem:[#allocation68_spill] sm:$0xff] }
 0xdfa   :  { %2297 = vmatprep.subr.bf16.mxu0 %v6540_v0  ;;  %2445 = vmatpush1.bf16.msra.mxu1 %v6541_v1  ;;  %v6573_v0 = vld [vmem:[#allocation16_spill] sm:$0xff] }
 0xdfb   :  { %2446 = vmatprep.subr.bf16.mxu1 %v6542_v13 }
 0xdfd   :  { %2298 = vmatpush1.bf16.msra.mxu0 %v6543_v14 }
 0xdfe   :  { %2299 = vmatprep.subr.bf16.mxu0 %v6544_v9  ;;  %2447 = vmatpush1.bf16.msra.mxu1 %v6545_v47 }
 0xdff   :  { %2448 = vmatprep.subr.bf16.mxu1 %v6546_v8 }
 0xe01   :  { %2300 = vmatpush1.bf16.msra.mxu0 %v6547_v58 }
 0xe02   :  { %2301 = vmatprep.subr.bf16.mxu0 %v6548_v36  ;;  %2449 = vmatpush1.bf16.msra.mxu1 %v6549_v4 }
 0xe03   :  { %2450 = vmatprep.subr.bf16.mxu1 %v6550_v20  ;;  %v5567_v20 = vld [vmem:[%s6009_s2] ss:$0 sm:$0xff] }
 0xe04   :  { %6574 = vst [vmem:[#allocation36_spill] sm:$0xff] %v5567_v20 }
 0xe05   :  { %2302 = vmatpush1.bf16.msra.mxu0 %v6551_v23 }
 0xe06   :  { %2303 = vmatprep.subr.bf16.mxu0 %v6552_v24  ;;  %2451 = vmatpush1.bf16.msra.mxu1 %v6553_v43 }
 0xe07   :  { %2452 = vmatprep.subr.bf16.mxu1 %v6554_v10  ;;  %v5573_v10 = vld [vmem:[%s6010_s3] ss:$0 sm:$0xff] }
 0xe08   :  { %6575 = vst [vmem:[#allocation17_spill] sm:$0xff] %v5573_v10 }
 0xe09   :  { %2304 = vmatpush1.bf16.msra.mxu0 %v6555_v39 }
 0xe0a   :  { %2397 = vmatprep.subr.bf16.mxu0 %v6556_v40  ;;  %2453 = vmatpush1.bf16.msra.mxu1 %v6557_v44 }
 0xe0b   :  { %3626 = vmatprep.subr.bf16.mxu1 %v6334_v57 }
 0xe0c   :  { %2322 = vmatmul.mubr.bf16.vlgmr.msra.gmra.mrb[64].mxu0 %v2206_v22  ;;  %v6570_v22 = vld [vmem:[#allocation66_spill] sm:$0xff] }
 0xe0d   :  { %2398 = vmatpush1.bf16.msra.mxu0 %v6558_v5  ;;  %2429 = vmatprep.mubr.bf16.mxu0 %v6335_v12 }
 0xe0e   :  { %2399 = vmatprep.subr.bf16.mxu0 %v6559_v3 }
 0xe11   :  { %2400 = vmatpush1.bf16.msra.mxu0 %v6560_v11 }
 0xe12   :  { %2401 = vmatprep.subr.bf16.mxu0 %v6561_v32 }
 0xe15   :  { %2402 = vmatpush1.bf16.msra.mxu0 %v6562_v46 }
 0xe16   :  { %2403 = vmatprep.subr.bf16.mxu0 %v6563_v29 }
 0xe19   :  { %2404 = vmatpush1.bf16.msra.mxu0 %v6564_v17 }
 0xe1a   :  { %2405 = vmatprep.subr.bf16.mxu0 %v6565_v7 }
 0xe1d   :  { %2406 = vmatpush1.bf16.msra.mxu0 %v6566_v61 }
 0xe1e   :  { %2407 = vmatprep.subr.bf16.mxu0 %v6567_v59 }
 0xe21   :  { %2408 = vmatpush1.bf16.msra.mxu0 %v6568_v50 }
 0xe22   :  { %2409 = vmatprep.subr.bf16.mxu0 %v6569_v27 }
 0xe25   :  { %2410 = vmatpush1.bf16.msra.mxu0 %v6570_v22 }
 0xe26   :  { %2411 = vmatprep.subr.bf16.mxu0 %v6571_v15 }
 0xe29   :  { %2412 = vmatpush1.bf16.msra.mxu0 %v6572_v19 }
 0xe2a   :  { %3444 = vmatprep.subr.bf16.mxu0 %v6573_v0 }
 0xebf   :  { %v3429_v1 = vpop.f32.mrb[60].mxu0  ;;  %v5560_v13 = vpop.f32.mrb[64].mxu1 }
 0xec0   :  { %v3430_v14 = vpop.f32.mrb[61].mxu0  ;;  %v5562_v9 = vpop.f32.mrb[65].mxu1 }
 0xec1   :  { %v3431_v47 = vadd.f32 %v3430_v14, %v3429_v1  ;;  %v3432_v8 = vpop.f32.mrb[62].mxu0  ;;  %v2368_v58 = vpop.f32.mrb[66].mxu1 }
 0xec2   :  { %v3433_v36 = vpop.f32.mrb[63].mxu0  ;;  %v2369_v4 = vpop.f32.mrb[67].mxu1 }
 0xec3   :  { %v2244_v23 = vadd.f32 %v5567_v20, %v3431_v47  ;;  %v5613_v4 = vld [vmem:[#allocation2 + $0x78] sm:$0xff]  }
 0xec5   :  { %v2284_v24 = vadd.f32 %v2283_v62, %v2244_v23  ;;  %v5616_v23 = vld [vmem:[#allocation2 + $0xb8] sm:$0xff]  }
 0xec7   :  { %3908 = vtanh.f32 %v2284_v24  ;;  %v5619_v24 = vld [vmem:[#allocation2 + $0x38] sm:$0xff]  }
 0xed1   :  { %v3909_v43 = vpop.eup %3908 }
 0xed2   :  { %v2372_v39 = vmul.f32 %v5573_v10, %v3909_v43  ;;  %v5622_v43 = vld [vmem:[#allocation7 + $0xc] ss:$16 sps:$4 sm:$0xff]  }
 0xed4   :  { %v2373_v40 = vsel %vm667_vm1, %v2372_v39, 0.0  ;;  %v5625_v39 = vld [vmem:[#allocation7 + $0x4] ss:$16 sps:$4 sm:$0xff]  }
 0xed5   :  { %2374 = vadd.xlane.f32.xlu1 %v2373_v40  ;;  %v5631_v40 = vld [vmem:[%s6007_s0 + $0x18] sm:$0xf] }
 0xedf   :  { %v5577_v44 = vpop.f32.mrb[64].mxu0 }
 0xee0   :  { %v5579_v5 = vpop.f32.mrb[65].mxu0 }
 0xee1   :  { %v2327_v3 = vpop.f32.mrb[66].mxu0 }
 0xee2   :  { %v2328_v11 = vpop.f32.mrb[67].mxu0  ;;  %v2513_v3 = vpack.c.bf16 %v5631_v40, %v5631_v40 }
 0xee3   :  { %v5635_v11 = vld [vmem:[#allocation7 + $0x8] ss:$16 sps:$4 sm:$0xff]  }
 0xf62   :  { %v2375_v32 = vpop.xlane.xlu1 %2374 }
 0xf63   :  { %v2376_v46 = vsel %vm667_vm1, %v2375_v32, -inf }
 0xf64   :  { %v2377_v29 = vrot.slane %v2376_v46, 4 }
 0xf66   :  { %v2378_v17 = vmax.f32 %v2376_v46, %v2377_v29  ;;  %v5642_v46 = vld [vmem:[#allocation7 + $0x28] ss:$16 sps:$4 sm:$0xff]   ;;  %v5645_v29 = vld [vmem:[#allocation7 + $0x4c] ss:$16 sps:$4 sm:$0xff]  }
 0xf68   :  { %v2379_v7 = vrot.slane %v2378_v17, 2 }
 0xf6a   :  { %v2380_v61 = vmax.f32 %v2378_v17, %v2379_v7  ;;  %v5648_v17 = vld [vmem:[#allocation7 + $0x48] ss:$16 sps:$4 sm:$0xff]   ;;  %v5651_v7 = vld [vmem:[#allocation7 + $0x6c] ss:$16 sps:$4 sm:$0xff]  }
 0xf6c   :  { %v2381_v59 = vrot.slane %v2380_v61, 1 }
 0xf6e   :  { %v2382_v62 = vmax.f32 %v2380_v61, %v2381_v59  ;;  %v5654_v61 = vld [vmem:[#allocation7 + $0x68] ss:$16 sps:$4 sm:$0xff]   ;;  %v5657_v59 = vld [vmem:[#allocation7 + $0x8c] ss:$16 sps:$4 sm:$0xff]  }
 0xf70   :  { %v2383_v37 = vsub.f32 %v2375_v32, %v2382_v62  ;;  %v5639_v32 = vld [vmem:[#allocation7 + $0x2c] ss:$16 sps:$4 sm:$0xff]   ;;  %v5660_v62 = vld [vmem:[#allocation7 + $0x88] ss:$16 sps:$4 sm:$0xff]  }
 0xf71   :  { %6577 = vst [vmem:[#allocation18_spill] sm:$0xff] %v5660_v62 }
 0xf72   :  { %v2384_v50 = vmul.f32 1.442695, %v2383_v37  ;;  %v5663_v37 = vld [vmem:[#allocation7 + $0xac] ss:$16 sps:$4 sm:$0xff]  }
 0xf73   :  { %6578 = vst [vmem:[#allocation38_spill] sm:$0xff] %v5663_v37 }
 0xf74   :  { %3910 = vpow2.f32 %v2384_v50  ;;  %v5666_v50 = vld [vmem:[#allocation7 + $0xa8] ss:$16 sps:$4 sm:$0xff]  }
 0xf75   :  { %6579 = vst [vmem:[#allocation14_spill] sm:$0xff] %v5666_v50 }
 0xf7e   :  { %v3911_v2 = vpop.eup %3910 }
 0xf7f   :  { %v2386_v27 = vsel %vm667_vm1, %v3911_v2, 0.0 }
 0xf80   :  { %v2387_v16 = vrot.slane %v2386_v27, 4 }
 0xf82   :  { %v2388_v22 = vadd.f32 %v2387_v16, %v2386_v27  ;;  %v5672_v27 = vld [vmem:[#allocation7 + $0xc8] ss:$16 sps:$4 sm:$0xff]   ;;  %v5675_v16 = vld [vmem:[#allocation7 + $0xec] ss:$16 sps:$4 sm:$0xff]  }
 0xf83   :  { %6581 = vst [vmem:[#allocation40_spill] sm:$0xff] %v5672_v27  ;;  %6582 = vst [vmem:[#allocation19_spill] sm:$0xff] %v5675_v16 }
 0xf84   :  { %v2389_v15 = vrot.slane %v2388_v22, 2 }
 0xf86   :  { %v2390_v19 = vadd.f32 %v2389_v15, %v2388_v22  ;;  %v5678_v22 = vld [vmem:[#allocation7 + $0xe8] ss:$16 sps:$4 sm:$0xff]   ;;  %v5681_v15 = vld [vmem:[#allocation5 + $0xc] ss:$16 sps:$4 sm:$0xff]  }
 0xf87   :  { %6583 = vst [vmem:[#allocation20_spill] sm:$0xff] %v5678_v22  ;;  %6584 = vst [vmem:[#allocation42_spill] sm:$0xff] %v5681_v15 }
 0xf88   :  { %v2391_v1 = vrot.slane %v2390_v19, 1 }
 0xf8a   :  { %v2392_v14 = vadd.f32 %v2391_v1, %v2390_v19 }
 0xf8c   :  { %3912 = vrcp.f32 %v2392_v14 }
 0xf96   :  { %v3913_v47 = vpop.eup %3912 }
 0xf97   :  { %v2394_v8 = vmul.f32 %v3913_v47, %v3911_v2  ;;  %v5669_v2 = vld [vmem:[#allocation7 + $0xcc] ss:$16 sps:$4 sm:$0xff]  }
 0xf98   :  { %6580 = vst [vmem:[#allocation15_spill] sm:$0xff] %v5669_v2 }
 0xf99   :  { %v2395_v58 = vmul.f32 %v5474_v55, %v2394_v8  ;;  %v6576_v55 = vld [vmem:[#allocation34_spill] sm:$0xff] }
 0xf9b   :  { %v2396_v36 = vpack.c.bf16 %v2395_v58, %v2395_v58 }
 0xf9d   :  { %2430 = vmatmul.mubr.bf16.vlgmr.msra.gmra.mrb[68].mxu0 %v2396_v36  ;;  %2471 = vmatmul.mubr.bf16.vlgmr.msra.gmra.mrb[68].mxu1 %v2396_v36 }
 0xf9e   :  { %3627 = vmatpush3.bf16.msra.mxu1 %v5397_v35  ;;  %3445 = vmatpush3.bf16.msra.mxu0 %v5400_v53 }
 0xf9f   :  { %3628 = vmatprep.subr.bf16.mxu1 %v6334_v57  ;;  %3642 = vmatprep.mubr.msk.bf16.mxu1 %vm4257_vm0, %v6334_v57 }
 0xfa0   :  { %3446 = vmatprep.subr.bf16.mxu0 %v5406_v28 }
 0xfa2   :  { %3629 = vmatpush3.bf16.msra.mxu1 %v5409_v6  ;;  %3447 = vmatpush3.bf16.msra.mxu0 %v5412_v41 }
 0xfa3   :  { %3630 = vmatprep.subr.bf16.mxu1 %v6334_v57  ;;  %3448 = vmatprep.subr.bf16.mxu0 %v5416_v38 }
 0xfa6   :  { %3631 = vmatpush3.bf16.msra.mxu1 %v5419_v34  ;;  %3449 = vmatpush3.bf16.msra.mxu0 %v5422_v30 }
 0xfa7   :  { %3632 = vmatprep.subr.bf16.mxu1 %v6334_v57  ;;  %3450 = vmatprep.subr.bf16.mxu0 %v5426_v25 }
 0xfaa   :  { %3633 = vmatpush3.bf16.msra.mxu1 %v5429_v48  ;;  %3451 = vmatpush3.bf16.msra.mxu0 %v5432_v33 }
 0xfab   :  { %3634 = vmatprep.subr.bf16.mxu1 %v6334_v57  ;;  %3452 = vmatprep.subr.bf16.mxu0 %v5436_v31 }
 0xfae   :  { %3635 = vmatpush3.bf16.msra.mxu1 %v5439_v54  ;;  %3453 = vmatpush3.bf16.msra.mxu0 %v5442_v45 }
 0xfaf   :  { %3636 = vmatprep.subr.bf16.mxu1 %v6334_v57  ;;  %3454 = vmatprep.subr.bf16.mxu0 %v5446_v56 }
 0xfb2   :  { %3637 = vmatpush3.bf16.msra.mxu1 %v5449_v26  ;;  %3455 = vmatpush3.bf16.msra.mxu0 %v5452_v52 }
 0xfb3   :  { %3638 = vmatprep.subr.bf16.mxu1 %v6334_v57  ;;  %3456 = vmatprep.subr.bf16.mxu0 %v5456_v42 }
 0xfb6   :  { %3639 = vmatpush3.bf16.msra.mxu1 %v5459_v60  ;;  %3457 = vmatpush3.bf16.msra.mxu0 %v6576_v55 }
 0xfb7   :  { %3640 = vmatprep.subr.bf16.mxu1 %v6334_v57  ;;  %3458 = vmatprep.subr.bf16.mxu0 %v5613_v4 }
 0xfba   :  { %3641 = vmatpush3.bf16.msra.mxu1 %v5616_v23  ;;  %3459 = vmatpush3.bf16.msra.mxu0 %v5619_v24 }
 0xfbb   :  { %2635 = vmatprep.subr.bf16.mxu1 %v5622_v43  ;;  %2594 = vmatprep.subr.bf16.mxu0 %v5625_v39 }
 0xfbd   :  { %3643 = vmatmul.mubr.bf16.vlgmr.msra.gmra.mrb[72].mxu1 %v2513_v3 }
 0xfbe   :  { %2636 = vmatpush1.bf16.msra.mxu1 %v5635_v11  ;;  %2667 = vmatprep.mubr.bf16.mxu1 %v6335_v12 }
 0xfbf   :  { %2637 = vmatprep.subr.bf16.mxu1 %v5639_v32 }
 0xfc2   :  { %2638 = vmatpush1.bf16.msra.mxu1 %v5642_v46 }
 0xfc3   :  { %2639 = vmatprep.subr.bf16.mxu1 %v5645_v29 }
 0xfc6   :  { %2640 = vmatpush1.bf16.msra.mxu1 %v5648_v17 }
 0xfc7   :  { %2641 = vmatprep.subr.bf16.mxu1 %v5651_v7 }
 0xfca   :  { %2642 = vmatpush1.bf16.msra.mxu1 %v5654_v61 }
 0xfcb   :  { %2643 = vmatprep.subr.bf16.mxu1 %v5657_v59 }
 0xfce   :  { %2644 = vmatpush1.bf16.msra.mxu1 %v5660_v62 }
 0xfcf   :  { %2645 = vmatprep.subr.bf16.mxu1 %v5663_v37 }
 0xfd2   :  { %2646 = vmatpush1.bf16.msra.mxu1 %v5666_v50 }
 0xfd3   :  { %2647 = vmatprep.subr.bf16.mxu1 %v5669_v2 }
 0xfd6   :  { %2648 = vmatpush1.bf16.msra.mxu1 %v5672_v27 }
 0xfd7   :  { %2649 = vmatprep.subr.bf16.mxu1 %v5675_v16 }
 0xfda   :  { %2650 = vmatpush1.bf16.msra.mxu1 %v5678_v22 }
 0xfdb   :  { %2743 = vmatprep.subr.bf16.mxu1 %v5681_v15 }
0x1070   :  { %v2431_v19 = vpop.f32.mrb[68].mxu0  ;;  %v2472_v1 = vpop.f32.mrb[68].mxu1 }
0x1071   :  { %v2432_v14 = vadd.f32 %v2431_v19, %v5577_v44  ;;  %v2473_v47 = vadd.f32 %v2472_v1, %v5560_v13  ;;  %v2433_v8 = vpop.f32.mrb[69].mxu0  ;;  %v2474_v58 = vpop.f32.mrb[69].mxu1 }
0x1072   :  { %v2434_v36 = vadd.f32 %v2433_v8, %v5579_v5  ;;  %v2475_v3 = vadd.f32 %v2474_v58, %v5562_v9  ;;  %v2435_v16 = vpop.f32.mrb[70].mxu0  ;;  %v2476_v27 = vpop.f32.mrb[70].mxu1 }
0x1073   :  { %v2479_v22 = vadd.f32 %v2432_v14, %v4711_v18  ;;  %v2436_v2 = vpop.f32.mrb[71].mxu0  ;;  %v2477_v50 = vpop.f32.mrb[71].mxu1  ;;  %v2481_v13 = vadd.f32 %v2473_v47, %v4717_v49 }
0x1074   :  { %v2480_v15 = vadd.f32 %v2434_v36, %v4713_v21  ;;  %v2482_v44 = vadd.f32 %v2475_v3, %v4719_v51 }
0x1075   :  { %v3247_v37 = vmul.f32 -1.442695, %v2479_v22  ;;  %v3249_v19 = vmul.f32 -1.442695, %v2481_v13  ;;  %v5706_v13 = vld [vmem:[#allocation7 + $0x24] ss:$16 sps:$4 sm:$0xff]  }
0x1076   :  { %v3248_v62 = vmul.f32 -1.442695, %v2480_v15  ;;  %6587 = vst [vmem:[#allocation22_spill] sm:$0xff] %v5706_v13 }
0x1077   :  { %3914 = vpow2.f32 %v3247_v37 }
0x1078   :  { %3916 = vpow2.f32 %v3248_v62 }
0x1079   :  { %3918 = vtanh.f32 %v2482_v44  ;;  %v5709_v44 = vld [vmem:[#allocation5 + $0x8] ss:$16 sps:$4 sm:$0xff]  }
0x107a   :  { %3920 = vpow2.f32 %v3249_v19  ;;  %6588 = vst [vmem:[#allocation46_spill] sm:$0xff] %v5709_v44  ;;  %v5712_v19 = vld [vmem:[#allocation5 + $0x2c] ss:$16 sps:$4 sm:$0xff]  }
0x107b   :  { %6589 = vst [vmem:[#allocation48_spill] sm:$0xff] %v5712_v19 }
0x1081   :  { %v3915_v5 = vpop.eup %3914 }
0x1082   :  { %v2492_v1 = vadd.f32 1.0, %v3915_v5  ;;  %v3917_v9 = vpop.eup %3916  ;;  %v5716_v5 = vld [vmem:[#allocation7 + $0x20] ss:$16 sps:$4 sm:$0xff]  }
0x1083   :  { %v2493_v27 = vadd.f32 1.0, %v3917_v9  ;;  %v3919_v50 = vpop.eup %3918  ;;  %6590 = vst [vmem:[#allocation23_spill] sm:$0xff] %v5716_v5  ;;  %v5722_v9 = vld [vmem:[#allocation5 + $0x28] ss:$16 sps:$4 sm:$0xff]  }
0x1084   :  { %3922 = vrcp.f32 %v2492_v1  ;;  %v3921_v2 = vpop.eup %3920  ;;  %v5719_v1 = vld [vmem:[#allocation7 + $0x44] ss:$16 sps:$4 sm:$0xff]   ;;  %6592 = vst [vmem:[#allocation50_spill] sm:$0xff] %v5722_v9 }
0x1085   :  { %3924 = vrcp.f32 %v2493_v27  ;;  %v2494_v37 = vadd.f32 1.0, %v3921_v2  ;;  %6591 = vst [vmem:[#allocation24_spill] sm:$0xff] %v5719_v1  ;;  %v5725_v27 = vld [vmem:[#allocation5 + $0x4c] ss:$16 sps:$4 sm:$0xff]   ;;  %v5731_v2 = vld [vmem:[#allocation7 + $0x64] ss:$16 sps:$4 sm:$0xff]  }
0x1086   :  { %6593 = vst [vmem:[#allocation32_spill] sm:$0xff] %v5725_v27  ;;  %6595 = vst [vmem:[#allocation52_spill] sm:$0xff] %v5731_v2 }
0x1087   :  { %3926 = vrcp.f32 %v2494_v37  ;;  %v5743_v37 = vld [vmem:[#allocation7 + $0x84] ss:$16 sps:$4 sm:$0xff]  }
0x1088   :  { %6599 = vst [vmem:[#allocation56_spill] sm:$0xff] %v5743_v37 }
0x108e   :  { %v3923_v16 = vpop.eup %3922 }
0x108f   :  { %v2503_v22 = vmul.f32 %v3923_v16, %v3919_v50  ;;  %v3925_v15 = vpop.eup %3924  ;;  %v5728_v50 = vld [vmem:[#allocation7 + $0x40] ss:$16 sps:$4 sm:$0xff]   ;;  %v5734_v16 = vld [vmem:[#allocation5 + $0x48] ss:$16 sps:$4 sm:$0xff]  }
0x1090   :  { %v2502_v62 = vmul.f32 %v3925_v15, %v5504_v63  ;;  %v5702_v63 = vld [vmem:[#allocation7] ss:$16 sps:$4 sm:$0xff]   ;;  %6594 = vst [vmem:[#allocation13_spill] sm:$0xff] %v5728_v50  ;;  %6596 = vst [vmem:[#allocation25_spill] sm:$0xff] %v5734_v16 }
0x1091   :  { %v3927_v8 = vpop.eup %3926  ;;  %6586 = vst [vmem:[#allocation21_spill] sm:$0xff] %v5702_v63  ;;  %v5740_v15 = vld [vmem:[#allocation7 + $0x60] ss:$16 sps:$4 sm:$0xff]  }
0x1092   :  { %v5693_v14 = vadd.f32 %v2503_v22, %v2502_v62  ;;  %v5737_v22 = vld [vmem:[#allocation5 + $0x6c] ss:$16 sps:$4 sm:$0xff]   ;;  %6598 = vst [vmem:[#allocation54_spill] sm:$0xff] %v5740_v15  ;;  %v5746_v62 = vld [vmem:[#allocation5 + $0x68] ss:$16 sps:$4 sm:$0xff]  }
0x1093   :  { %6597 = vst [vmem:[#allocation26_spill] sm:$0xff] %v5737_v22  ;;  %6600 = vst [vmem:[#allocation27_spill] sm:$0xff] %v5746_v62 }
0x1094   :  { %6585 = vst [vmem:[#allocation44_spill] sm:$0xff] %v5693_v14  ;;  %3928 = vtanh.f32 %v5693_v14  ;;  %v2512_v47 = vpack.c.bf16 %v5693_v14, %v5693_v14 }
0x1096   :  { %2546 = vmatprep.mubr.bf16.mxu0 %v2512_v47  ;;  %v5749_v47 = vld [vmem:[#allocation5 + $0x8c] ss:$16 sps:$4 sm:$0xff]  }
0x1097   :  { %6601 = vst [vmem:[#allocation28_spill] sm:$0xff] %v5749_v47 }
0x109e   :  { %v3929_v58 = vpop.eup %3928 }
0x109f   :  { %v2506_v36 = vmul.f32 %v3929_v58, %v3927_v8  ;;  %v5752_v8 = vld [vmem:[#allocation7 + $0x80] ss:$16 sps:$4 sm:$0xff]   ;;  %v5755_v58 = vld [vmem:[#allocation7 + $0xa4] ss:$16 sps:$4 sm:$0xff]  }
0x10a0   :  { %6602 = vst [vmem:[#allocation58_spill] sm:$0xff] %v5752_v8  ;;  %6603 = vst [vmem:[#allocation29_spill] sm:$0xff] %v5755_v58 }
0x10a1   :  { %2508 = vst [vmem:[#allocation8 + $0x14] sm:$0xf] %v2506_v36  ;;  %v5698_v3 = vpack.c.bf16 %v2506_v36, %v2506_v36  ;;  %v5758_v36 = vld [vmem:[#allocation5 + $0x88] ss:$16 sps:$4 sm:$0xff]  }
0x10a2   :  { %6604 = vst [vmem:[#allocation31_spill] sm:$0xff] %v5758_v36 }
0x10a3   :  { %2547 = vmatmul.mubr.bf16.vlgmr.msra.gmra.mrb[72].mxu0 %v5698_v3  ;;  %2668 = vmatmul.mubr.bf16.vlgmr.msra.gmra.mrb[76].mxu1 %v5698_v3 }
0x10a4   :  { %2595 = vmatpush1.bf16.msra.mxu0 %v5702_v63  ;;  %2626 = vmatprep.mubr.bf16.mxu0 %v6335_v12 }
0x10a5   :  { %2596 = vmatprep.subr.bf16.mxu0 %v5706_v13  ;;  %2744 = vmatpush1.bf16.msra.mxu1 %v5709_v44 }
0x10a6   :  { %2745 = vmatprep.subr.bf16.mxu1 %v5712_v19  ;;  %2775 = vmatprep.mubr.bf16.mxu1 %v6335_v12 }
0x10a8   :  { %2597 = vmatpush1.bf16.msra.mxu0 %v5716_v5 }
0x10a9   :  { %2598 = vmatprep.subr.bf16.mxu0 %v5719_v1  ;;  %2746 = vmatpush1.bf16.msra.mxu1 %v5722_v9 }
0x10aa   :  { %2747 = vmatprep.subr.bf16.mxu1 %v5725_v27 }
0x10ac   :  { %2599 = vmatpush1.bf16.msra.mxu0 %v5728_v50 }
0x10ad   :  { %2600 = vmatprep.subr.bf16.mxu0 %v5731_v2  ;;  %2748 = vmatpush1.bf16.msra.mxu1 %v5734_v16 }
0x10ae   :  { %2749 = vmatprep.subr.bf16.mxu1 %v5737_v22  ;;  %v5836_v22 = vld [vmem:[#allocation5 + $0xc0] ss:$16 sps:$4 sm:$0xff]  }
0x10af   :  { %6629 = vst [vmem:[#allocation68_spill] sm:$0xff] %v5836_v22 }
0x10b0   :  { %2601 = vmatpush1.bf16.msra.mxu0 %v5740_v15  ;;  %v5830_v15 = vld [vmem:[#allocation5 + $0xa0] ss:$16 sps:$4 sm:$0xff]  }
0x10b1   :  { %2602 = vmatprep.subr.bf16.mxu0 %v5743_v37  ;;  %2750 = vmatpush1.bf16.msra.mxu1 %v5746_v62  ;;  %v5761_v37 = vld [vmem:[#allocation5 + $0xac] ss:$16 sps:$4 sm:$0xff]   ;;  %v5764_v62 = vld [vmem:[#allocation7 + $0xa0] ss:$16 sps:$4 sm:$0xff]   ;;  %6627 = vst [vmem:[#allocation66_spill] sm:$0xff] %v5830_v15 }
0x10b2   :  { %2751 = vmatprep.subr.bf16.mxu1 %v5749_v47  ;;  %6605 = vst [vmem:[#allocation33_spill] sm:$0xff] %v5761_v37  ;;  %6606 = vst [vmem:[#allocation35_spill] sm:$0xff] %v5764_v62  ;;  %v5767_v47 = vld [vmem:[#allocation7 + $0xc4] ss:$16 sps:$4 sm:$0xff]  }
0x10b3   :  { %6607 = vst [vmem:[#allocation37_spill] sm:$0xff] %v5767_v47 }
0x10b4   :  { %2603 = vmatpush1.bf16.msra.mxu0 %v5752_v8  ;;  %v5770_v8 = vld [vmem:[#allocation5 + $0xa8] ss:$16 sps:$4 sm:$0xff]  }
0x10b5   :  { %2604 = vmatprep.subr.bf16.mxu0 %v5755_v58  ;;  %2752 = vmatpush1.bf16.msra.mxu1 %v5758_v36  ;;  %6608 = vst [vmem:[#allocation39_spill] sm:$0xff] %v5770_v8  ;;  %v5773_v58 = vld [vmem:[#allocation5 + $0xcc] ss:$16 sps:$4 sm:$0xff]   ;;  %v5776_v36 = vld [vmem:[#allocation7 + $0xc0] ss:$16 sps:$4 sm:$0xff]  }
0x10b6   :  { %2753 = vmatprep.subr.bf16.mxu1 %v5761_v37  ;;  %6609 = vst [vmem:[#allocation41_spill] sm:$0xff] %v5773_v58  ;;  %6610 = vst [vmem:[#allocation43_spill] sm:$0xff] %v5776_v36  ;;  %v5779_v37 = vld [vmem:[#allocation7 + $0xe4] ss:$16 sps:$4 sm:$0xff]  }
0x10b7   :  { %6611 = vst [vmem:[#allocation45_spill] sm:$0xff] %v5779_v37 }
0x10b8   :  { %2605 = vmatpush1.bf16.msra.mxu0 %v5764_v62  ;;  %v5782_v62 = vld [vmem:[#allocation5 + $0xc8] ss:$16 sps:$4 sm:$0xff]  }
0x10b9   :  { %2606 = vmatprep.subr.bf16.mxu0 %v5767_v47  ;;  %2754 = vmatpush1.bf16.msra.mxu1 %v5770_v8  ;;  %6612 = vst [vmem:[#allocation47_spill] sm:$0xff] %v5782_v62  ;;  %v5785_v47 = vld [vmem:[#allocation5 + $0xec] ss:$16 sps:$4 sm:$0xff]   ;;  %v5788_v8 = vld [vmem:[#allocation7 + $0xe0] ss:$16 sps:$4 sm:$0xff]  }
0x10ba   :  { %2755 = vmatprep.subr.bf16.mxu1 %v5773_v58  ;;  %6613 = vst [vmem:[#allocation49_spill] sm:$0xff] %v5785_v47  ;;  %6614 = vst [vmem:[#allocation51_spill] sm:$0xff] %v5788_v8  ;;  %v5791_v58 = vld [vmem:[#allocation5 + $0x4] ss:$16 sps:$4 sm:$0xff]  }
0x10bb   :  { %6615 = vst [vmem:[#allocation53_spill] sm:$0xff] %v5791_v58 }
0x10bc   :  { %2607 = vmatpush1.bf16.msra.mxu0 %v5776_v36  ;;  %v5794_v36 = vld [vmem:[#allocation5 + $0xe8] ss:$16 sps:$4 sm:$0xff]  }
0x10bd   :  { %2608 = vmatprep.subr.bf16.mxu0 %v5779_v37  ;;  %2756 = vmatpush1.bf16.msra.mxu1 %v5782_v62  ;;  %6616 = vst [vmem:[#allocation55_spill] sm:$0xff] %v5794_v36  ;;  %v5799_v62 = vld [vmem:[#allocation5] ss:$16 sps:$4 sm:$0xff]  }
0x10be   :  { %2757 = vmatprep.subr.bf16.mxu1 %v5785_v47  ;;  %6617 = vst [vmem:[#allocation57_spill] sm:$0xff] %v5799_v62  ;;  %v5803_v47 = vld [vmem:[#allocation5 + $0x24] ss:$16 sps:$4 sm:$0xff]  }
0x10bf   :  { %6618 = vst [vmem:[#allocation12_spill] sm:$0xff] %v5803_v47 }
0x10c0   :  { %2609 = vmatpush1.bf16.msra.mxu0 %v5788_v8  ;;  %v5806_v8 = vld [vmem:[#allocation5 + $0x20] ss:$16 sps:$4 sm:$0xff]  }
0x10c1   :  { %2702 = vmatprep.subr.bf16.mxu0 %v5791_v58  ;;  %2758 = vmatpush1.bf16.msra.mxu1 %v5794_v36  ;;  %6619 = vst [vmem:[#allocation30_spill] sm:$0xff] %v5806_v8  ;;  %v5809_v58 = vld [vmem:[#allocation5 + $0x44] ss:$16 sps:$4 sm:$0xff]   ;;  %v5812_v36 = vld [vmem:[#allocation5 + $0x40] ss:$16 sps:$4 sm:$0xff]  }
0x10c2   :  { %3646 = vmatprep.subr.bf16.mxu1 %v6334_v57  ;;  %6620 = vst [vmem:[#allocation59_spill] sm:$0xff] %v5809_v58  ;;  %6621 = vst [vmem:[#allocation60_spill] sm:$0xff] %v5812_v36 }
0x10c3   :  { %2627 = vmatmul.mubr.bf16.vlgmr.msra.gmra.mrb[76].mxu0 %v5698_v3  ;;  %v5815_v3 = vld [vmem:[#allocation5 + $0x64] ss:$16 sps:$4 sm:$0xff]  }
0x10c4   :  { %2703 = vmatpush1.bf16.msra.mxu0 %v5799_v62  ;;  %2734 = vmatprep.mubr.bf16.mxu0 %v6335_v12  ;;  %6622 = vst [vmem:[#allocation61_spill] sm:$0xff] %v5815_v3  ;;  %v5818_v62 = vld [vmem:[#allocation5 + $0x60] ss:$16 sps:$4 sm:$0xff]  }
0x10c5   :  { %2704 = vmatprep.subr.bf16.mxu0 %v5803_v47  ;;  %6623 = vst [vmem:[#allocation62_spill] sm:$0xff] %v5818_v62  ;;  %v5821_v47 = vld [vmem:[#allocation5 + $0x84] ss:$16 sps:$4 sm:$0xff]  }
0x10c6   :  { %6624 = vst [vmem:[#allocation63_spill] sm:$0xff] %v5821_v47 }
0x10c8   :  { %2705 = vmatpush1.bf16.msra.mxu0 %v5806_v8  ;;  %v5824_v8 = vld [vmem:[#allocation5 + $0x80] ss:$16 sps:$4 sm:$0xff]  }
0x10c9   :  { %2706 = vmatprep.subr.bf16.mxu0 %v5809_v58  ;;  %6625 = vst [vmem:[#allocation64_spill] sm:$0xff] %v5824_v8  ;;  %v5827_v58 = vld [vmem:[#allocation5 + $0xa4] ss:$16 sps:$4 sm:$0xff]  }
0x10ca   :  { %6626 = vst [vmem:[#allocation65_spill] sm:$0xff] %v5827_v58 }
0x10cc   :  { %2707 = vmatpush1.bf16.msra.mxu0 %v5812_v36  ;;  %v2588_v36 = vpop.f32.mrb[72].mxu1 }
0x10cd   :  { %2708 = vmatprep.subr.bf16.mxu0 %v5815_v3  ;;  %v3644_v37 = vpop.f32.mrb[73].mxu1 }
0x10ce   :  { %v2591_v3 = vpop.f32.mrb[74].mxu1 }
0x10d0   :  { %2709 = vmatpush1.bf16.msra.mxu0 %v5818_v62  ;;  %v5833_v62 = vld [vmem:[#allocation5 + $0xc4] ss:$16 sps:$4 sm:$0xff]  }
0x10d1   :  { %2710 = vmatprep.subr.bf16.mxu0 %v5821_v47  ;;  %6628 = vst [vmem:[#allocation67_spill] sm:$0xff] %v5833_v62  ;;  %v3645_v47 = vpop.f32.mrb[75].mxu1 }
0x10d4   :  { %2711 = vmatpush1.bf16.msra.mxu0 %v5824_v8  ;;  %v5839_v8 = vld [vmem:[#allocation5 + $0xe4] ss:$16 sps:$4 sm:$0xff]  }
0x10d5   :  { %2712 = vmatprep.subr.bf16.mxu0 %v5827_v58  ;;  %6630 = vst [vmem:[#allocation16_spill] sm:$0xff] %v5839_v8  ;;  %v5842_v58 = vld [vmem:[#allocation5 + $0xe0] ss:$16 sps:$4 sm:$0xff]  }
0x10d6   :  { %6631 = vst [vmem:[#allocation34_spill] sm:$0xff] %v5842_v58 }
0x10d8   :  { %2713 = vmatpush1.bf16.msra.mxu0 %v5830_v15 }
0x10d9   :  { %2714 = vmatprep.subr.bf16.mxu0 %v5833_v62 }
0x10dc   :  { %2715 = vmatpush1.bf16.msra.mxu0 %v5836_v22 }
0x10dd   :  { %2716 = vmatprep.subr.bf16.mxu0 %v5839_v8 }
0x10e0   :  { %2717 = vmatpush1.bf16.msra.mxu0 %v5842_v58 }
0x10e1   :  { %3475 = vmatprep.subr.bf16.mxu0 %v6573_v0 }
0x1176   :  { %v3460_v37 = vpop.f32.mrb[72].mxu0  ;;  %v5846_v3 = vpop.f32.mrb[76].mxu1 }
0x1177   :  { %v3461_v15 = vpop.f32.mrb[73].mxu0  ;;  %v5848_v62 = vpop.f32.mrb[77].mxu1 }
0x1178   :  { %v3462_v47 = vadd.f32 %v3461_v15, %v3460_v37  ;;  %v3463_v16 = vpop.f32.mrb[74].mxu0  ;;  %v2673_v2 = vpop.f32.mrb[78].mxu1 }
0x1179   :  { %v3464_v22 = vpop.f32.mrb[75].mxu0  ;;  %v2674_v50 = vpop.f32.mrb[79].mxu1 }
0x117a   :  { %v2549_v27 = vadd.f32 %v5567_v20, %v3462_v47 }
0x117c   :  { %v2589_v8 = vadd.f32 %v2588_v36, %v2549_v27 }
0x117e   :  { %3930 = vtanh.f32 %v2589_v8 }
0x1188   :  { %v3931_v9 = vpop.eup %3930 }
0x1189   :  { %v2677_v58 = vmul.f32 %v5573_v10, %v3931_v9 }
0x118b   :  { %v2678_v0 = vsel %vm667_vm1, %v2677_v58, 0.0 }
0x118c   :  { %2679 = vadd.xlane.f32.xlu0 %v2678_v0 }
0x1196   :  { %v5853_v1 = vpop.f32.mrb[76].mxu0 }
0x1197   :  { %v5855_v5 = vpop.f32.mrb[77].mxu0 }
0x1198   :  { %v2632_v19 = vpop.f32.mrb[78].mxu0 }
0x1199   :  { %v2633_v15 = vpop.f32.mrb[79].mxu0 }
0x1219   :  { %v2680_v16 = vpop.xlane.xlu0 %2679 }
0x121a   :  { %v2681_v2 = vsel %vm667_vm1, %v2680_v16, -inf }
0x121b   :  { %v2682_v50 = vrot.slane %v2681_v2, 4 }
0x121d   :  { %v2683_v22 = vmax.f32 %v2681_v2, %v2682_v50 }
0x121f   :  { %v2684_v37 = vrot.slane %v2683_v22, 2 }
0x1221   :  { %v2685_v27 = vmax.f32 %v2683_v22, %v2684_v37  ;;  %v6641_v37 = vld [vmem:[#allocation21_spill] sm:$0xff] }
0x1223   :  { %v2686_v8 = vrot.slane %v2685_v27, 1 }
0x1225   :  { %v2687_v36 = vmax.f32 %v2685_v27, %v2686_v8  ;;  %v6642_v27 = vld [vmem:[#allocation22_spill] sm:$0xff] }
0x1226   :  { %v6643_v8 = vld [vmem:[#allocation46_spill] sm:$0xff] }
0x1227   :  { %v2688_v47 = vsub.f32 %v2680_v16, %v2687_v36  ;;  %v6644_v36 = vld [vmem:[#allocation48_spill] sm:$0xff] }
0x1229   :  { %v2689_v9 = vmul.f32 1.442695, %v2688_v47  ;;  %v6645_v47 = vld [vmem:[#allocation23_spill] sm:$0xff] }
0x122b   :  { %3932 = vpow2.f32 %v2689_v9  ;;  %v6646_v9 = vld [vmem:[#allocation24_spill] sm:$0xff] }
0x1235   :  { %v3933_v58 = vpop.eup %3932 }
0x1236   :  { %v2691_v0 = vsel %vm667_vm1, %v3933_v58, 0.0 }
0x1237   :  { %v2692_v10 = vrot.slane %v2691_v0, 4 }
0x1239   :  { %v2693_v20 = vadd.f32 %v2692_v10, %v2691_v0  ;;  %v6648_v0 = vld [vmem:[#allocation32_spill] sm:$0xff] }
0x123b   :  { %v2694_v44 = vrot.slane %v2693_v20, 2 }
0x123d   :  { %v2695_v19 = vadd.f32 %v2694_v44, %v2693_v20 }
0x123f   :  { %v2696_v15 = vrot.slane %v2695_v19, 1 }
0x1241   :  { %v2697_v13 = vadd.f32 %v2696_v15, %v2695_v19  ;;  %v6649_v19 = vld [vmem:[#allocation13_spill] sm:$0xff]  ;;  %v6650_v15 = vld [vmem:[#allocation52_spill] sm:$0xff] }
0x1243   :  { %3934 = vrcp.f32 %v2697_v13  ;;  %v6640_v13 = vld [vmem:[#allocation44_spill] sm:$0xff] }
0x124d   :  { %v3935_v63 = vpop.eup %3934 }
0x124e   :  { %v2699_v14 = vmul.f32 %v3935_v63, %v3933_v58  ;;  %v6647_v58 = vld [vmem:[#allocation50_spill] sm:$0xff] }
0x1250   :  { %v2700_v2 = vmul.f32 %v5631_v40, %v2699_v14 }
0x1252   :  { %v2701_v50 = vpack.c.bf16 %v2700_v2, %v2700_v2  ;;  %v6651_v2 = vld [vmem:[#allocation25_spill] sm:$0xff] }
0x1254   :  { %2735 = vmatmul.mubr.bf16.vlgmr.msra.gmra.mrb[80].mxu0 %v2701_v50  ;;  %2776 = vmatmul.mubr.bf16.vlgmr.msra.gmra.mrb[80].mxu1 %v2701_v50  ;;  %v6652_v50 = vld [vmem:[#allocation26_spill] sm:$0xff] }
0x1255   :  { %3647 = vmatpush3.bf16.msra.mxu1 %v5397_v35  ;;  %3476 = vmatpush3.bf16.msra.mxu0 %v5400_v53  ;;  %v5897_v35 = vld [vmem:[%s6007_s0 + $0x1c] sm:$0xf]  ;;  %s4259_s0 = smov [#allocation8]  }
0x1256   :  { %3648 = vmatprep.subr.bf16.mxu1 %v6334_v57  ;;  %3662 = vmatprep.mubr.msk.bf16.mxu1 %vm4257_vm0, %v6334_v57  ;;  %v2818_v53 = vpack.c.bf16 %v5897_v35, %v5897_v35  ;;  %s3124_s18 = sshll.u32 %s4259_s0, 4  ;;  %s3125_s18 = int_to_ptr.vmem [resolvable:$true] %s3124_s18 }
0x1257   :  { %3477 = vmatprep.subr.bf16.mxu0 %v5406_v28  ;;  %v6633_v28 = vld [vmem:[#allocation38_spill] sm:$0xff]  ;;  %s4220_s19 = scalar_lea.vmem %s3125_s18, 512  ;;  %p4225_p11 = scmp.lt.s32.totalorder %s3125_s18, %s3125_s18 }
0x1258   :  { %p4221_p10 = scmp.ne.s32.totalorder %s3125_s18, %s4220_s19  ;;  %p4226_p12 = scmp.lt.s32.totalorder %s4220_s19, %s4220_s19 }
0x1259   :  { %3649 = vmatpush3.bf16.msra.mxu1 %v5409_v6  ;;  %3478 = vmatpush3.bf16.msra.mxu0 %v5412_v41  ;;  %v6634_v6 = vld [vmem:[#allocation14_spill] sm:$0xff]  ;;  %v6635_v41 = vld [vmem:[#allocation15_spill] sm:$0xff] }
0x125a   :  { %3650 = vmatprep.subr.bf16.mxu1 %v6334_v57  ;;  %3479 = vmatprep.subr.bf16.mxu0 %v5416_v38  ;;  %v6636_v38 = vld [vmem:[#allocation40_spill] sm:$0xff]  ;;  %p4227_p13 = por %p4226_p12, %p4225_p11 }
0x125c   :  { %p4228_p0 = pnand %p4227_p13, %p4221_p10 }
0x125d   :  { %3651 = vmatpush3.bf16.msra.mxu1 %v5419_v34  ;;  %3480 = vmatpush3.bf16.msra.mxu0 %v5422_v30  ;;  %v6637_v34 = vld [vmem:[#allocation19_spill] sm:$0xff]  ;;  %v6638_v30 = vld [vmem:[#allocation20_spill] sm:$0xff] }
0x125e   :  { %3652 = vmatprep.subr.bf16.mxu1 %v6334_v57  ;;  %3481 = vmatprep.subr.bf16.mxu0 %v5426_v25  ;;  %v6639_v25 = vld [vmem:[#allocation42_spill] sm:$0xff] }
0x1261   :  { %3653 = vmatpush3.bf16.msra.mxu1 %v5429_v48  ;;  %3482 = vmatpush3.bf16.msra.mxu0 %v5432_v33 }
0x1262   :  { %3654 = vmatprep.subr.bf16.mxu1 %v6334_v57  ;;  %3483 = vmatprep.subr.bf16.mxu0 %v5436_v31 }
0x1265   :  { %3655 = vmatpush3.bf16.msra.mxu1 %v5439_v54  ;;  %3484 = vmatpush3.bf16.msra.mxu0 %v5442_v45 }
0x1266   :  { %3656 = vmatprep.subr.bf16.mxu1 %v6334_v57  ;;  %3485 = vmatprep.subr.bf16.mxu0 %v5446_v56 }
0x1269   :  { %3657 = vmatpush3.bf16.msra.mxu1 %v5449_v26  ;;  %3486 = vmatpush3.bf16.msra.mxu0 %v5452_v52 }
0x126a   :  { %3658 = vmatprep.subr.bf16.mxu1 %v6334_v57  ;;  %3487 = vmatprep.subr.bf16.mxu0 %v5456_v42 }
0x126d   :  { %3659 = vmatpush3.bf16.msra.mxu1 %v5459_v60  ;;  %3488 = vmatpush3.bf16.msra.mxu0 %v6576_v55 }
0x126e   :  { %3660 = vmatprep.subr.bf16.mxu1 %v6334_v57  ;;  %3489 = vmatprep.subr.bf16.mxu0 %v5613_v4  ;;  %v6632_v57 = vld [vmem:[#allocation18_spill] sm:$0xff] }
0x1271   :  { %3661 = vmatpush3.bf16.msra.mxu1 %v5616_v23  ;;  %3490 = vmatpush3.bf16.msra.mxu0 %v5619_v24 }
0x1272   :  { %2940 = vmatprep.subr.bf16.mxu1 %v5622_v43  ;;  %2899 = vmatprep.subr.bf16.mxu0 %v5625_v39 }
0x1274   :  { %3663 = vmatmul.mubr.bf16.vlgmr.msra.gmra.mrb[84].mxu1 %v2818_v53  ;;  %v6653_v53 = vld [vmem:[#allocation54_spill] sm:$0xff] }
0x1275   :  { %2941 = vmatpush1.bf16.msra.mxu1 %v5635_v11  ;;  %2972 = vmatprep.mubr.bf16.mxu1 %v6335_v12 }
0x1276   :  { %2942 = vmatprep.subr.bf16.mxu1 %v5639_v32 }
0x1279   :  { %2943 = vmatpush1.bf16.msra.mxu1 %v5642_v46 }
0x127a   :  { %2944 = vmatprep.subr.bf16.mxu1 %v5645_v29 }
0x127d   :  { %2945 = vmatpush1.bf16.msra.mxu1 %v5648_v17 }
0x127e   :  { %2946 = vmatprep.subr.bf16.mxu1 %v5651_v7 }
0x1281   :  { %2947 = vmatpush1.bf16.msra.mxu1 %v5654_v61 }
0x1282   :  { %2948 = vmatprep.subr.bf16.mxu1 %v5657_v59 }
0x1285   :  { %2949 = vmatpush1.bf16.msra.mxu1 %v6632_v57  ;;  %v6654_v57 = vld [vmem:[#allocation56_spill] sm:$0xff] }
0x1286   :  { %2950 = vmatprep.subr.bf16.mxu1 %v6633_v28  ;;  %v6655_v28 = vld [vmem:[#allocation27_spill] sm:$0xff] }
0x1289   :  { %2951 = vmatpush1.bf16.msra.mxu1 %v6634_v6  ;;  %v6656_v6 = vld [vmem:[#allocation28_spill] sm:$0xff] }
0x128a   :  { %2952 = vmatprep.subr.bf16.mxu1 %v6635_v41  ;;  %v6657_v41 = vld [vmem:[#allocation58_spill] sm:$0xff] }
0x128d   :  { %2953 = vmatpush1.bf16.msra.mxu1 %v6636_v38  ;;  %v6658_v38 = vld [vmem:[#allocation29_spill] sm:$0xff] }
0x128e   :  { %2954 = vmatprep.subr.bf16.mxu1 %v6637_v34  ;;  %v6659_v34 = vld [vmem:[#allocation31_spill] sm:$0xff] }
0x1291   :  { %2955 = vmatpush1.bf16.msra.mxu1 %v6638_v30  ;;  %v6660_v30 = vld [vmem:[#allocation33_spill] sm:$0xff] }
0x1292   :  { %3048 = vmatprep.subr.bf16.mxu1 %v6639_v25  ;;  %v6661_v25 = vld [vmem:[#allocation35_spill] sm:$0xff] }
0x1327   :  { %v2736_v48 = vpop.f32.mrb[80].mxu0  ;;  %v2777_v33 = vpop.f32.mrb[80].mxu1 }
0x1328   :  { %v2737_v31 = vadd.f32 %v2736_v48, %v5853_v1  ;;  %v2778_v54 = vadd.f32 %v2777_v33, %v5846_v3  ;;  %v2738_v45 = vpop.f32.mrb[81].mxu0  ;;  %v2779_v56 = vpop.f32.mrb[81].mxu1  ;;  %v6662_v48 = vld [vmem:[#allocation37_spill] sm:$0xff]  ;;  %v6663_v33 = vld [vmem:[#allocation39_spill] sm:$0xff] }
0x1329   :  { %v2739_v26 = vadd.f32 %v2738_v45, %v5855_v5  ;;  %v2780_v52 = vadd.f32 %v2779_v56, %v5848_v62  ;;  %v2740_v42 = vpop.f32.mrb[82].mxu0  ;;  %v2781_v60 = vpop.f32.mrb[82].mxu1  ;;  %v6666_v45 = vld [vmem:[#allocation45_spill] sm:$0xff]  ;;  %v6667_v56 = vld [vmem:[#allocation47_spill] sm:$0xff] }
0x132a   :  { %v2784_v20 = vadd.f32 %v2737_v31, %v4711_v18  ;;  %v2741_v10 = vpop.f32.mrb[83].mxu0  ;;  %v2782_v55 = vpop.f32.mrb[83].mxu1  ;;  %v2786_v43 = vadd.f32 %v2778_v54, %v4717_v49  ;;  %v6664_v31 = vld [vmem:[#allocation41_spill] sm:$0xff]  ;;  %v6665_v54 = vld [vmem:[#allocation43_spill] sm:$0xff] }
0x132b   :  { %v2785_v4 = vadd.f32 %v2739_v26, %v4713_v21  ;;  %v2787_v39 = vadd.f32 %v2780_v52, %v4719_v51  ;;  %v6668_v26 = vld [vmem:[#allocation49_spill] sm:$0xff]  ;;  %v6669_v52 = vld [vmem:[#allocation51_spill] sm:$0xff]  ;;  %v6673_v10 = vld [vmem:[#allocation12_spill] sm:$0xff] }
0x132c   :  { %v3251_v23 = vmul.f32 -1.442695, %v2784_v20  ;;  %v3253_v40 = vmul.f32 -1.442695, %v2786_v43  ;;  %v6670_v42 = vld [vmem:[#allocation53_spill] sm:$0xff]  ;;  %v6671_v60 = vld [vmem:[#allocation55_spill] sm:$0xff] }
0x132d   :  { %v3252_v24 = vmul.f32 -1.442695, %v2785_v4  ;;  %v6672_v20 = vld [vmem:[#allocation57_spill] sm:$0xff]  ;;  %v6674_v55 = vld [vmem:[#allocation30_spill] sm:$0xff]  ;;  %v6675_v4 = vld [vmem:[#allocation59_spill] sm:$0xff] }
0x132e   :  { %3936 = vpow2.f32 %v3251_v23  ;;  %v6676_v23 = vld [vmem:[#allocation60_spill] sm:$0xff]  ;;  %v6678_v43 = vld [vmem:[#allocation62_spill] sm:$0xff] }
0x132f   :  { %3938 = vpow2.f32 %v3252_v24  ;;  %v6677_v24 = vld [vmem:[#allocation61_spill] sm:$0xff] }
0x1330   :  { %3940 = vtanh.f32 %v2787_v39  ;;  %v6679_v39 = vld [vmem:[#allocation63_spill] sm:$0xff] }
0x1331   :  { %3942 = vpow2.f32 %v3253_v40  ;;  %v6680_v40 = vld [vmem:[#allocation64_spill] sm:$0xff] }
0x1338   :  { %v3937_v11 = vpop.eup %3936 }
0x1339   :  { %v2797_v32 = vadd.f32 1.0, %v3937_v11  ;;  %v3939_v46 = vpop.eup %3938  ;;  %v6681_v11 = vld [vmem:[#allocation65_spill] sm:$0xff] }
0x133a   :  { %v2798_v29 = vadd.f32 1.0, %v3939_v46  ;;  %v3941_v17 = vpop.eup %3940  ;;  %v6682_v46 = vld [vmem:[#allocation66_spill] sm:$0xff] }
0x133b   :  { %3944 = vrcp.f32 %v2797_v32  ;;  %v3943_v7 = vpop.eup %3942 }
0x133c   :  { %3946 = vrcp.f32 %v2798_v29  ;;  %v2799_v63 = vadd.f32 1.0, %v3943_v7 }
0x133e   :  { %3948 = vrcp.f32 %v2799_v63 }
0x1345   :  { %v3945_v61 = vpop.eup %3944 }
0x1346   :  { %v2808_v59 = vmul.f32 %v3945_v61, %v3941_v17  ;;  %v3947_v14 = vpop.eup %3946  ;;  %v6683_v17 = vld [vmem:[#allocation67_spill] sm:$0xff]  ;;  %v6684_v61 = vld [vmem:[#allocation68_spill] sm:$0xff] }
0x1347   :  { %v2807_v44 = vmul.f32 %v3947_v14, %v6640_v13  ;;  %v2893_v32 = vpop.f32.mrb[84].mxu1  ;;  %v6686_v14 = vld [vmem:[#allocation34_spill] sm:$0xff] }
0x1348   :  { %v3949_v62 = vpop.eup %3948 }
0x1349   :  { %v5927_v5 = vadd.f32 %v2808_v59, %v2807_v44  ;;  %v6685_v59 = vld [vmem:[#allocation16_spill] sm:$0xff] }
0x134b   :  { %3950 = vtanh.f32 %v5927_v5  ;;  %v2817_v1 = vpack.c.bf16 %v5927_v5, %v5927_v5 }
0x134d   :  { %2851 = vmatprep.mubr.bf16.mxu0 %v2817_v1 }
0x1355   :  { %v3951_v3 = vpop.eup %3950 }
0x1356   :  { %v2811_v16 = vmul.f32 %v3951_v3, %v3949_v62 }
0x1358   :  { %2813 = vst [vmem:[#allocation8 + $0x18] sm:$0xf] %v2811_v16  ;;  %v2816_v22 = vpack.c.bf16 %v2811_v16, %v2811_v16 }
0x135a   :  { %2852 = vmatmul.mubr.bf16.vlgmr.msra.gmra.mrb[84].mxu0 %v2816_v22  ;;  %2973 = vmatmul.mubr.bf16.vlgmr.msra.gmra.mrb[88].mxu1 %v2816_v22 }
0x135b   :  { %2900 = vmatpush1.bf16.msra.mxu0 %v6641_v37  ;;  %2931 = vmatprep.mubr.bf16.mxu0 %v6335_v12 }
0x135c   :  { %2901 = vmatprep.subr.bf16.mxu0 %v6642_v27  ;;  %3049 = vmatpush1.bf16.msra.mxu1 %v6643_v8  ;;  %v6687_v27 = vld [vmem:[#allocation36_spill] sm:$0xff] }
0x135d   :  { %3050 = vmatprep.subr.bf16.mxu1 %v6644_v36  ;;  %3080 = vmatprep.mubr.bf16.mxu1 %v6335_v12 }
0x135f   :  { %2902 = vmatpush1.bf16.msra.mxu0 %v6645_v47 }
0x1360   :  { %2903 = vmatprep.subr.bf16.mxu0 %v6646_v9  ;;  %3051 = vmatpush1.bf16.msra.mxu1 %v6647_v58  ;;  %v6688_v9 = vld [vmem:[#allocation17_spill] sm:$0xff] }
0x1361   :  { %3052 = vmatprep.subr.bf16.mxu1 %v6648_v0 }
0x1363   :  { %2904 = vmatpush1.bf16.msra.mxu0 %v6649_v19 }
0x1364   :  { %2905 = vmatprep.subr.bf16.mxu0 %v6650_v15  ;;  %3053 = vmatpush1.bf16.msra.mxu1 %v6651_v2 }
0x1365   :  { %3054 = vmatprep.subr.bf16.mxu1 %v6652_v50 }
0x1367   :  { %2906 = vmatpush1.bf16.msra.mxu0 %v6653_v53 }
0x1368   :  { %2907 = vmatprep.subr.bf16.mxu0 %v6654_v57  ;;  %3055 = vmatpush1.bf16.msra.mxu1 %v6655_v28 }
0x1369   :  { %3056 = vmatprep.subr.bf16.mxu1 %v6656_v6 }
0x136b   :  { %2908 = vmatpush1.bf16.msra.mxu0 %v6657_v41 }
0x136c   :  { %2909 = vmatprep.subr.bf16.mxu0 %v6658_v38  ;;  %3057 = vmatpush1.bf16.msra.mxu1 %v6659_v34 }
0x136d   :  { %3058 = vmatprep.subr.bf16.mxu1 %v6660_v30 }
0x136f   :  { %2910 = vmatpush1.bf16.msra.mxu0 %v6661_v25 }
0x1370   :  { %2911 = vmatprep.subr.bf16.mxu0 %v6662_v48  ;;  %3059 = vmatpush1.bf16.msra.mxu1 %v6663_v33 }
0x1371   :  { %3060 = vmatprep.subr.bf16.mxu1 %v6664_v31 }
0x1373   :  { %2912 = vmatpush1.bf16.msra.mxu0 %v6665_v54 }
0x1374   :  { %2913 = vmatprep.subr.bf16.mxu0 %v6666_v45  ;;  %3061 = vmatpush1.bf16.msra.mxu1 %v6667_v56 }
0x1375   :  { %3062 = vmatprep.subr.bf16.mxu1 %v6668_v26 }
0x1377   :  { %2914 = vmatpush1.bf16.msra.mxu0 %v6669_v52 }
0x1378   :  { %3007 = vmatprep.subr.bf16.mxu0 %v6670_v42  ;;  %3063 = vmatpush1.bf16.msra.mxu1 %v6671_v60 }
0x137a   :  { %2932 = vmatmul.mubr.bf16.vlgmr.msra.gmra.mrb[88].mxu0 %v2816_v22 }
0x137b   :  { %3008 = vmatpush1.bf16.msra.mxu0 %v6672_v20  ;;  %3039 = vmatprep.mubr.bf16.mxu0 %v6335_v12  ;;  %v3664_v12 = vpop.f32.mrb[85].mxu1 }
0x137c   :  { %3009 = vmatprep.subr.bf16.mxu0 %v6673_v10  ;;  %v2896_v29 = vpop.f32.mrb[86].mxu1 }
0x137d   :  { %v3665_v7 = vpop.f32.mrb[87].mxu1 }
0x137f   :  { %3010 = vmatpush1.bf16.msra.mxu0 %v6674_v55 }
0x1380   :  { %3011 = vmatprep.subr.bf16.mxu0 %v6675_v4 }
0x1383   :  { %3012 = vmatpush1.bf16.msra.mxu0 %v6676_v23 }
0x1384   :  { %3013 = vmatprep.subr.bf16.mxu0 %v6677_v24 }
0x1387   :  { %3014 = vmatpush1.bf16.msra.mxu0 %v6678_v43 }
0x1388   :  { %3015 = vmatprep.subr.bf16.mxu0 %v6679_v39 }
0x138b   :  { %3016 = vmatpush1.bf16.msra.mxu0 %v6680_v40 }
0x138c   :  { %3017 = vmatprep.subr.bf16.mxu0 %v6681_v11 }
0x138f   :  { %3018 = vmatpush1.bf16.msra.mxu0 %v6682_v46 }
0x1390   :  { %3019 = vmatprep.subr.bf16.mxu0 %v6683_v17 }
0x1393   :  { %3020 = vmatpush1.bf16.msra.mxu0 %v6684_v61 }
0x1394   :  { %3021 = vmatprep.subr.bf16.mxu0 %v6685_v59 }
0x1397   :  { %3022 = vmatpush1.bf16.msra.mxu0 %v6686_v14 }
0x142d   :  { %v3491_v63 = vpop.f32.mrb[84].mxu0  ;;  %v2974_v13 = vpop.f32.mrb[88].mxu1 }
0x142e   :  { %v3492_v44 = vpop.f32.mrb[85].mxu0  ;;  %v2976_v1 = vpop.f32.mrb[89].mxu1 }
0x142f   :  { %v3493_v62 = vadd.f32 %v3492_v44, %v3491_v63  ;;  %v3494_v3 = vpop.f32.mrb[86].mxu0  ;;  %v2978_v16 = vpop.f32.mrb[90].mxu1 }
0x1430   :  { %v3495_v22 = vpop.f32.mrb[87].mxu0  ;;  %v2979_v37 = vpop.f32.mrb[91].mxu1 }
0x1431   :  { %v2854_v8 = vadd.f32 %v6687_v27, %v3493_v62 }
0x1433   :  { %v2894_v36 = vadd.f32 %v2893_v32, %v2854_v8 }
0x1435   :  { %3952 = vtanh.f32 %v2894_v36 }
0x143f   :  { %v3953_v47 = vpop.eup %3952 }
0x1440   :  { %v2982_v58 = vmul.f32 %v6688_v9, %v3953_v47 }
0x1442   :  { %v2983_v0 = vsel %vm667_vm1, %v2982_v58, 0.0 }
0x1443   :  { %2984 = vadd.xlane.f32.xlu1 %v2983_v0 }
0x144d   :  { %v2933_v19 = vpop.f32.mrb[88].mxu0 }
0x144e   :  { %v2935_v15 = vpop.f32.mrb[89].mxu0 }
0x144f   :  { %v2937_v2 = vpop.f32.mrb[90].mxu0 }
0x1450   :  { %v2938_v50 = vpop.f32.mrb[91].mxu0 }
0x14d0   :  { %v2985_v53 = vpop.xlane.xlu1 %2984 }
0x14d1   :  { %v2986_v57 = vsel %vm667_vm1, %v2985_v53, -inf }
0x14d2   :  { %v2987_v28 = vrot.slane %v2986_v57, 4 }
0x14d4   :  { %v2988_v6 = vmax.f32 %v2986_v57, %v2987_v28 }
0x14d6   :  { %v2989_v41 = vrot.slane %v2988_v6, 2 }
0x14d8   :  { %v2990_v38 = vmax.f32 %v2988_v6, %v2989_v41 }
0x14da   :  { %v2991_v34 = vrot.slane %v2990_v38, 1 }
0x14dc   :  { %v2992_v30 = vmax.f32 %v2990_v38, %v2991_v34 }
0x14de   :  { %v2993_v25 = vsub.f32 %v2985_v53, %v2992_v30 }
0x14e0   :  { %v2994_v48 = vmul.f32 1.442695, %v2993_v25 }
0x14e2   :  { %3954 = vpow2.f32 %v2994_v48 }
0x14ec   :  { %v3955_v33 = vpop.eup %3954 }
0x14ed   :  { %v2996_v31 = vsel %vm667_vm1, %v3955_v33, 0.0 }
0x14ee   :  { %v2997_v54 = vrot.slane %v2996_v31, 4 }
0x14f0   :  { %v2998_v45 = vadd.f32 %v2997_v54, %v2996_v31 }
0x14f2   :  { %v2999_v56 = vrot.slane %v2998_v45, 2 }
0x14f4   :  { %v3000_v26 = vadd.f32 %v2999_v56, %v2998_v45 }
0x14f6   :  { %v3001_v52 = vrot.slane %v3000_v26, 1 }
0x14f8   :  { %v3002_v42 = vadd.f32 %v3001_v52, %v3000_v26 }
0x14fa   :  { %3956 = vrcp.f32 %v3002_v42 }
0x1504   :  { %v3957_v60 = vpop.eup %3956 }
0x1505   :  { %v3004_v20 = vmul.f32 %v3957_v60, %v3955_v33 }
0x1507   :  { %v3005_v10 = vmul.f32 %v5897_v35, %v3004_v20 }
0x1509   :  { %v3006_v55 = vpack.c.bf16 %v3005_v10, %v3005_v10 }
0x150b   :  { %3040 = vmatmul.mubr.bf16.vlgmr.msra.gmra.mrb[92].mxu0 %v3006_v55  ;;  %3081 = vmatmul.mubr.bf16.vlgmr.msra.gmra.mrb[92].mxu1 %v3006_v55 }
0x15de   :  { %v3041_v4 = vpop.f32.mrb[92].mxu0  ;;  %v3082_v23 = vpop.f32.mrb[92].mxu1 }
0x15df   :  { %v3042_v24 = vadd.f32 %v3041_v4, %v2933_v19  ;;  %v3083_v43 = vadd.f32 %v3082_v23, %v2974_v13  ;;  %v3043_v39 = vpop.f32.mrb[93].mxu0  ;;  %v3084_v40 = vpop.f32.mrb[93].mxu1 }
0x15e0   :  { %v3044_v11 = vadd.f32 %v3043_v39, %v2935_v15  ;;  %v3085_v32 = vadd.f32 %v3084_v40, %v2976_v1  ;;  %v3045_v12 = vpop.f32.mrb[94].mxu0  ;;  %v3086_v46 = vpop.f32.mrb[94].mxu1 }
0x15e1   :  { %v3089_v29 = vadd.f32 %v3042_v24, %v4711_v18  ;;  %v3046_v17 = vpop.f32.mrb[95].mxu0  ;;  %v3087_v7 = vpop.f32.mrb[95].mxu1  ;;  %v3091_v14 = vadd.f32 %v3083_v43, %v4717_v49 }
0x15e2   :  { %v3090_v61 = vadd.f32 %v3044_v11, %v4713_v21  ;;  %v3092_v63 = vadd.f32 %v3085_v32, %v4719_v51 }
0x15e3   :  { %v3255_v35 = vmul.f32 -1.442695, %v3089_v29  ;;  %v3257_v13 = vmul.f32 -1.442695, %v3091_v14 }
0x15e4   :  { %v3256_v59 = vmul.f32 -1.442695, %v3090_v61 }
0x15e5   :  { %3958 = vpow2.f32 %v3255_v35 }
0x15e6   :  { %3960 = vpow2.f32 %v3256_v59 }
0x15e7   :  { %3962 = vtanh.f32 %v3092_v63 }
0x15e8   :  { %3964 = vpow2.f32 %v3257_v13 }
0x15ef   :  { %v3959_v44 = vpop.eup %3958 }
0x15f0   :  { %v3102_v62 = vadd.f32 1.0, %v3959_v44  ;;  %v3961_v1 = vpop.eup %3960 }
0x15f1   :  { %v3103_v18 = vadd.f32 1.0, %v3961_v1  ;;  %v3963_v3 = vpop.eup %3962 }
0x15f2   :  { %3966 = vrcp.f32 %v3102_v62  ;;  %v3965_v16 = vpop.eup %3964 }
0x15f3   :  { %3968 = vrcp.f32 %v3103_v18  ;;  %v3104_v27 = vadd.f32 1.0, %v3965_v16 }
0x15f5   :  { %3970 = vrcp.f32 %v3104_v27 }
0x15fc   :  { %v3967_v21 = vpop.eup %3966 }
0x15fd   :  { %v3113_v22 = vmul.f32 %v3967_v21, %v3963_v3  ;;  %v3969_v37 = vpop.eup %3968 }
0x15fe   :  { %v3112_v8 = vmul.f32 %v3969_v37, %v5927_v5 }
0x15ff   :  { %v3971_v51 = vpop.eup %3970 }
0x1600   :  { %v3114_v49 = vadd.f32 %v3113_v22, %v3112_v8 }
0x1602   :  { %3972 = vtanh.f32 %v3114_v49 }
0x160c   :  { %v3973_v36 = vpop.eup %3972 }
0x160d   :  { %v3116_v47 = vmul.f32 %v3973_v36, %v3971_v51 }
0x160f   :  { %3118 = vst [vmem:[#allocation8 + $0x1c] sm:$0xf] %v3116_v47 }
0x1610   :  { %4231 = shalt.err (!%p4228_p0)
}
0x1611   :  { %s4232_s22 = scalar_lea.hbm %s6014_s7, 512 }
0x1612   :  { %p4233_p1 = scmp.ne.s32.totalorder %s6014_s7, %s4232_s22  ;;  %p4236_p2 = scmp.lt.u32.totalorder %s4232_s22, %s6014_s7 }
0x1614   :  { %p4238_p3 = pnand %p4236_p2, %p4233_p1 }
0x1616   :  { %4241 = shalt.err (!%p4238_p3)
}
0x1617   :  { %3130 = dma.vmem_to_hbm [thread:$0]  %s3125_s18, 512, %s6014_s7, [#allocation4], %s4252_s4, %s4252_s4, %s4253_s25  }
0x1618   :  { %4246 = dma.done.wait [#allocation4], 512  }
0x1619   :  { %4247 = vsyncadd [#allocation4], 4294966784 }
0x161a   :  { %3134 = vsyncpa [#allocation3], 1 }
0x161b   :  { %3135 = vsyncpa [#allocation6], 1 }
0x161c   :  { %3136 = vsyncpa [#allocation4], 1 }

</bundles_post_ra>
